<compile_context>
chip_gen: v5e
topology: v5e:2x2
jax: 0.10.0
libtpu: 0.0.40
codegen_flags: <defaults>
</compile_context>

<pallas_src>
import functools

import jax
import jax.numpy as jnp
from jax.experimental import pallas as pl
from jax.experimental.pallas import tpu as pltpu


# ---------------- fused embedding + N-layer BERT encoder kernel ----------------

def _bert_encoder_kernel(ids_ref, wemb_ref, posty_ref, eg_ref, eb_ref,
                         wqkv_ref, bqkv_ref, wo_ref, bo_ref,
                         ln1g_ref, ln1b_ref, w1_ref, b1_ref, w2_ref, b2_ref,
                         ln2g_ref, ln2b_ref, o_ref, act_ref,
                         *, batch, seq, hidden, n_heads, vocab, eps):
    H = hidden
    S = seq
    dh = H // n_heads
    layer = pl.program_id(0)
    inv_h = 1.0 / H

    def layernorm(v, g, b):
        # Single-pass mean / variance (one reduction pair instead of two passes).
        mean = jnp.sum(v, axis=-1, keepdims=True) * inv_h
        ex2 = jnp.sum(v * v, axis=-1, keepdims=True) * inv_h
        var = ex2 - mean * mean
        return (v - mean) * jax.lax.rsqrt(var + eps) * g + b

    # ---- layer 0: embedding lookup + pos/type add + LN seeds the resident activation ----
    @pl.when(layer == 0)
    def _():
        ids = ids_ref[...]                                            # (B*S, 1) int32
        iota = jax.lax.broadcasted_iota(jnp.int32, (ids.shape[0], vocab), 1)
        onehot = (iota == ids).astype(jnp.float32)                    # built in-kernel
        word = jnp.dot(onehot, wemb_ref[...], preferred_element_type=jnp.float32)
        act_ref[...] = layernorm(word + posty_ref[...], eg_ref[...], eb_ref[...])

    x = act_ref[...]                                                  # (B*S, H) f32, VMEM-resident

    # ---- fused QKV projection over all B*S rows (attn scale pre-folded into Q weights) ----
    qkv = jnp.dot(x.astype(jnp.bfloat16), wqkv_ref[0],
                  preferred_element_type=jnp.float32) + bqkv_ref[0]   # (B*S, 3H)
    q = qkv[:, 0:H]
    k = qkv[:, H:2 * H]
    v = qkv[:, 2 * H:3 * H]

    # ---- attention: per (batch, head); heads accumulate straight into the output proj ----
    # TODO(synk): for larger S switch the per-head Python loop to a batched
    #   (n_heads, S, dh) einsum so Mosaic can schedule contiguous MXU work.
    wo = wo_ref[0]
    attn_rows = []
    for b in range(batch):
        rows = slice(b * S, (b + 1) * S)
        attn_b = None
        for hh in range(n_heads):
            cols = slice(hh * dh, (hh + 1) * dh)
            qh = q[rows, cols].astype(jnp.bfloat16)
            kh = k[rows, cols].astype(jnp.bfloat16)
            vh = v[rows, cols].astype(jnp.bfloat16)
            s = jax.lax.dot_general(qh, kh, (((1,), (1,)), ((), ())),
                                    preferred_element_type=jnp.float32)   # (S, S)
            s = s - jnp.max(s, axis=-1, keepdims=True)
            p = jnp.exp(s)
            p = p * pl.reciprocal(jnp.sum(p, axis=-1, keepdims=True), approx=True)
            ctx = jnp.dot(p.astype(jnp.bfloat16), vh,
                          preferred_element_type=jnp.float32)             # (S, dh)
            part = jnp.dot(ctx.astype(jnp.bfloat16), wo[cols, :],
                           preferred_element_type=jnp.float32)            # (S, H)
            attn_b = part if attn_b is None else attn_b + part
        attn_rows.append(attn_b)
    attn = jnp.concatenate(attn_rows, axis=0) + bo_ref[0]             # sublane concat (cheap)

    h1 = layernorm(attn + x, ln1g_ref[0], ln1b_ref[0])

    # ---- FFN + residual + LN2 ----
    ffn = jnp.dot(h1.astype(jnp.bfloat16), w1_ref[0],
                  preferred_element_type=jnp.float32) + b1_ref[0]
    # TODO(synk): HF BERT uses exact (erf) GELU; tanh approximation used here.
    ffn = jax.nn.gelu(ffn, approximate=True)
    ffn = jnp.dot(ffn.astype(jnp.bfloat16), w2_ref[0],
                  preferred_element_type=jnp.float32) + b2_ref[0]
    h2 = layernorm(ffn + h1, ln2g_ref[0], ln2b_ref[0])

    act_ref[...] = h2                     # carry to next layer (VMEM-resident)
    o_ref[...] = h2.astype(o_ref.dtype)   # constant out block -> single HBM writeback at end


def bert_encoder(ids, pos_type, p, *, batch, seq, n_heads, eps=1e-12):
    """ids:(B*S,1) int32; pos_type:(B*S,H) f32; stacked per-layer weights in `p`."""
    n_tok = ids.shape[0]
    V, H = p["word_emb"].shape
    L = p["wqkv"].shape[0]
    I = p["w1"].shape[2]

    kernel = functools.partial(_bert_encoder_kernel, batch=batch, seq=seq,
                               hidden=H, n_heads=n_heads, vocab=V, eps=eps)

    def const(shape):
        return pl.BlockSpec(shape, lambda l: (0, 0))

    def per_layer(shape):
        return pl.BlockSpec((1,) + shape, lambda l: (l, 0, 0))

    return pl.pallas_call(
        kernel,
        out_shape=jax.ShapeDtypeStruct((n_tok, H), jnp.float32),
        grid=(L,),
        in_specs=[
            const((n_tok, 1)),                                  # token ids
            const((V, H)),                                      # word embedding table
            const((n_tok, H)),                                  # position + token-type emb (flat)
            const((1, H)), const((1, H)),                       # embedding LN gamma / beta
            per_layer((H, 3 * H)), per_layer((1, 3 * H)),       # wqkv (bf16), bqkv
            per_layer((H, H)), per_layer((1, H)),               # wo (bf16), bo
            per_layer((1, H)), per_layer((1, H)),               # ln1 gamma / beta
            per_layer((H, I)), per_layer((1, I)),               # w1 (bf16), b1
            per_layer((I, H)), per_layer((1, H)),               # w2 (bf16), b2
            per_layer((1, H)), per_layer((1, H)),               # ln2 gamma / beta
        ],
        out_specs=pl.BlockSpec((n_tok, H), lambda l: (0, 0)),
        scratch_shapes=[pltpu.VMEM((n_tok, H), jnp.float32)],   # cross-layer activation
        compiler_params=pltpu.CompilerParams(dimension_semantics=("arbitrary",)),
    )(ids, p["word_emb"], pos_type, p["emb_ln_g"], p["emb_ln_b"],
      p["wqkv"], p["bqkv"], p["wo"], p["bo"], p["ln1_g"], p["ln1_b"],
      p["w1"], p["b1"], p["w2"], p["b2"], p["ln2_g"], p["ln2_b"])


# --------------------------------- LSTM kernel --------------------------------

def _lstm_kernel(x_ref, wih_ref, whh_ref, b_ref, o_ref, gx_ref,
                 *, seq_len, batch, hidden):
    H = hidden
    # Hoisted input projection: one big matmul for all timesteps (bf16 -> f32 acc).
    gx_ref[...] = (jnp.dot(x_ref[...].astype(jnp.bfloat16), wih_ref[...],
                           preferred_element_type=jnp.float32) + b_ref[...])

    h0 = jnp.zeros((batch, H), jnp.float32)
    c0 = jnp.zeros((batch, H), jnp.float32)

    def step(t, carry):
        h, c = carry
        row = pl.multiple_of(t * batch, batch)
        gates = gx_ref[pl.ds(row, batch), :] + jnp.dot(
            h.astype(jnp.bfloat16), whh_ref[...],
            preferred_element_type=jnp.float32)                       # (batch, 4H)
        # Gate layout (i, f, o, g): one wide sigmoid over 3H lanes, one tanh over H.
        sig = jax.nn.sigmoid(gates[:, 0:3 * H])
        i_g = sig[:, 0:H]
        f_g = sig[:, H:2 * H]
        o_g = sig[:, 2 * H:3 * H]
        g_g = jnp.tanh(gates[:, 3 * H:4 * H])
        c_new = f_g * c + i_g * g_g
        h_new = o_g * jnp.tanh(c_new)
        o_ref[pl.ds(row, batch), :] = h_new
        return (h_new, c_new)

    jax.lax.fori_loop(0, seq_len, step, (h0, c0), unroll=True)
    # TODO(synk): cap the unroll (e.g. unroll=4) for long sequences to avoid
    # instruction-memory / vreg-live-range blowup.


def lstm(x_tm, w_ih, w_hh, b):
    """x_tm: time-major (S, Bp, H) f32; w_ih,w_hh: (H,4H) bf16; b: (1,4H) f32."""
    S, Bp, H = x_tm.shape
    x_flat = x_tm.reshape(S * Bp, H)
    kernel = functools.partial(_lstm_kernel, seq_len=S, batch=Bp, hidden=H)
    out = pl.pallas_call(
        kernel,
        out_shape=jax.ShapeDtypeStruct((S * Bp, H), jnp.float32),
        grid=(1,),
        in_specs=[
            pl.BlockSpec((S * Bp, H), lambda i: (0, 0)),
            pl.BlockSpec((H, 4 * H), lambda i: (0, 0)),
            pl.BlockSpec((H, 4 * H), lambda i: (0, 0)),
            pl.BlockSpec((1, 4 * H), lambda i: (0, 0)),
        ],
        out_specs=pl.BlockSpec((S * Bp, H), lambda i: (0, 0)),
        scratch_shapes=[pltpu.VMEM((S * Bp, 4 * H), jnp.float32)],
        compiler_params=pltpu.CompilerParams(dimension_semantics=("arbitrary",)),
    )(x_flat, w_ih, w_hh, b)
    return out.reshape(S, Bp, H)


# ----------------------------- parameter init (glue) ---------------------------

def init_params(key, *, vocab, hidden, n_layers, n_heads, intermediate,
                max_pos, type_vocab):
    keys = iter(jax.random.split(key, 16))
    H, I, L = hidden, intermediate, n_layers
    dh = H // n_heads

    def nrm(shape):
        return 0.02 * jax.random.normal(next(keys), shape, jnp.float32)

    # Fold the 1/sqrt(dh) attention scale into the Q columns of wqkv (one-time, host side).
    wqkv = nrm((L, H, 3 * H))
    wqkv = wqkv.at[:, :, 0:H].multiply(1.0 / (dh ** 0.5))

    return {
        "word_emb": nrm((vocab, H)),                          # f32 (lookup fidelity)
        "pos_emb": nrm((max_pos, H)),
        "type_emb": nrm((type_vocab, H)),
        "emb_ln_g": jnp.ones((1, H), jnp.float32),
        "emb_ln_b": jnp.zeros((1, H), jnp.float32),
        # Stacked per-layer encoder weights (leading layer axis); matmul RHS in bf16.
        "wqkv": wqkv.astype(jnp.bfloat16), "bqkv": nrm((L, 1, 3 * H)),
        "wo": nrm((L, H, H)).astype(jnp.bfloat16), "bo": nrm((L, 1, H)),
        "ln1_g": jnp.ones((L, 1, H), jnp.float32), "ln1_b": jnp.zeros((L, 1, H), jnp.float32),
        "w1": nrm((L, H, I)).astype(jnp.bfloat16), "b1": nrm((L, 1, I)),
        "w2": nrm((L, I, H)).astype(jnp.bfloat16), "b2": nrm((L, 1, H)),
        "ln2_g": jnp.ones((L, 1, H), jnp.float32), "ln2_b": jnp.zeros((L, 1, H), jnp.float32),
        # LSTM: weights transposed to (in, 4H); gate columns laid out (i, f, o, g);
        # PyTorch b_ih + b_hh pre-summed.
        "lstm_w_ih": nrm((H, 4 * H)).astype(jnp.bfloat16),
        "lstm_w_hh": nrm((H, 4 * H)).astype(jnp.bfloat16),
        "lstm_b": nrm((1, 4 * H)) + nrm((1, 4 * H)),
    }


# --------------------------------- forward pass --------------------------------

def bert_lstm_forward(params, token_ids, *, n_heads):
    B, S = token_ids.shape
    V, H = params["word_emb"].shape

    # Position + token-type (id 0) embeddings, tiled over batch for the flat (B*S, H) layout.
    pos_type = jnp.tile(params["pos_emb"][:S] + params["type_emb"][0][None, :], (B, 1))
    ids = token_ids.reshape(B * S, 1).astype(jnp.int32)

    # One fused pallas_call: embedding + all encoder layers, activation resident in VMEM.
    h = bert_encoder(ids, pos_type, params, batch=B, seq=S, n_heads=n_heads)   # (B*S, H)
    h = h.reshape(B, S, H)

    # LSTM over the BERT sequence output (batch_first=True in torch).  Time-major,
    # batch padded to a multiple of 8 sublanes for full-tile recurrence ops.
    Bp = ((B + 7) // 8) * 8
    seq = jnp.transpose(h, (1, 0, 2))                                          # (S, B, H)
    if Bp != B:
        seq = jnp.pad(seq, ((0, 0), (0, Bp - B), (0, 0)))
    out_tm = lstm(seq, params["lstm_w_ih"], params["lstm_w_hh"], params["lstm_b"])
    return jnp.transpose(out_tm, (1, 0, 2))[:B]                                # (B, S, H)


# ------------------------------------- main -------------------------------------

if __name__ == "__main__":
    VOCAB, HIDDEN, N_LAYERS, N_HEADS, INTER = 32, 128, 2, 2, 256
    MAX_POS, TYPE_VOCAB = 16, 2
    B, S = 2, 8

    key = jax.random.PRNGKey(0)
    pkey, xkey = jax.random.split(key)
    params = init_params(pkey, vocab=VOCAB, hidden=HIDDEN, n_layers=N_LAYERS,
                         n_heads=N_HEADS, intermediate=INTER,
                         max_pos=MAX_POS, type_vocab=TYPE_VOCAB)

    token_ids = jax.random.randint(xkey, (B, S), 0, VOCAB, dtype=jnp.int32)

    forward = jax.jit(functools.partial(bert_lstm_forward, n_heads=N_HEADS))
    out = forward(params, token_ids)
    out = jax.block_until_ready(out)
    assert out.shape == (B, S, HIDDEN) and out.dtype == jnp.float32
    assert bool(jnp.all(jnp.isfinite(out)))
    print("KERNEL_OK")
</pallas_src>

<mosaic_0001>
module attributes {stable_mosaic.version = 11 : i64} {
  func.func @_bert_encoder_kernel(%arg0: i32, %arg1: memref<16x1xi32, #tpu.memory_space<vmem>>, %arg2: memref<32x128xf32, #tpu.memory_space<vmem>>, %arg3: memref<16x128xf32, #tpu.memory_space<vmem>>, %arg4: memref<1x128xf32, #tpu.memory_space<vmem>>, %arg5: memref<1x128xf32, #tpu.memory_space<vmem>>, %arg6: memref<1x128x384xbf16, #tpu.memory_space<vmem>>, %arg7: memref<1x1x384xf32, #tpu.memory_space<vmem>>, %arg8: memref<1x128x128xbf16, #tpu.memory_space<vmem>>, %arg9: memref<1x1x128xf32, #tpu.memory_space<vmem>>, %arg10: memref<1x1x128xf32, #tpu.memory_space<vmem>>, %arg11: memref<1x1x128xf32, #tpu.memory_space<vmem>>, %arg12: memref<1x128x256xbf16, #tpu.memory_space<vmem>>, %arg13: memref<1x1x256xf32, #tpu.memory_space<vmem>>, %arg14: memref<1x256x128xbf16, #tpu.memory_space<vmem>>, %arg15: memref<1x1x128xf32, #tpu.memory_space<vmem>>, %arg16: memref<1x1x128xf32, #tpu.memory_space<vmem>>, %arg17: memref<1x1x128xf32, #tpu.memory_space<vmem>>, %arg18: memref<16x128xf32, #tpu.memory_space<vmem>>, %arg19: memref<16x128xf32, #tpu.memory_space<vmem>>) attributes {dimension_semantics = [#tpu.dimension_semantics<arbitrary>], iteration_bounds = array<i64: 2>, scalar_prefetch = 0 : i64, scratch_operands = 1 : i64, tpu.core_type = #tpu.core_type<tc>, window_params = [{pipeline_mode = #tpu.pipeline_mode<synchronous>, transform_indices = @transform_0, window_bounds = array<i64: 16, 1>}, {pipeline_mode = #tpu.pipeline_mode<synchronous>, transform_indices = @transform_1, window_bounds = array<i64: 32, 128>}, {pipeline_mode = #tpu.pipeline_mode<synchronous>, transform_indices = @transform_2, window_bounds = array<i64: 16, 128>}, {pipeline_mode = #tpu.pipeline_mode<synchronous>, transform_indices = @transform_3, window_bounds = array<i64: 1, 128>}, {pipeline_mode = #tpu.pipeline_mode<synchronous>, transform_indices = @transform_4, window_bounds = array<i64: 1, 128>}, {transform_indices = @transform_5, window_bounds = array<i64: 1, 128, 384>}, {transform_indices = @transform_6, window_bounds = array<i64: 1, 1, 384>}, {transform_indices = @transform_7, window_bounds = array<i64: 1, 128, 128>}, {transform_indices = @transform_8, window_bounds = array<i64: 1, 1, 128>}, {transform_indices = @transform_9, window_bounds = array<i64: 1, 1, 128>}, {transform_indices = @transform_10, window_bounds = array<i64: 1, 1, 128>}, {transform_indices = @transform_11, window_bounds = array<i64: 1, 128, 256>}, {transform_indices = @transform_12, window_bounds = array<i64: 1, 1, 256>}, {transform_indices = @transform_13, window_bounds = array<i64: 1, 256, 128>}, {transform_indices = @transform_14, window_bounds = array<i64: 1, 1, 128>}, {transform_indices = @transform_15, window_bounds = array<i64: 1, 1, 128>}, {transform_indices = @transform_16, window_bounds = array<i64: 1, 1, 128>}, {pipeline_mode = #tpu.pipeline_mode<synchronous>, transform_indices = @transform_17, window_bounds = array<i64: 16, 128>}]} {
    %c0_i32 = arith.constant 0 : i32
    %0 = arith.cmpi eq, %arg0, %c0_i32 : i32
    %1 = arith.extui %0 : i1 to i32
    %c0_i32_0 = arith.constant 0 : i32
    %2 = arith.cmpi ne, %1, %c0_i32_0 : i32
    scf.if %2 {
      %c0_78 = arith.constant 0 : index
      %c0_79 = arith.constant 0 : index
      %197 = vector.load %arg1[%c0_78, %c0_79] : memref<16x1xi32, #tpu.memory_space<vmem>>, vector<16x1xi32>
      %198 = tpu.iota {dimensions = array<i32: 1>} : vector<16x32xi32>
      %199 = vector.broadcast %197 : vector<16x1xi32> to vector<16x32xi32>
      %200 = arith.cmpi eq, %198, %199 : vector<16x32xi32>
      %201 = arith.extui %200 : vector<16x32xi1> to vector<16x32xi32>
      %202 = arith.sitofp %201 : vector<16x32xi32> to vector<16x32xf32>
      %c0_80 = arith.constant 0 : index
      %c0_81 = arith.constant 0 : index
      %203 = vector.load %arg2[%c0_80, %c0_81] : memref<32x128xf32, #tpu.memory_space<vmem>>, vector<32x128xf32>
      %cst_82 = arith.constant dense<0.000000e+00> : vector<16x128xf32>
      %204 = tpu.matmul %202, %203, %cst_82 {dimension_numbers = #tpu.dot_dimension_numbers<[1], [0], [0], [1], [0, 0, 1, 1], [], []>} : vector<16x32xf32>, vector<32x128xf32>, vector<16x128xf32> -> vector<16x128xf32>
      %c0_83 = arith.constant 0 : index
      %c0_84 = arith.constant 0 : index
      %205 = vector.load %arg3[%c0_83, %c0_84] : memref<16x128xf32, #tpu.memory_space<vmem>>, vector<16x128xf32>
      %206 = arith.addf %204, %205 : vector<16x128xf32>
      %c0_85 = arith.constant 0 : index
      %c0_86 = arith.constant 0 : index
      %207 = vector.load %arg4[%c0_85, %c0_86] : memref<1x128xf32, #tpu.memory_space<vmem>>, vector<1x128xf32>
      %c0_87 = arith.constant 0 : index
      %c0_88 = arith.constant 0 : index
      %208 = vector.load %arg5[%c0_87, %c0_88] : memref<1x128xf32, #tpu.memory_space<vmem>>, vector<1x128xf32>
      %cst_89 = arith.constant dense<0.000000e+00> : vector<16xf32>
      %209 = vector.multi_reduction <add>, %206, %cst_89 [1] : vector<16x128xf32> to vector<16xf32>
      %210 = vector.shape_cast %209 : vector<16xf32> to vector<16x1xf32>
      %cst_90 = arith.constant 7.812500e-03 : f32
      %211 = vector.broadcast %cst_90 : f32 to vector<16x1xf32>
      %212 = arith.mulf %210, %211 : vector<16x1xf32>
      %213 = arith.mulf %206, %206 : vector<16x128xf32>
      %cst_91 = arith.constant dense<0.000000e+00> : vector<16xf32>
      %214 = vector.multi_reduction <add>, %213, %cst_91 [1] : vector<16x128xf32> to vector<16xf32>
      %215 = vector.shape_cast %214 : vector<16xf32> to vector<16x1xf32>
      %cst_92 = arith.constant 7.812500e-03 : f32
      %216 = vector.broadcast %cst_92 : f32 to vector<16x1xf32>
      %217 = arith.mulf %215, %216 : vector<16x1xf32>
      %218 = arith.mulf %212, %212 : vector<16x1xf32>
      %219 = arith.subf %217, %218 : vector<16x1xf32>
      %220 = vector.broadcast %212 : vector<16x1xf32> to vector<16x128xf32>
      %221 = arith.subf %206, %220 : vector<16x128xf32>
      %cst_93 = arith.constant 9.99999996E-13 : f32
      %222 = vector.broadcast %cst_93 : f32 to vector<16x1xf32>
      %223 = arith.addf %219, %222 : vector<16x1xf32>
      %224 = math.rsqrt %223 : vector<16x1xf32>
      %225 = vector.broadcast %224 : vector<16x1xf32> to vector<16x128xf32>
      %226 = arith.mulf %221, %225 : vector<16x128xf32>
      %227 = vector.broadcast %207 : vector<1x128xf32> to vector<16x128xf32>
      %228 = arith.mulf %226, %227 : vector<16x128xf32>
      %229 = vector.broadcast %208 : vector<1x128xf32> to vector<16x128xf32>
      %230 = arith.addf %228, %229 : vector<16x128xf32>
      %c0_94 = arith.constant 0 : index
      %c0_95 = arith.constant 0 : index
      %231 = vector.load %arg19[%c0_94, %c0_95] : memref<16x128xf32, #tpu.memory_space<vmem>>, vector<16x128xf32>
      tpu.vector_store %arg19[%c0_94, %c0_95], %230 {strides = array<i32>} : memref<16x128xf32, #tpu.memory_space<vmem>>, vector<16x128xf32>,
    } else {
    }
    %c0 = arith.constant 0 : index
    %c0_1 = arith.constant 0 : index
    %3 = vector.load %arg19[%c0, %c0_1] : memref<16x128xf32, #tpu.memory_space<vmem>>, vector<16x128xf32>
    %4 = arith.truncf %3 : vector<16x128xf32> to vector<16x128xbf16>
    %c0_2 = arith.constant 0 : index
    %c0_3 = arith.constant 0 : index
    %c0_4 = arith.constant 0 : index
    %5 = vector.load %arg6[%c0_2, %c0_3, %c0_4] : memref<1x128x384xbf16, #tpu.memory_space<vmem>>, vector<1x128x384xbf16>
    %6 = vector.shape_cast %5 : vector<1x128x384xbf16> to vector<128x384xbf16>
    %cst = arith.constant dense<0.000000e+00> : vector<16x384xf32>
    %7 = tpu.matmul %4, %6, %cst {dimension_numbers = #tpu.dot_dimension_numbers<[1], [0], [0], [1], [0, 0, 1, 1], [], []>} : vector<16x128xbf16>, vector<128x384xbf16>, vector<16x384xf32> -> vector<16x384xf32>
    %c0_5 = arith.constant 0 : index
    %c0_6 = arith.constant 0 : index
    %c0_7 = arith.constant 0 : index
    %8 = vector.load %arg7[%c0_5, %c0_6, %c0_7] : memref<1x1x384xf32, #tpu.memory_space<vmem>>, vector<1x1x384xf32>
    %9 = vector.shape_cast %8 : vector<1x1x384xf32> to vector<1x384xf32>
    %10 = vector.broadcast %9 : vector<1x384xf32> to vector<16x384xf32>
    %11 = arith.addf %7, %10 : vector<16x384xf32>
    %12 = vector.extract_strided_slice %11 {offsets = [0, 0], sizes = [16, 128], strides = [1, 1]} : vector<16x384xf32> to vector<16x128xf32>
    %13 = vector.extract_strided_slice %11 {offsets = [0, 128], sizes = [16, 128], strides = [1, 1]} : vector<16x384xf32> to vector<16x128xf32>
    %14 = vector.extract_strided_slice %11 {offsets = [0, 256], sizes = [16, 128], strides = [1, 1]} : vector<16x384xf32> to vector<16x128xf32>
    %c0_8 = arith.constant 0 : index
    %c0_9 = arith.constant 0 : index
    %c0_10 = arith.constant 0 : index
    %15 = vector.load %arg8[%c0_8, %c0_9, %c0_10] : memref<1x128x128xbf16, #tpu.memory_space<vmem>>, vector<1x128x128xbf16>
    %16 = vector.shape_cast %15 : vector<1x128x128xbf16> to vector<128x128xbf16>
    %17 = vector.extract_strided_slice %12 {offsets = [0, 0], sizes = [8, 64], strides = [1, 1]} : vector<16x128xf32> to vector<8x64xf32>
    %18 = arith.truncf %17 : vector<8x64xf32> to vector<8x64xbf16>
    %19 = vector.extract_strided_slice %13 {offsets = [0, 0], sizes = [8, 64], strides = [1, 1]} : vector<16x128xf32> to vector<8x64xf32>
    %20 = arith.truncf %19 : vector<8x64xf32> to vector<8x64xbf16>
    %21 = vector.extract_strided_slice %14 {offsets = [0, 0], sizes = [8, 64], strides = [1, 1]} : vector<16x128xf32> to vector<8x64xf32>
    %22 = arith.truncf %21 : vector<8x64xf32> to vector<8x64xbf16>
    %cst_11 = arith.constant dense<0.000000e+00> : vector<8x8xf32>
    %23 = tpu.matmul %18, %20, %cst_11 {dimension_numbers = #tpu.dot_dimension_numbers<[1], [1], [0], [0], [0, 0, 1, 0], [], []>} : vector<8x64xbf16>, vector<8x64xbf16>, vector<8x8xf32> -> vector<8x8xf32>
    %cst_12 = arith.constant dense<0xFF800000> : vector<8xf32>
    %24 = vector.multi_reduction <maximumf>, %23, %cst_12 [1] : vector<8x8xf32> to vector<8xf32>
    %25 = vector.shape_cast %24 : vector<8xf32> to vector<8x1xf32>
    %26 = vector.broadcast %25 : vector<8x1xf32> to vector<8x8xf32>
    %27 = arith.subf %23, %26 : vector<8x8xf32>
    %28 = math.exp %27 : vector<8x8xf32>
    %cst_13 = arith.constant dense<0.000000e+00> : vector<8xf32>
    %29 = vector.multi_reduction <add>, %28, %cst_13 [1] : vector<8x8xf32> to vector<8xf32>
    %30 = vector.shape_cast %29 : vector<8xf32> to vector<8x1xf32>
    %31 = tpu.reciprocal %30 {approx = true} : vector<8x1xf32> -> vector<8x1xf32>
    %32 = vector.broadcast %31 : vector<8x1xf32> to vector<8x8xf32>
    %33 = arith.mulf %28, %32 : vector<8x8xf32>
    %34 = arith.truncf %33 : vector<8x8xf32> to vector<8x8xbf16>
    %cst_14 = arith.constant dense<0.000000e+00> : vector<8x64xf32>
    %35 = tpu.matmul %34, %22, %cst_14 {dimension_numbers = #tpu.dot_dimension_numbers<[1], [0], [0], [1], [0, 0, 1, 1], [], []>} : vector<8x8xbf16>, vector<8x64xbf16>, vector<8x64xf32> -> vector<8x64xf32>
    %36 = arith.truncf %35 : vector<8x64xf32> to vector<8x64xbf16>
    %37 = vector.extract_strided_slice %16 {offsets = [0, 0], sizes = [64, 128], strides = [1, 1]} : vector<128x128xbf16> to vector<64x128xbf16>
    %cst_15 = arith.constant dense<0.000000e+00> : vector<8x128xf32>
    %38 = tpu.matmul %36, %37, %cst_15 {dimension_numbers = #tpu.dot_dimension_numbers<[1], [0], [0], [1], [0, 0, 1, 1], [], []>} : vector<8x64xbf16>, vector<64x128xbf16>, vector<8x128xf32> -> vector<8x128xf32>
    %39 = vector.extract_strided_slice %12 {offsets = [0, 64], sizes = [8, 64], strides = [1, 1]} : vector<16x128xf32> to vector<8x64xf32>
    %40 = arith.truncf %39 : vector<8x64xf32> to vector<8x64xbf16>
    %41 = vector.extract_strided_slice %13 {offsets = [0, 64], sizes = [8, 64], strides = [1, 1]} : vector<16x128xf32> to vector<8x64xf32>
    %42 = arith.truncf %41 : vector<8x64xf32> to vector<8x64xbf16>
    %43 = vector.extract_strided_slice %14 {offsets = [0, 64], sizes = [8, 64], strides = [1, 1]} : vector<16x128xf32> to vector<8x64xf32>
    %44 = arith.truncf %43 : vector<8x64xf32> to vector<8x64xbf16>
    %cst_16 = arith.constant dense<0.000000e+00> : vector<8x8xf32>
    %45 = tpu.matmul %40, %42, %cst_16 {dimension_numbers = #tpu.dot_dimension_numbers<[1], [1], [0], [0], [0, 0, 1, 0], [], []>} : vector<8x64xbf16>, vector<8x64xbf16>, vector<8x8xf32> -> vector<8x8xf32>
    %cst_17 = arith.constant dense<0xFF800000> : vector<8xf32>
    %46 = vector.multi_reduction <maximumf>, %45, %cst_17 [1] : vector<8x8xf32> to vector<8xf32>
    %47 = vector.shape_cast %46 : vector<8xf32> to vector<8x1xf32>
    %48 = vector.broadcast %47 : vector<8x1xf32> to vector<8x8xf32>
    %49 = arith.subf %45, %48 : vector<8x8xf32>
    %50 = math.exp %49 : vector<8x8xf32>
    %cst_18 = arith.constant dense<0.000000e+00> : vector<8xf32>
    %51 = vector.multi_reduction <add>, %50, %cst_18 [1] : vector<8x8xf32> to vector<8xf32>
    %52 = vector.shape_cast %51 : vector<8xf32> to vector<8x1xf32>
    %53 = tpu.reciprocal %52 {approx = true} : vector<8x1xf32> -> vector<8x1xf32>
    %54 = vector.broadcast %53 : vector<8x1xf32> to vector<8x8xf32>
    %55 = arith.mulf %50, %54 : vector<8x8xf32>
    %56 = arith.truncf %55 : vector<8x8xf32> to vector<8x8xbf16>
    %cst_19 = arith.constant dense<0.000000e+00> : vector<8x64xf32>
    %57 = tpu.matmul %56, %44, %cst_19 {dimension_numbers = #tpu.dot_dimension_numbers<[1], [0], [0], [1], [0, 0, 1, 1], [], []>} : vector<8x8xbf16>, vector<8x64xbf16>, vector<8x64xf32> -> vector<8x64xf32>
    %58 = arith.truncf %57 : vector<8x64xf32> to vector<8x64xbf16>
    %59 = vector.extract_strided_slice %16 {offsets = [64, 0], sizes = [64, 128], strides = [1, 1]} : vector<128x128xbf16> to vector<64x128xbf16>
    %cst_20 = arith.constant dense<0.000000e+00> : vector<8x128xf32>
    %60 = tpu.matmul %58, %59, %cst_20 {dimension_numbers = #tpu.dot_dimension_numbers<[1], [0], [0], [1], [0, 0, 1, 1], [], []>} : vector<8x64xbf16>, vector<64x128xbf16>, vector<8x128xf32> -> vector<8x128xf32>
    %61 = arith.addf %38, %60 : vector<8x128xf32>
    %62 = vector.extract_strided_slice %12 {offsets = [8, 0], sizes = [8, 64], strides = [1, 1]} : vector<16x128xf32> to vector<8x64xf32>
    %63 = arith.truncf %62 : vector<8x64xf32> to vector<8x64xbf16>
    %64 = vector.extract_strided_slice %13 {offsets = [8, 0], sizes = [8, 64], strides = [1, 1]} : vector<16x128xf32> to vector<8x64xf32>
    %65 = arith.truncf %64 : vector<8x64xf32> to vector<8x64xbf16>
    %66 = vector.extract_strided_slice %14 {offsets = [8, 0], sizes = [8, 64], strides = [1, 1]} : vector<16x128xf32> to vector<8x64xf32>
    %67 = arith.truncf %66 : vector<8x64xf32> to vector<8x64xbf16>
    %cst_21 = arith.constant dense<0.000000e+00> : vector<8x8xf32>
    %68 = tpu.matmul %63, %65, %cst_21 {dimension_numbers = #tpu.dot_dimension_numbers<[1], [1], [0], [0], [0, 0, 1, 0], [], []>} : vector<8x64xbf16>, vector<8x64xbf16>, vector<8x8xf32> -> vector<8x8xf32>
    %cst_22 = arith.constant dense<0xFF800000> : vector<8xf32>
    %69 = vector.multi_reduction <maximumf>, %68, %cst_22 [1] : vector<8x8xf32> to vector<8xf32>
    %70 = vector.shape_cast %69 : vector<8xf32> to vector<8x1xf32>
    %71 = vector.broadcast %70 : vector<8x1xf32> to vector<8x8xf32>
    %72 = arith.subf %68, %71 : vector<8x8xf32>
    %73 = math.exp %72 : vector<8x8xf32>
    %cst_23 = arith.constant dense<0.000000e+00> : vector<8xf32>
    %74 = vector.multi_reduction <add>, %73, %cst_23 [1] : vector<8x8xf32> to vector<8xf32>
    %75 = vector.shape_cast %74 : vector<8xf32> to vector<8x1xf32>
    %76 = tpu.reciprocal %75 {approx = true} : vector<8x1xf32> -> vector<8x1xf32>
    %77 = vector.broadcast %76 : vector<8x1xf32> to vector<8x8xf32>
    %78 = arith.mulf %73, %77 : vector<8x8xf32>
    %79 = arith.truncf %78 : vector<8x8xf32> to vector<8x8xbf16>
    %cst_24 = arith.constant dense<0.000000e+00> : vector<8x64xf32>
    %80 = tpu.matmul %79, %67, %cst_24 {dimension_numbers = #tpu.dot_dimension_numbers<[1], [0], [0], [1], [0, 0, 1, 1], [], []>} : vector<8x8xbf16>, vector<8x64xbf16>, vector<8x64xf32> -> vector<8x64xf32>
    %81 = arith.truncf %80 : vector<8x64xf32> to vector<8x64xbf16>
    %82 = vector.extract_strided_slice %16 {offsets = [0, 0], sizes = [64, 128], strides = [1, 1]} : vector<128x128xbf16> to vector<64x128xbf16>
    %cst_25 = arith.constant dense<0.000000e+00> : vector<8x128xf32>
    %83 = tpu.matmul %81, %82, %cst_25 {dimension_numbers = #tpu.dot_dimension_numbers<[1], [0], [0], [1], [0, 0, 1, 1], [], []>} : vector<8x64xbf16>, vector<64x128xbf16>, vector<8x128xf32> -> vector<8x128xf32>
    %84 = vector.extract_strided_slice %12 {offsets = [8, 64], sizes = [8, 64], strides = [1, 1]} : vector<16x128xf32> to vector<8x64xf32>
    %85 = arith.truncf %84 : vector<8x64xf32> to vector<8x64xbf16>
    %86 = vector.extract_strided_slice %13 {offsets = [8, 64], sizes = [8, 64], strides = [1, 1]} : vector<16x128xf32> to vector<8x64xf32>
    %87 = arith.truncf %86 : vector<8x64xf32> to vector<8x64xbf16>
    %88 = vector.extract_strided_slice %14 {offsets = [8, 64], sizes = [8, 64], strides = [1, 1]} : vector<16x128xf32> to vector<8x64xf32>
    %89 = arith.truncf %88 : vector<8x64xf32> to vector<8x64xbf16>
    %cst_26 = arith.constant dense<0.000000e+00> : vector<8x8xf32>
    %90 = tpu.matmul %85, %87, %cst_26 {dimension_numbers = #tpu.dot_dimension_numbers<[1], [1], [0], [0], [0, 0, 1, 0], [], []>} : vector<8x64xbf16>, vector<8x64xbf16>, vector<8x8xf32> -> vector<8x8xf32>
    %cst_27 = arith.constant dense<0xFF800000> : vector<8xf32>
    %91 = vector.multi_reduction <maximumf>, %90, %cst_27 [1] : vector<8x8xf32> to vector<8xf32>
    %92 = vector.shape_cast %91 : vector<8xf32> to vector<8x1xf32>
    %93 = vector.broadcast %92 : vector<8x1xf32> to vector<8x8xf32>
    %94 = arith.subf %90, %93 : vector<8x8xf32>
    %95 = math.exp %94 : vector<8x8xf32>
    %cst_28 = arith.constant dense<0.000000e+00> : vector<8xf32>
    %96 = vector.multi_reduction <add>, %95, %cst_28 [1] : vector<8x8xf32> to vector<8xf32>
    %97 = vector.shape_cast %96 : vector<8xf32> to vector<8x1xf32>
    %98 = tpu.reciprocal %97 {approx = true} : vector<8x1xf32> -> vector<8x1xf32>
    %99 = vector.broadcast %98 : vector<8x1xf32> to vector<8x8xf32>
    %100 = arith.mulf %95, %99 : vector<8x8xf32>
    %101 = arith.truncf %100 : vector<8x8xf32> to vector<8x8xbf16>
    %cst_29 = arith.constant dense<0.000000e+00> : vector<8x64xf32>
    %102 = tpu.matmul %101, %89, %cst_29 {dimension_numbers = #tpu.dot_dimension_numbers<[1], [0], [0], [1], [0, 0, 1, 1], [], []>} : vector<8x8xbf16>, vector<8x64xbf16>, vector<8x64xf32> -> vector<8x64xf32>
    %103 = arith.truncf %102 : vector<8x64xf32> to vector<8x64xbf16>
    %104 = vector.extract_strided_slice %16 {offsets = [64, 0], sizes = [64, 128], strides = [1, 1]} : vector<128x128xbf16> to vector<64x128xbf16>
    %cst_30 = arith.constant dense<0.000000e+00> : vector<8x128xf32>
    %105 = tpu.matmul %103, %104, %cst_30 {dimension_numbers = #tpu.dot_dimension_numbers<[1], [0], [0], [1], [0, 0, 1, 1], [], []>} : vector<8x64xbf16>, vector<64x128xbf16>, vector<8x128xf32> -> vector<8x128xf32>
    %106 = arith.addf %83, %105 : vector<8x128xf32>
    %107 = tpu.concatenate %61, %106 in 0 : vector<8x128xf32>, vector<8x128xf32> -> vector<16x128xf32>
    %c0_31 = arith.constant 0 : index
    %c0_32 = arith.constant 0 : index
    %c0_33 = arith.constant 0 : index
    %108 = vector.load %arg9[%c0_31, %c0_32, %c0_33] : memref<1x1x128xf32, #tpu.memory_space<vmem>>, vector<1x1x128xf32>
    %109 = vector.shape_cast %108 : vector<1x1x128xf32> to vector<1x128xf32>
    %110 = vector.broadcast %109 : vector<1x128xf32> to vector<16x128xf32>
    %111 = arith.addf %107, %110 : vector<16x128xf32>
    %112 = arith.addf %111, %3 : vector<16x128xf32>
    %c0_34 = arith.constant 0 : index
    %c0_35 = arith.constant 0 : index
    %c0_36 = arith.constant 0 : index
    %113 = vector.load %arg10[%c0_34, %c0_35, %c0_36] : memref<1x1x128xf32, #tpu.memory_space<vmem>>, vector<1x1x128xf32>
    %114 = vector.shape_cast %113 : vector<1x1x128xf32> to vector<1x128xf32>
    %c0_37 = arith.constant 0 : index
    %c0_38 = arith.constant 0 : index
    %c0_39 = arith.constant 0 : index
    %115 = vector.load %arg11[%c0_37, %c0_38, %c0_39] : memref<1x1x128xf32, #tpu.memory_space<vmem>>, vector<1x1x128xf32>
    %116 = vector.shape_cast %115 : vector<1x1x128xf32> to vector<1x128xf32>
    %cst_40 = arith.constant dense<0.000000e+00> : vector<16xf32>
    %117 = vector.multi_reduction <add>, %112, %cst_40 [1] : vector<16x128xf32> to vector<16xf32>
    %118 = vector.shape_cast %117 : vector<16xf32> to vector<16x1xf32>
    %cst_41 = arith.constant 7.812500e-03 : f32
    %119 = vector.broadcast %cst_41 : f32 to vector<16x1xf32>
    %120 = arith.mulf %118, %119 : vector<16x1xf32>
    %121 = arith.mulf %112, %112 : vector<16x128xf32>
    %cst_42 = arith.constant dense<0.000000e+00> : vector<16xf32>
    %122 = vector.multi_reduction <add>, %121, %cst_42 [1] : vector<16x128xf32> to vector<16xf32>
    %123 = vector.shape_cast %122 : vector<16xf32> to vector<16x1xf32>
    %cst_43 = arith.constant 7.812500e-03 : f32
    %124 = vector.broadcast %cst_43 : f32 to vector<16x1xf32>
    %125 = arith.mulf %123, %124 : vector<16x1xf32>
    %126 = arith.mulf %120, %120 : vector<16x1xf32>
    %127 = arith.subf %125, %126 : vector<16x1xf32>
    %128 = vector.broadcast %120 : vector<16x1xf32> to vector<16x128xf32>
    %129 = arith.subf %112, %128 : vector<16x128xf32>
    %cst_44 = arith.constant 9.99999996E-13 : f32
    %130 = vector.broadcast %cst_44 : f32 to vector<16x1xf32>
    %131 = arith.addf %127, %130 : vector<16x1xf32>
    %132 = math.rsqrt %131 : vector<16x1xf32>
    %133 = vector.broadcast %132 : vector<16x1xf32> to vector<16x128xf32>
    %134 = arith.mulf %129, %133 : vector<16x128xf32>
    %135 = vector.broadcast %114 : vector<1x128xf32> to vector<16x128xf32>
    %136 = arith.mulf %134, %135 : vector<16x128xf32>
    %137 = vector.broadcast %116 : vector<1x128xf32> to vector<16x128xf32>
    %138 = arith.addf %136, %137 : vector<16x128xf32>
    %139 = arith.truncf %138 : vector<16x128xf32> to vector<16x128xbf16>
    %c0_45 = arith.constant 0 : index
    %c0_46 = arith.constant 0 : index
    %c0_47 = arith.constant 0 : index
    %140 = vector.load %arg12[%c0_45, %c0_46, %c0_47] : memref<1x128x256xbf16, #tpu.memory_space<vmem>>, vector<1x128x256xbf16>
    %141 = vector.shape_cast %140 : vector<1x128x256xbf16> to vector<128x256xbf16>
    %cst_48 = arith.constant dense<0.000000e+00> : vector<16x256xf32>
    %142 = tpu.matmul %139, %141, %cst_48 {dimension_numbers = #tpu.dot_dimension_numbers<[1], [0], [0], [1], [0, 0, 1, 1], [], []>} : vector<16x128xbf16>, vector<128x256xbf16>, vector<16x256xf32> -> vector<16x256xf32>
    %c0_49 = arith.constant 0 : index
    %c0_50 = arith.constant 0 : index
    %c0_51 = arith.constant 0 : index
    %143 = vector.load %arg13[%c0_49, %c0_50, %c0_51] : memref<1x1x256xf32, #tpu.memory_space<vmem>>, vector<1x1x256xf32>
    %144 = vector.shape_cast %143 : vector<1x1x256xf32> to vector<1x256xf32>
    %145 = vector.broadcast %144 : vector<1x256xf32> to vector<16x256xf32>
    %146 = arith.addf %142, %145 : vector<16x256xf32>
    %147 = arith.mulf %146, %146 : vector<16x256xf32>
    %148 = arith.mulf %146, %147 : vector<16x256xf32>
    %cst_52 = arith.constant 4.471500e-02 : f32
    %149 = vector.broadcast %cst_52 : f32 to vector<16x256xf32>
    %150 = arith.mulf %149, %148 : vector<16x256xf32>
    %151 = arith.addf %146, %150 : vector<16x256xf32>
    %cst_53 = arith.constant 0.797884583 : f32
    %152 = vector.broadcast %cst_53 : f32 to vector<16x256xf32>
    %153 = arith.mulf %152, %151 : vector<16x256xf32>
    %154 = math.tanh %153 : vector<16x256xf32>
    %cst_54 = arith.constant 1.000000e+00 : f32
    %155 = vector.broadcast %cst_54 : f32 to vector<16x256xf32>
    %156 = arith.addf %155, %154 : vector<16x256xf32>
    %cst_55 = arith.constant 5.000000e-01 : f32
    %157 = vector.broadcast %cst_55 : f32 to vector<16x256xf32>
    %158 = arith.mulf %157, %156 : vector<16x256xf32>
    %159 = arith.mulf %146, %158 : vector<16x256xf32>
    %160 = arith.truncf %159 : vector<16x256xf32> to vector<16x256xbf16>
    %c0_56 = arith.constant 0 : index
    %c0_57 = arith.constant 0 : index
    %c0_58 = arith.constant 0 : index
    %161 = vector.load %arg14[%c0_56, %c0_57, %c0_58] : memref<1x256x128xbf16, #tpu.memory_space<vmem>>, vector<1x256x128xbf16>
    %162 = vector.shape_cast %161 : vector<1x256x128xbf16> to vector<256x128xbf16>
    %cst_59 = arith.constant dense<0.000000e+00> : vector<16x128xf32>
    %163 = tpu.matmul %160, %162, %cst_59 {dimension_numbers = #tpu.dot_dimension_numbers<[1], [0], [0], [1], [0, 0, 1, 1], [], []>} : vector<16x256xbf16>, vector<256x128xbf16>, vector<16x128xf32> -> vector<16x128xf32>
    %c0_60 = arith.constant 0 : index
    %c0_61 = arith.constant 0 : index
    %c0_62 = arith.constant 0 : index
    %164 = vector.load %arg15[%c0_60, %c0_61, %c0_62] : memref<1x1x128xf32, #tpu.memory_space<vmem>>, vector<1x1x128xf32>
    %165 = vector.shape_cast %164 : vector<1x1x128xf32> to vector<1x128xf32>
    %166 = vector.broadcast %165 : vector<1x128xf32> to vector<16x128xf32>
    %167 = arith.addf %163, %166 : vector<16x128xf32>
    %168 = arith.addf %167, %138 : vector<16x128xf32>
    %c0_63 = arith.constant 0 : index
    %c0_64 = arith.constant 0 : index
    %c0_65 = arith.constant 0 : index
    %169 = vector.load %arg16[%c0_63, %c0_64, %c0_65] : memref<1x1x128xf32, #tpu.memory_space<vmem>>, vector<1x1x128xf32>
    %170 = vector.shape_cast %169 : vector<1x1x128xf32> to vector<1x128xf32>
    %c0_66 = arith.constant 0 : index
    %c0_67 = arith.constant 0 : index
    %c0_68 = arith.constant 0 : index
    %171 = vector.load %arg17[%c0_66, %c0_67, %c0_68] : memref<1x1x128xf32, #tpu.memory_space<vmem>>, vector<1x1x128xf32>
    %172 = vector.shape_cast %171 : vector<1x1x128xf32> to vector<1x128xf32>
    %cst_69 = arith.constant dense<0.000000e+00> : vector<16xf32>
    %173 = vector.multi_reduction <add>, %168, %cst_69 [1] : vector<16x128xf32> to vector<16xf32>
    %174 = vector.shape_cast %173 : vector<16xf32> to vector<16x1xf32>
    %cst_70 = arith.constant 7.812500e-03 : f32
    %175 = vector.broadcast %cst_70 : f32 to vector<16x1xf32>
    %176 = arith.mulf %174, %175 : vector<16x1xf32>
    %177 = arith.mulf %168, %168 : vector<16x128xf32>
    %cst_71 = arith.constant dense<0.000000e+00> : vector<16xf32>
    %178 = vector.multi_reduction <add>, %177, %cst_71 [1] : vector<16x128xf32> to vector<16xf32>
    %179 = vector.shape_cast %178 : vector<16xf32> to vector<16x1xf32>
    %cst_72 = arith.constant 7.812500e-03 : f32
    %180 = vector.broadcast %cst_72 : f32 to vector<16x1xf32>
    %181 = arith.mulf %179, %180 : vector<16x1xf32>
    %182 = arith.mulf %176, %176 : vector<16x1xf32>
    %183 = arith.subf %181, %182 : vector<16x1xf32>
    %184 = vector.broadcast %176 : vector<16x1xf32> to vector<16x128xf32>
    %185 = arith.subf %168, %184 : vector<16x128xf32>
    %cst_73 = arith.constant 9.99999996E-13 : f32
    %186 = vector.broadcast %cst_73 : f32 to vector<16x1xf32>
    %187 = arith.addf %183, %186 : vector<16x1xf32>
    %188 = math.rsqrt %187 : vector<16x1xf32>
    %189 = vector.broadcast %188 : vector<16x1xf32> to vector<16x128xf32>
    %190 = arith.mulf %185, %189 : vector<16x128xf32>
    %191 = vector.broadcast %170 : vector<1x128xf32> to vector<16x128xf32>
    %192 = arith.mulf %190, %191 : vector<16x128xf32>
    %193 = vector.broadcast %172 : vector<1x128xf32> to vector<16x128xf32>
    %194 = arith.addf %192, %193 : vector<16x128xf32>
    %c0_74 = arith.constant 0 : index
    %c0_75 = arith.constant 0 : index
    %195 = vector.load %arg19[%c0_74, %c0_75] : memref<16x128xf32, #tpu.memory_space<vmem>>, vector<16x128xf32>
    tpu.vector_store %arg19[%c0_74, %c0_75], %194 {strides = array<i32>} : memref<16x128xf32, #tpu.memory_space<vmem>>, vector<16x128xf32>,
    %c0_76 = arith.constant 0 : index
    %c0_77 = arith.constant 0 : index
    %196 = vector.load %arg18[%c0_76, %c0_77] : memref<16x128xf32, #tpu.memory_space<vmem>>, vector<16x128xf32>
    tpu.vector_store %arg18[%c0_76, %c0_77], %194 {strides = array<i32>} : memref<16x128xf32, #tpu.memory_space<vmem>>, vector<16x128xf32>,
    return
  }
  func.func @transform_0(%arg0: i32) -> (i32, i32) {
    %c0_i32 = arith.constant 0 : i32
    %c0_i32_0 = arith.constant 0 : i32
    %c0_i32_1 = arith.constant 0 : i32
    return %c0_i32, %c0_i32_0 : i32, i32
  }
  func.func @transform_1(%arg0: i32) -> (i32, i32) {
    %c0_i32 = arith.constant 0 : i32
    %c0_i32_0 = arith.constant 0 : i32
    %c0_i32_1 = arith.constant 0 : i32
    return %c0_i32, %c0_i32_0 : i32, i32
  }
  func.func @transform_2(%arg0: i32) -> (i32, i32) {
    %c0_i32 = arith.constant 0 : i32
    %c0_i32_0 = arith.constant 0 : i32
    %c0_i32_1 = arith.constant 0 : i32
    return %c0_i32, %c0_i32_0 : i32, i32
  }
  func.func @transform_3(%arg0: i32) -> (i32, i32) {
    %c0_i32 = arith.constant 0 : i32
    %c0_i32_0 = arith.constant 0 : i32
    %c0_i32_1 = arith.constant 0 : i32
    return %c0_i32, %c0_i32_0 : i32, i32
  }
  func.func @transform_4(%arg0: i32) -> (i32, i32) {
    %c0_i32 = arith.constant 0 : i32
    %c0_i32_0 = arith.constant 0 : i32
    %c0_i32_1 = arith.constant 0 : i32
    return %c0_i32, %c0_i32_0 : i32, i32
  }
  func.func @transform_5(%arg0: i32) -> (i32, i32, i32) {
    %c0_i32 = arith.constant 0 : i32
    %c0_i32_0 = arith.constant 0 : i32
    %c0_i32_1 = arith.constant 0 : i32
    return %arg0, %c0_i32, %c0_i32_0 : i32, i32, i32
  }
  func.func @transform_6(%arg0: i32) -> (i32, i32, i32) {
    %c0_i32 = arith.constant 0 : i32
    %c0_i32_0 = arith.constant 0 : i32
    %c0_i32_1 = arith.constant 0 : i32
    return %arg0, %c0_i32, %c0_i32_0 : i32, i32, i32
  }
  func.func @transform_7(%arg0: i32) -> (i32, i32, i32) {
    %c0_i32 = arith.constant 0 : i32
    %c0_i32_0 = arith.constant 0 : i32
    %c0_i32_1 = arith.constant 0 : i32
    return %arg0, %c0_i32, %c0_i32_0 : i32, i32, i32
  }
  func.func @transform_8(%arg0: i32) -> (i32, i32, i32) {
    %c0_i32 = arith.constant 0 : i32
    %c0_i32_0 = arith.constant 0 : i32
    %c0_i32_1 = arith.constant 0 : i32
    return %arg0, %c0_i32, %c0_i32_0 : i32, i32, i32
  }
  func.func @transform_9(%arg0: i32) -> (i32, i32, i32) {
    %c0_i32 = arith.constant 0 : i32
    %c0_i32_0 = arith.constant 0 : i32
    %c0_i32_1 = arith.constant 0 : i32
    return %arg0, %c0_i32, %c0_i32_0 : i32, i32, i32
  }
  func.func @transform_10(%arg0: i32) -> (i32, i32, i32) {
    %c0_i32 = arith.constant 0 : i32
    %c0_i32_0 = arith.constant 0 : i32
    %c0_i32_1 = arith.constant 0 : i32
    return %arg0, %c0_i32, %c0_i32_0 : i32, i32, i32
  }
  func.func @transform_11(%arg0: i32) -> (i32, i32, i32) {
    %c0_i32 = arith.constant 0 : i32
    %c0_i32_0 = arith.constant 0 : i32
    %c0_i32_1 = arith.constant 0 : i32
    return %arg0, %c0_i32, %c0_i32_0 : i32, i32, i32
  }
  func.func @transform_12(%arg0: i32) -> (i32, i32, i32) {
    %c0_i32 = arith.constant 0 : i32
    %c0_i32_0 = arith.constant 0 : i32
    %c0_i32_1 = arith.constant 0 : i32
    return %arg0, %c0_i32, %c0_i32_0 : i32, i32, i32
  }
  func.func @transform_13(%arg0: i32) -> (i32, i32, i32) {
    %c0_i32 = arith.constant 0 : i32
    %c0_i32_0 = arith.constant 0 : i32
    %c0_i32_1 = arith.constant 0 : i32
    return %arg0, %c0_i32, %c0_i32_0 : i32, i32, i32
  }
  func.func @transform_14(%arg0: i32) -> (i32, i32, i32) {
    %c0_i32 = arith.constant 0 : i32
    %c0_i32_0 = arith.constant 0 : i32
    %c0_i32_1 = arith.constant 0 : i32
    return %arg0, %c0_i32, %c0_i32_0 : i32, i32, i32
  }
  func.func @transform_15(%arg0: i32) -> (i32, i32, i32) {
    %c0_i32 = arith.constant 0 : i32
    %c0_i32_0 = arith.constant 0 : i32
    %c0_i32_1 = arith.constant 0 : i32
    return %arg0, %c0_i32, %c0_i32_0 : i32, i32, i32
  }
  func.func @transform_16(%arg0: i32) -> (i32, i32, i32) {
    %c0_i32 = arith.constant 0 : i32
    %c0_i32_0 = arith.constant 0 : i32
    %c0_i32_1 = arith.constant 0 : i32
    return %arg0, %c0_i32, %c0_i32_0 : i32, i32, i32
  }
  func.func @transform_17(%arg0: i32) -> (i32, i32) {
    %c0_i32 = arith.constant 0 : i32
    %c0_i32_0 = arith.constant 0 : i32
    %c0_i32_1 = arith.constant 0 : i32
    return %c0_i32, %c0_i32_0 : i32, i32
  }
}

module attributes {stable_mosaic.version = 11 : i64} {
  func.func @_lstm_kernel(%arg0: i32, %arg1: memref<64x128xf32, #tpu.memory_space<vmem>>, %arg2: memref<128x512xbf16, #tpu.memory_space<vmem>>, %arg3: memref<128x512xbf16, #tpu.memory_space<vmem>>, %arg4: memref<1x512xf32, #tpu.memory_space<vmem>>, %arg5: memref<64x128xf32, #tpu.memory_space<vmem>>, %arg6: memref<64x512xf32, #tpu.memory_space<vmem>>) attributes {dimension_semantics = [#tpu.dimension_semantics<arbitrary>], iteration_bounds = array<i64: 1>, scalar_prefetch = 0 : i64, scratch_operands = 1 : i64, tpu.core_type = #tpu.core_type<tc>, window_params = [{pipeline_mode = #tpu.pipeline_mode<synchronous>, transform_indices = @transform_0, window_bounds = array<i64: 64, 128>}, {pipeline_mode = #tpu.pipeline_mode<synchronous>, transform_indices = @transform_1, window_bounds = array<i64: 128, 512>}, {pipeline_mode = #tpu.pipeline_mode<synchronous>, transform_indices = @transform_2, window_bounds = array<i64: 128, 512>}, {pipeline_mode = #tpu.pipeline_mode<synchronous>, transform_indices = @transform_3, window_bounds = array<i64: 1, 512>}, {pipeline_mode = #tpu.pipeline_mode<synchronous>, transform_indices = @transform_4, window_bounds = array<i64: 64, 128>}]} {
    %c0 = arith.constant 0 : index
    %c0_0 = arith.constant 0 : index
    %0 = vector.load %arg1[%c0, %c0_0] : memref<64x128xf32, #tpu.memory_space<vmem>>, vector<64x128xf32>
    %1 = arith.truncf %0 : vector<64x128xf32> to vector<64x128xbf16>
    %c0_1 = arith.constant 0 : index
    %c0_2 = arith.constant 0 : index
    %2 = vector.load %arg2[%c0_1, %c0_2] : memref<128x512xbf16, #tpu.memory_space<vmem>>, vector<128x512xbf16>
    %cst = arith.constant dense<0.000000e+00> : vector<64x512xf32>
    %3 = tpu.matmul %1, %2, %cst {dimension_numbers = #tpu.dot_dimension_numbers<[1], [0], [0], [1], [0, 0, 1, 1], [], []>} : vector<64x128xbf16>, vector<128x512xbf16>, vector<64x512xf32> -> vector<64x512xf32>
    %c0_3 = arith.constant 0 : index
    %c0_4 = arith.constant 0 : index
    %4 = vector.load %arg4[%c0_3, %c0_4] : memref<1x512xf32, #tpu.memory_space<vmem>>, vector<1x512xf32>
    %5 = vector.broadcast %4 : vector<1x512xf32> to vector<64x512xf32>
    %6 = arith.addf %3, %5 : vector<64x512xf32>
    %c0_5 = arith.constant 0 : index
    %c0_6 = arith.constant 0 : index
    %7 = vector.load %arg6[%c0_5, %c0_6] : memref<64x512xf32, #tpu.memory_space<vmem>>, vector<64x512xf32>
    tpu.vector_store %arg6[%c0_5, %c0_6], %6 {strides = array<i32>} : memref<64x512xf32, #tpu.memory_space<vmem>>, vector<64x512xf32>,
    %cst_7 = arith.constant 0.000000e+00 : f32
    %8 = vector.broadcast %cst_7 : f32 to vector<8x128xf32>
    %cst_8 = arith.constant 0.000000e+00 : f32
    %9 = vector.broadcast %cst_8 : f32 to vector<8x128xf32>
    %c0_i32 = arith.constant 0 : i32
    %c8_i32 = arith.constant 8 : i32
    %10 = arith.muli %c0_i32, %c8_i32 : i32
    %11 = tpu.assume_multiple %10, 8 : i32
    %12 = arith.index_cast %11 : i32 to index
    %c0_9 = arith.constant 0 : index
    %13 = vector.load %arg6[%12, %c0_9] : memref<64x512xf32, #tpu.memory_space<vmem>>, vector<8x512xf32>
    %14 = arith.truncf %8 : vector<8x128xf32> to vector<8x128xbf16>
    %c0_10 = arith.constant 0 : index
    %c0_11 = arith.constant 0 : index
    %15 = vector.load %arg3[%c0_10, %c0_11] : memref<128x512xbf16, #tpu.memory_space<vmem>>, vector<128x512xbf16>
    %cst_12 = arith.constant dense<0.000000e+00> : vector<8x512xf32>
    %16 = tpu.matmul %14, %15, %cst_12 {dimension_numbers = #tpu.dot_dimension_numbers<[1], [0], [0], [1], [0, 0, 1, 1], [], []>} : vector<8x128xbf16>, vector<128x512xbf16>, vector<8x512xf32> -> vector<8x512xf32>
    %17 = arith.addf %13, %16 : vector<8x512xf32>
    %18 = vector.extract_strided_slice %17 {offsets = [0, 0], sizes = [8, 384], strides = [1, 1]} : vector<8x512xf32> to vector<8x384xf32>
    %19 = arith.negf %18 : vector<8x384xf32>
    %20 = math.exp %19 : vector<8x384xf32>
    %cst_13 = arith.constant 1.000000e+00 : f32
    %21 = vector.broadcast %cst_13 : f32 to vector<8x384xf32>
    %22 = arith.addf %21, %20 : vector<8x384xf32>
    %23 = arith.divf %21, %22 : vector<8x384xf32>
    %24 = vector.extract_strided_slice %23 {offsets = [0, 0], sizes = [8, 128], strides = [1, 1]} : vector<8x384xf32> to vector<8x128xf32>
    %25 = vector.extract_strided_slice %23 {offsets = [0, 128], sizes = [8, 128], strides = [1, 1]} : vector<8x384xf32> to vector<8x128xf32>
    %26 = vector.extract_strided_slice %23 {offsets = [0, 256], sizes = [8, 128], strides = [1, 1]} : vector<8x384xf32> to vector<8x128xf32>
    %27 = vector.extract_strided_slice %17 {offsets = [0, 384], sizes = [8, 128], strides = [1, 1]} : vector<8x512xf32> to vector<8x128xf32>
    %28 = math.tanh %27 : vector<8x128xf32>
    %29 = arith.mulf %25, %9 : vector<8x128xf32>
    %30 = arith.mulf %24, %28 : vector<8x128xf32>
    %31 = arith.addf %29, %30 : vector<8x128xf32>
    %32 = math.tanh %31 : vector<8x128xf32>
    %33 = arith.mulf %26, %32 : vector<8x128xf32>
    %34 = arith.index_cast %11 : i32 to index
    %c0_14 = arith.constant 0 : index
    %35 = vector.load %arg5[%34, %c0_14] : memref<64x128xf32, #tpu.memory_space<vmem>>, vector<8x128xf32>
    tpu.vector_store %arg5[%34, %c0_14], %33 {strides = array<i32>} : memref<64x128xf32, #tpu.memory_space<vmem>>, vector<8x128xf32>,
    %c1_i32 = arith.constant 1 : i32
    %c8_i32_15 = arith.constant 8 : i32
    %36 = arith.muli %c1_i32, %c8_i32_15 : i32
    %37 = tpu.assume_multiple %36, 8 : i32
    %38 = arith.index_cast %37 : i32 to index
    %c0_16 = arith.constant 0 : index
    %39 = vector.load %arg6[%38, %c0_16] : memref<64x512xf32, #tpu.memory_space<vmem>>, vector<8x512xf32>
    %40 = arith.truncf %33 : vector<8x128xf32> to vector<8x128xbf16>
    %c0_17 = arith.constant 0 : index
    %c0_18 = arith.constant 0 : index
    %41 = vector.load %arg3[%c0_17, %c0_18] : memref<128x512xbf16, #tpu.memory_space<vmem>>, vector<128x512xbf16>
    %cst_19 = arith.constant dense<0.000000e+00> : vector<8x512xf32>
    %42 = tpu.matmul %40, %41, %cst_19 {dimension_numbers = #tpu.dot_dimension_numbers<[1], [0], [0], [1], [0, 0, 1, 1], [], []>} : vector<8x128xbf16>, vector<128x512xbf16>, vector<8x512xf32> -> vector<8x512xf32>
    %43 = arith.addf %39, %42 : vector<8x512xf32>
    %44 = vector.extract_strided_slice %43 {offsets = [0, 0], sizes = [8, 384], strides = [1, 1]} : vector<8x512xf32> to vector<8x384xf32>
    %45 = arith.negf %44 : vector<8x384xf32>
    %46 = math.exp %45 : vector<8x384xf32>
    %cst_20 = arith.constant 1.000000e+00 : f32
    %47 = vector.broadcast %cst_20 : f32 to vector<8x384xf32>
    %48 = arith.addf %47, %46 : vector<8x384xf32>
    %49 = arith.divf %47, %48 : vector<8x384xf32>
    %50 = vector.extract_strided_slice %49 {offsets = [0, 0], sizes = [8, 128], strides = [1, 1]} : vector<8x384xf32> to vector<8x128xf32>
    %51 = vector.extract_strided_slice %49 {offsets = [0, 128], sizes = [8, 128], strides = [1, 1]} : vector<8x384xf32> to vector<8x128xf32>
    %52 = vector.extract_strided_slice %49 {offsets = [0, 256], sizes = [8, 128], strides = [1, 1]} : vector<8x384xf32> to vector<8x128xf32>
    %53 = vector.extract_strided_slice %43 {offsets = [0, 384], sizes = [8, 128], strides = [1, 1]} : vector<8x512xf32> to vector<8x128xf32>
    %54 = math.tanh %53 : vector<8x128xf32>
    %55 = arith.mulf %51, %31 : vector<8x128xf32>
    %56 = arith.mulf %50, %54 : vector<8x128xf32>
    %57 = arith.addf %55, %56 : vector<8x128xf32>
    %58 = math.tanh %57 : vector<8x128xf32>
    %59 = arith.mulf %52, %58 : vector<8x128xf32>
    %60 = arith.index_cast %37 : i32 to index
    %c0_21 = arith.constant 0 : index
    %61 = vector.load %arg5[%60, %c0_21] : memref<64x128xf32, #tpu.memory_space<vmem>>, vector<8x128xf32>
    tpu.vector_store %arg5[%60, %c0_21], %59 {strides = array<i32>} : memref<64x128xf32, #tpu.memory_space<vmem>>, vector<8x128xf32>,
    %c2_i32 = arith.constant 2 : i32
    %c8_i32_22 = arith.constant 8 : i32
    %62 = arith.muli %c2_i32, %c8_i32_22 : i32
    %63 = tpu.assume_multiple %62, 8 : i32
    %64 = arith.index_cast %63 : i32 to index
    %c0_23 = arith.constant 0 : index
    %65 = vector.load %arg6[%64, %c0_23] : memref<64x512xf32, #tpu.memory_space<vmem>>, vector<8x512xf32>
    %66 = arith.truncf %59 : vector<8x128xf32> to vector<8x128xbf16>
    %c0_24 = arith.constant 0 : index
    %c0_25 = arith.constant 0 : index
    %67 = vector.load %arg3[%c0_24, %c0_25] : memref<128x512xbf16, #tpu.memory_space<vmem>>, vector<128x512xbf16>
    %cst_26 = arith.constant dense<0.000000e+00> : vector<8x512xf32>
    %68 = tpu.matmul %66, %67, %cst_26 {dimension_numbers = #tpu.dot_dimension_numbers<[1], [0], [0], [1], [0, 0, 1, 1], [], []>} : vector<8x128xbf16>, vector<128x512xbf16>, vector<8x512xf32> -> vector<8x512xf32>
    %69 = arith.addf %65, %68 : vector<8x512xf32>
    %70 = vector.extract_strided_slice %69 {offsets = [0, 0], sizes = [8, 384], strides = [1, 1]} : vector<8x512xf32> to vector<8x384xf32>
    %71 = arith.negf %70 : vector<8x384xf32>
    %72 = math.exp %71 : vector<8x384xf32>
    %cst_27 = arith.constant 1.000000e+00 : f32
    %73 = vector.broadcast %cst_27 : f32 to vector<8x384xf32>
    %74 = arith.addf %73, %72 : vector<8x384xf32>
    %75 = arith.divf %73, %74 : vector<8x384xf32>
    %76 = vector.extract_strided_slice %75 {offsets = [0, 0], sizes = [8, 128], strides = [1, 1]} : vector<8x384xf32> to vector<8x128xf32>
    %77 = vector.extract_strided_slice %75 {offsets = [0, 128], sizes = [8, 128], strides = [1, 1]} : vector<8x384xf32> to vector<8x128xf32>
    %78 = vector.extract_strided_slice %75 {offsets = [0, 256], sizes = [8, 128], strides = [1, 1]} : vector<8x384xf32> to vector<8x128xf32>
    %79 = vector.extract_strided_slice %69 {offsets = [0, 384], sizes = [8, 128], strides = [1, 1]} : vector<8x512xf32> to vector<8x128xf32>
    %80 = math.tanh %79 : vector<8x128xf32>
    %81 = arith.mulf %77, %57 : vector<8x128xf32>
    %82 = arith.mulf %76, %80 : vector<8x128xf32>
    %83 = arith.addf %81, %82 : vector<8x128xf32>
    %84 = math.tanh %83 : vector<8x128xf32>
    %85 = arith.mulf %78, %84 : vector<8x128xf32>
    %86 = arith.index_cast %63 : i32 to index
    %c0_28 = arith.constant 0 : index
    %87 = vector.load %arg5[%86, %c0_28] : memref<64x128xf32, #tpu.memory_space<vmem>>, vector<8x128xf32>
    tpu.vector_store %arg5[%86, %c0_28], %85 {strides = array<i32>} : memref<64x128xf32, #tpu.memory_space<vmem>>, vector<8x128xf32>,
    %c3_i32 = arith.constant 3 : i32
    %c8_i32_29 = arith.constant 8 : i32
    %88 = arith.muli %c3_i32, %c8_i32_29 : i32
    %89 = tpu.assume_multiple %88, 8 : i32
    %90 = arith.index_cast %89 : i32 to index
    %c0_30 = arith.constant 0 : index
    %91 = vector.load %arg6[%90, %c0_30] : memref<64x512xf32, #tpu.memory_space<vmem>>, vector<8x512xf32>
    %92 = arith.truncf %85 : vector<8x128xf32> to vector<8x128xbf16>
    %c0_31 = arith.constant 0 : index
    %c0_32 = arith.constant 0 : index
    %93 = vector.load %arg3[%c0_31, %c0_32] : memref<128x512xbf16, #tpu.memory_space<vmem>>, vector<128x512xbf16>
    %cst_33 = arith.constant dense<0.000000e+00> : vector<8x512xf32>
    %94 = tpu.matmul %92, %93, %cst_33 {dimension_numbers = #tpu.dot_dimension_numbers<[1], [0], [0], [1], [0, 0, 1, 1], [], []>} : vector<8x128xbf16>, vector<128x512xbf16>, vector<8x512xf32> -> vector<8x512xf32>
    %95 = arith.addf %91, %94 : vector<8x512xf32>
    %96 = vector.extract_strided_slice %95 {offsets = [0, 0], sizes = [8, 384], strides = [1, 1]} : vector<8x512xf32> to vector<8x384xf32>
    %97 = arith.negf %96 : vector<8x384xf32>
    %98 = math.exp %97 : vector<8x384xf32>
    %cst_34 = arith.constant 1.000000e+00 : f32
    %99 = vector.broadcast %cst_34 : f32 to vector<8x384xf32>
    %100 = arith.addf %99, %98 : vector<8x384xf32>
    %101 = arith.divf %99, %100 : vector<8x384xf32>
    %102 = vector.extract_strided_slice %101 {offsets = [0, 0], sizes = [8, 128], strides = [1, 1]} : vector<8x384xf32> to vector<8x128xf32>
    %103 = vector.extract_strided_slice %101 {offsets = [0, 128], sizes = [8, 128], strides = [1, 1]} : vector<8x384xf32> to vector<8x128xf32>
    %104 = vector.extract_strided_slice %101 {offsets = [0, 256], sizes = [8, 128], strides = [1, 1]} : vector<8x384xf32> to vector<8x128xf32>
    %105 = vector.extract_strided_slice %95 {offsets = [0, 384], sizes = [8, 128], strides = [1, 1]} : vector<8x512xf32> to vector<8x128xf32>
    %106 = math.tanh %105 : vector<8x128xf32>
    %107 = arith.mulf %103, %83 : vector<8x128xf32>
    %108 = arith.mulf %102, %106 : vector<8x128xf32>
    %109 = arith.addf %107, %108 : vector<8x128xf32>
    %110 = math.tanh %109 : vector<8x128xf32>
    %111 = arith.mulf %104, %110 : vector<8x128xf32>
    %112 = arith.index_cast %89 : i32 to index
    %c0_35 = arith.constant 0 : index
    %113 = vector.load %arg5[%112, %c0_35] : memref<64x128xf32, #tpu.memory_space<vmem>>, vector<8x128xf32>
    tpu.vector_store %arg5[%112, %c0_35], %111 {strides = array<i32>} : memref<64x128xf32, #tpu.memory_space<vmem>>, vector<8x128xf32>,
    %c4_i32 = arith.constant 4 : i32
    %c8_i32_36 = arith.constant 8 : i32
    %114 = arith.muli %c4_i32, %c8_i32_36 : i32
    %115 = tpu.assume_multiple %114, 8 : i32
    %116 = arith.index_cast %115 : i32 to index
    %c0_37 = arith.constant 0 : index
    %117 = vector.load %arg6[%116, %c0_37] : memref<64x512xf32, #tpu.memory_space<vmem>>, vector<8x512xf32>
    %118 = arith.truncf %111 : vector<8x128xf32> to vector<8x128xbf16>
    %c0_38 = arith.constant 0 : index
    %c0_39 = arith.constant 0 : index
    %119 = vector.load %arg3[%c0_38, %c0_39] : memref<128x512xbf16, #tpu.memory_space<vmem>>, vector<128x512xbf16>
    %cst_40 = arith.constant dense<0.000000e+00> : vector<8x512xf32>
    %120 = tpu.matmul %118, %119, %cst_40 {dimension_numbers = #tpu.dot_dimension_numbers<[1], [0], [0], [1], [0, 0, 1, 1], [], []>} : vector<8x128xbf16>, vector<128x512xbf16>, vector<8x512xf32> -> vector<8x512xf32>
    %121 = arith.addf %117, %120 : vector<8x512xf32>
    %122 = vector.extract_strided_slice %121 {offsets = [0, 0], sizes = [8, 384], strides = [1, 1]} : vector<8x512xf32> to vector<8x384xf32>
    %123 = arith.negf %122 : vector<8x384xf32>
    %124 = math.exp %123 : vector<8x384xf32>
    %cst_41 = arith.constant 1.000000e+00 : f32
    %125 = vector.broadcast %cst_41 : f32 to vector<8x384xf32>
    %126 = arith.addf %125, %124 : vector<8x384xf32>
    %127 = arith.divf %125, %126 : vector<8x384xf32>
    %128 = vector.extract_strided_slice %127 {offsets = [0, 0], sizes = [8, 128], strides = [1, 1]} : vector<8x384xf32> to vector<8x128xf32>
    %129 = vector.extract_strided_slice %127 {offsets = [0, 128], sizes = [8, 128], strides = [1, 1]} : vector<8x384xf32> to vector<8x128xf32>
    %130 = vector.extract_strided_slice %127 {offsets = [0, 256], sizes = [8, 128], strides = [1, 1]} : vector<8x384xf32> to vector<8x128xf32>
    %131 = vector.extract_strided_slice %121 {offsets = [0, 384], sizes = [8, 128], strides = [1, 1]} : vector<8x512xf32> to vector<8x128xf32>
    %132 = math.tanh %131 : vector<8x128xf32>
    %133 = arith.mulf %129, %109 : vector<8x128xf32>
    %134 = arith.mulf %128, %132 : vector<8x128xf32>
    %135 = arith.addf %133, %134 : vector<8x128xf32>
    %136 = math.tanh %135 : vector<8x128xf32>
    %137 = arith.mulf %130, %136 : vector<8x128xf32>
    %138 = arith.index_cast %115 : i32 to index
    %c0_42 = arith.constant 0 : index
    %139 = vector.load %arg5[%138, %c0_42] : memref<64x128xf32, #tpu.memory_space<vmem>>, vector<8x128xf32>
    tpu.vector_store %arg5[%138, %c0_42], %137 {strides = array<i32>} : memref<64x128xf32, #tpu.memory_space<vmem>>, vector<8x128xf32>,
    %c5_i32 = arith.constant 5 : i32
    %c8_i32_43 = arith.constant 8 : i32
    %140 = arith.muli %c5_i32, %c8_i32_43 : i32
    %141 = tpu.assume_multiple %140, 8 : i32
    %142 = arith.index_cast %141 : i32 to index
    %c0_44 = arith.constant 0 : index
    %143 = vector.load %arg6[%142, %c0_44] : memref<64x512xf32, #tpu.memory_space<vmem>>, vector<8x512xf32>
    %144 = arith.truncf %137 : vector<8x128xf32> to vector<8x128xbf16>
    %c0_45 = arith.constant 0 : index
    %c0_46 = arith.constant 0 : index
    %145 = vector.load %arg3[%c0_45, %c0_46] : memref<128x512xbf16, #tpu.memory_space<vmem>>, vector<128x512xbf16>
    %cst_47 = arith.constant dense<0.000000e+00> : vector<8x512xf32>
    %146 = tpu.matmul %144, %145, %cst_47 {dimension_numbers = #tpu.dot_dimension_numbers<[1], [0], [0], [1], [0, 0, 1, 1], [], []>} : vector<8x128xbf16>, vector<128x512xbf16>, vector<8x512xf32> -> vector<8x512xf32>
    %147 = arith.addf %143, %146 : vector<8x512xf32>
    %148 = vector.extract_strided_slice %147 {offsets = [0, 0], sizes = [8, 384], strides = [1, 1]} : vector<8x512xf32> to vector<8x384xf32>
    %149 = arith.negf %148 : vector<8x384xf32>
    %150 = math.exp %149 : vector<8x384xf32>
    %cst_48 = arith.constant 1.000000e+00 : f32
    %151 = vector.broadcast %cst_48 : f32 to vector<8x384xf32>
    %152 = arith.addf %151, %150 : vector<8x384xf32>
    %153 = arith.divf %151, %152 : vector<8x384xf32>
    %154 = vector.extract_strided_slice %153 {offsets = [0, 0], sizes = [8, 128], strides = [1, 1]} : vector<8x384xf32> to vector<8x128xf32>
    %155 = vector.extract_strided_slice %153 {offsets = [0, 128], sizes = [8, 128], strides = [1, 1]} : vector<8x384xf32> to vector<8x128xf32>
    %156 = vector.extract_strided_slice %153 {offsets = [0, 256], sizes = [8, 128], strides = [1, 1]} : vector<8x384xf32> to vector<8x128xf32>
    %157 = vector.extract_strided_slice %147 {offsets = [0, 384], sizes = [8, 128], strides = [1, 1]} : vector<8x512xf32> to vector<8x128xf32>
    %158 = math.tanh %157 : vector<8x128xf32>
    %159 = arith.mulf %155, %135 : vector<8x128xf32>
    %160 = arith.mulf %154, %158 : vector<8x128xf32>
    %161 = arith.addf %159, %160 : vector<8x128xf32>
    %162 = math.tanh %161 : vector<8x128xf32>
    %163 = arith.mulf %156, %162 : vector<8x128xf32>
    %164 = arith.index_cast %141 : i32 to index
    %c0_49 = arith.constant 0 : index
    %165 = vector.load %arg5[%164, %c0_49] : memref<64x128xf32, #tpu.memory_space<vmem>>, vector<8x128xf32>
    tpu.vector_store %arg5[%164, %c0_49], %163 {strides = array<i32>} : memref<64x128xf32, #tpu.memory_space<vmem>>, vector<8x128xf32>,
    %c6_i32 = arith.constant 6 : i32
    %c8_i32_50 = arith.constant 8 : i32
    %166 = arith.muli %c6_i32, %c8_i32_50 : i32
    %167 = tpu.assume_multiple %166, 8 : i32
    %168 = arith.index_cast %167 : i32 to index
    %c0_51 = arith.constant 0 : index
    %169 = vector.load %arg6[%168, %c0_51] : memref<64x512xf32, #tpu.memory_space<vmem>>, vector<8x512xf32>
    %170 = arith.truncf %163 : vector<8x128xf32> to vector<8x128xbf16>
    %c0_52 = arith.constant 0 : index
    %c0_53 = arith.constant 0 : index
    %171 = vector.load %arg3[%c0_52, %c0_53] : memref<128x512xbf16, #tpu.memory_space<vmem>>, vector<128x512xbf16>
    %cst_54 = arith.constant dense<0.000000e+00> : vector<8x512xf32>
    %172 = tpu.matmul %170, %171, %cst_54 {dimension_numbers = #tpu.dot_dimension_numbers<[1], [0], [0], [1], [0, 0, 1, 1], [], []>} : vector<8x128xbf16>, vector<128x512xbf16>, vector<8x512xf32> -> vector<8x512xf32>
    %173 = arith.addf %169, %172 : vector<8x512xf32>
    %174 = vector.extract_strided_slice %173 {offsets = [0, 0], sizes = [8, 384], strides = [1, 1]} : vector<8x512xf32> to vector<8x384xf32>
    %175 = arith.negf %174 : vector<8x384xf32>
    %176 = math.exp %175 : vector<8x384xf32>
    %cst_55 = arith.constant 1.000000e+00 : f32
    %177 = vector.broadcast %cst_55 : f32 to vector<8x384xf32>
    %178 = arith.addf %177, %176 : vector<8x384xf32>
    %179 = arith.divf %177, %178 : vector<8x384xf32>
    %180 = vector.extract_strided_slice %179 {offsets = [0, 0], sizes = [8, 128], strides = [1, 1]} : vector<8x384xf32> to vector<8x128xf32>
    %181 = vector.extract_strided_slice %179 {offsets = [0, 128], sizes = [8, 128], strides = [1, 1]} : vector<8x384xf32> to vector<8x128xf32>
    %182 = vector.extract_strided_slice %179 {offsets = [0, 256], sizes = [8, 128], strides = [1, 1]} : vector<8x384xf32> to vector<8x128xf32>
    %183 = vector.extract_strided_slice %173 {offsets = [0, 384], sizes = [8, 128], strides = [1, 1]} : vector<8x512xf32> to vector<8x128xf32>
    %184 = math.tanh %183 : vector<8x128xf32>
    %185 = arith.mulf %181, %161 : vector<8x128xf32>
    %186 = arith.mulf %180, %184 : vector<8x128xf32>
    %187 = arith.addf %185, %186 : vector<8x128xf32>
    %188 = math.tanh %187 : vector<8x128xf32>
    %189 = arith.mulf %182, %188 : vector<8x128xf32>
    %190 = arith.index_cast %167 : i32 to index
    %c0_56 = arith.constant 0 : index
    %191 = vector.load %arg5[%190, %c0_56] : memref<64x128xf32, #tpu.memory_space<vmem>>, vector<8x128xf32>
    tpu.vector_store %arg5[%190, %c0_56], %189 {strides = array<i32>} : memref<64x128xf32, #tpu.memory_space<vmem>>, vector<8x128xf32>,
    %c7_i32 = arith.constant 7 : i32
    %c8_i32_57 = arith.constant 8 : i32
    %192 = arith.muli %c7_i32, %c8_i32_57 : i32
    %193 = tpu.assume_multiple %192, 8 : i32
    %194 = arith.index_cast %193 : i32 to index
    %c0_58 = arith.constant 0 : index
    %195 = vector.load %arg6[%194, %c0_58] : memref<64x512xf32, #tpu.memory_space<vmem>>, vector<8x512xf32>
    %196 = arith.truncf %189 : vector<8x128xf32> to vector<8x128xbf16>
    %c0_59 = arith.constant 0 : index
    %c0_60 = arith.constant 0 : index
    %197 = vector.load %arg3[%c0_59, %c0_60] : memref<128x512xbf16, #tpu.memory_space<vmem>>, vector<128x512xbf16>
    %cst_61 = arith.constant dense<0.000000e+00> : vector<8x512xf32>
    %198 = tpu.matmul %196, %197, %cst_61 {dimension_numbers = #tpu.dot_dimension_numbers<[1], [0], [0], [1], [0, 0, 1, 1], [], []>} : vector<8x128xbf16>, vector<128x512xbf16>, vector<8x512xf32> -> vector<8x512xf32>
    %199 = arith.addf %195, %198 : vector<8x512xf32>
    %200 = vector.extract_strided_slice %199 {offsets = [0, 0], sizes = [8, 384], strides = [1, 1]} : vector<8x512xf32> to vector<8x384xf32>
    %201 = arith.negf %200 : vector<8x384xf32>
    %202 = math.exp %201 : vector<8x384xf32>
    %cst_62 = arith.constant 1.000000e+00 : f32
    %203 = vector.broadcast %cst_62 : f32 to vector<8x384xf32>
    %204 = arith.addf %203, %202 : vector<8x384xf32>
    %205 = arith.divf %203, %204 : vector<8x384xf32>
    %206 = vector.extract_strided_slice %205 {offsets = [0, 0], sizes = [8, 128], strides = [1, 1]} : vector<8x384xf32> to vector<8x128xf32>
    %207 = vector.extract_strided_slice %205 {offsets = [0, 128], sizes = [8, 128], strides = [1, 1]} : vector<8x384xf32> to vector<8x128xf32>
    %208 = vector.extract_strided_slice %205 {offsets = [0, 256], sizes = [8, 128], strides = [1, 1]} : vector<8x384xf32> to vector<8x128xf32>
    %209 = vector.extract_strided_slice %199 {offsets = [0, 384], sizes = [8, 128], strides = [1, 1]} : vector<8x512xf32> to vector<8x128xf32>
    %210 = math.tanh %209 : vector<8x128xf32>
    %211 = arith.mulf %207, %187 : vector<8x128xf32>
    %212 = arith.mulf %206, %210 : vector<8x128xf32>
    %213 = arith.addf %211, %212 : vector<8x128xf32>
    %214 = math.tanh %213 : vector<8x128xf32>
    %215 = arith.mulf %208, %214 : vector<8x128xf32>
    %216 = arith.index_cast %193 : i32 to index
    %c0_63 = arith.constant 0 : index
    %217 = vector.load %arg5[%216, %c0_63] : memref<64x128xf32, #tpu.memory_space<vmem>>, vector<8x128xf32>
    tpu.vector_store %arg5[%216, %c0_63], %215 {strides = array<i32>} : memref<64x128xf32, #tpu.memory_space<vmem>>, vector<8x128xf32>,
    %c8_i32_64 = arith.constant 8 : i32
    return
  }
  func.func @transform_0(%arg0: i32) -> (i32, i32) {
    %c0_i32 = arith.constant 0 : i32
    %c0_i32_0 = arith.constant 0 : i32
    %c0_i32_1 = arith.constant 0 : i32
    return %c0_i32, %c0_i32_0 : i32, i32
  }
  func.func @transform_1(%arg0: i32) -> (i32, i32) {
    %c0_i32 = arith.constant 0 : i32
    %c0_i32_0 = arith.constant 0 : i32
    %c0_i32_1 = arith.constant 0 : i32
    return %c0_i32, %c0_i32_0 : i32, i32
  }
  func.func @transform_2(%arg0: i32) -> (i32, i32) {
    %c0_i32 = arith.constant 0 : i32
    %c0_i32_0 = arith.constant 0 : i32
    %c0_i32_1 = arith.constant 0 : i32
    return %c0_i32, %c0_i32_0 : i32, i32
  }
  func.func @transform_3(%arg0: i32) -> (i32, i32) {
    %c0_i32 = arith.constant 0 : i32
    %c0_i32_0 = arith.constant 0 : i32
    %c0_i32_1 = arith.constant 0 : i32
    return %c0_i32, %c0_i32_0 : i32, i32
  }
  func.func @transform_4(%arg0: i32) -> (i32, i32) {
    %c0_i32 = arith.constant 0 : i32
    %c0_i32_0 = arith.constant 0 : i32
    %c0_i32_1 = arith.constant 0 : i32
    return %c0_i32, %c0_i32_0 : i32, i32
  }
}

</mosaic_0001>

<bundles_post_ra>
// kernel: bert_lstm_forward.2
= control target key start
LH: loop header
LB: loop body
LE: loop exit
PB: predicated region body
PF: predicated region fallthrough
CT: control target
= control target key end

     0   :  { %s3321_s0 = inlined_call_operand.vmem [shape: s32[16,1], index: 0, kind: input, shape index: {}]   ;;  %s3322_s1 = inlined_call_operand.vmem [shape: f32[32,128], index: 1, kind: input, shape index: {}]   ;;  %s3323_s2 = inlined_call_operand.vmem [shape: f32[16,128], index: 2, kind: input, shape index: {}]   ;;  %s3324_s3 = inlined_call_operand.vmem [shape: f32[1,128], index: 3, kind: input, shape index: {}]   ;;  %s3325_s4 = inlined_call_operand.vmem [shape: f32[1,128], index: 4, kind: input, shape index: {}]   ;;  %s3326_s5 = inlined_call_operand.hbm [shape: bf16[2,128,384], index: 5, kind: input, shape index: {}]   ;;  %s3327_s6 = inlined_call_operand.vmem [shape: f32[2,1,384], index: 6, kind: input, shape index: {}]   ;;  %s3328_s7 = inlined_call_operand.hbm [shape: bf16[2,128,128], index: 7, kind: input, shape index: {}]   ;;  %s3329_s8 = inlined_call_operand.vmem [shape: f32[2,1,128], index: 8, kind: input, shape index: {}]   ;;  %s3330_s9 = inlined_call_operand.vmem [shape: f32[2,1,128], index: 9, kind: input, shape index: {}]   ;;  %s3331_s10 = inlined_call_operand.vmem [shape: f32[2,1,128], index: 10, kind: input, shape index: {}]   ;;  %s3332_s11 = inlined_call_operand.hbm [shape: bf16[2,128,256], index: 11, kind: input, shape index: {}]   ;;  %s3333_s12 = inlined_call_operand.vmem [shape: f32[2,1,256], index: 12, kind: input, shape index: {}]   ;;  %s3334_s13 = inlined_call_operand.hbm [shape: bf16[2,256,128], index: 13, kind: input, shape index: {}]   ;;  %s3335_s14 = inlined_call_operand.vmem [shape: f32[2,1,128], index: 14, kind: input, shape index: {}]   ;;  %s3336_s15 = inlined_call_operand.vmem [shape: f32[2,1,128], index: 15, kind: input, shape index: {}]   ;;  %s3337_s16 = inlined_call_operand.vmem [shape: f32[2,1,128], index: 16, kind: input, shape index: {}]   ;;  %s3338_s17 = inlined_call_operand.vmem [shape: f32[16,128], index: 17, kind: output, shape index: {}]  }
   0x1   :  { %3348 = sst [smem:[#allocation16_spill]] %s3321_s0 }
   0x2   :  { %3349 = sst [smem:[#allocation17_spill]] %s3322_s1 }
   0x3   :  { %3350 = sst [smem:[#allocation18_spill]] %s3323_s2 }
   0x4   :  { %3351 = sst [smem:[#allocation19_spill]] %s3324_s3 }
   0x5   :  { %3352 = sst [smem:[#allocation20_spill]] %s3325_s4 }
   0x6   :  { %3353 = sst [smem:[#allocation21_spill]] %s3326_s5 }
   0x7   :  { %3354 = sst [smem:[#allocation22_spill]] %s3327_s6 }
   0x8   :  { %3355 = sst [smem:[#allocation23_spill]] %s3328_s7 }
   0x9   :  { %3356 = sst [smem:[#allocation24_spill]] %s3332_s11 }
   0xa   :  { %3357 = sst [smem:[#allocation25_spill]] %s3334_s13 }
   0xb   :  { %3358 = sst [smem:[#allocation26_spill]] %s3335_s14 }
   0xc   :  { %3359 = sst [smem:[#allocation27_spill]] %s3336_s15 }
   0xd   :  { %3360 = sst [smem:[#allocation28_spill]] %s3337_s16 }
   0xe   :  { %3361 = sst [smem:[#allocation29_spill]] %s3338_s17 }
   0xf   :  { %22 = vsyncpa [#allocation4], 0 }
  0x10   :  { %24 = vsyncpa [#allocation4 + $0x1], 0 }
  0x11   :  { %25 = vsyncpa [#allocation6], 0 }
  0x12   :  { %27 = vsyncpa [#allocation6 + $0x1], 0 }
  0x13   :  { %28 = vsyncpa [#allocation9], 0 }
  0x14   :  { %30 = vsyncpa [#allocation9 + $0x1], 0  ;;  %s2861_s24 = smov 0   ;;  %s2863_s25 = smov 0  }
  0x15   :  { %s2865_s26 = smov 0   ;;  %s2867_s27 = smov 0  }
  0x16 LB: > { %3362 = sst [smem:[#allocation13_spill]] %s2756_s26  ;;  %s2880_s28 = sadd.s32 4294967295, %s2760_s27   ;;  %s2760_s27 = sphi %s2867_s27, %s3390_s27   ;;  %s2756_s26 = sphi %s2865_s26, %s3392_s26   ;;  %s2752_s25 = sphi %s2863_s25, %s3394_s25   ;;  %s2748_s24 = sphi %s2861_s24, %s3393_s24  }
  0x17   : > { %s2883_s29 = sadd.s32 1, %s2760_s27   ;;  %s148_s30 = sadd.s32 1, %s2756_s26 }
  0x18   : > { %3363 = sst [smem:[#allocation14_spill]] %s2883_s29  ;;  %s145_s0 = ssub.s32 %s2760_s27, %s2883_s29 }
  0x19   : > { %p146_p0 = scmp.eq.s32.totalorder %s145_s0, 0  ;;  %p155_p1 = scmp.ne.s32.totalorder %s2756_s26, %s2752_s25 }
  0x1a   : > { %p156_p2 = scmp.eq.s32.totalorder %s2760_s27, 0  ;;  %p161_p3 = scmp.ne.s32.totalorder %s2752_s25, %s2748_s24 }
  0x1b   : > { %s2893_s18 = scalar_select %p146_p0, %s2756_s26, %s148_s30  }
  0x1c   : > { %p157_p4 = por %p156_p2, %p155_p1  ;;  %p162_p5 = scmp.eq.s32.totalorder %s2880_s28, 0 }
  0x1d   : > { %3364 = sst [smem:[#allocation15_spill]] %s2893_s18  ;;  %p2511_p6 = scmp.lt.s32.totalorder %s2760_s27, 2 }
  0x1e   : > { %p2897_p7 = por %p162_p5, %p161_p3  ;;  %s2902_s1 = sand.u32 1, %s2756_s26  }
  0x1f   : > { %p2904_p8 = pnand %p2511_p6, %p157_p4  ;;  %s536_s21 = sand.u32 1, %s2760_s27  }
  0x20   : > { %s2126_s22 = sshll.u32 %s2902_s1, 6  ;;  %s2415_s23 = sshll.u32 %s2760_s27, 6 }
  0x21   : > { %s540_s24 = scalar_lea.vmem [#allocation5], %s2126_s22  ;;  %s3367_s7 = sld [smem:[#allocation23_spill]] }
  0x22   : > { %s548_s0 = sshll.u32 %s540_s24, 4  ;;  %s2914_s26 = scalar_lea.sflag [#allocation6], %s536_s21  ;;  %s549_s0 = int_to_ptr.vmem [resolvable:$true] %s548_s0 }
  0x23   : > { %p2602_p10 = pneg %p2904_p8 }
  0x27   : > { %s545_s29 = scalar_lea.hbm %s3367_s7, %s2415_s23  ;;  %s2605_s18 = scalar_lea.hbm %s3367_s7, 128 }
  0x28   : > { %s546_s17 = sshll.u32 %s545_s29, 4  ;;  %s547_s17 = int_to_ptr.hbm [resolvable:$true] %s546_s17 }
  0x29   : > { %s2598_s4 = sshra.s32 %s547_s17, 4  ;;  %s2599_s4 = int_to_ptr.hbm [resolvable:$true] %s2598_s4 }
  0x2a   : > { %s2600_s3 = scalar_lea.hbm %s2599_s4, 64  ;;  %p2606_p13 = scmp.lt.s32.totalorder %s2599_s4, %s3367_s7 }
  0x2b   : > { %p2601_p9 = scmp.ne.s32.totalorder %s2599_s4, %s2600_s3  ;;  %p2607_p0 = scmp.lt.s32.totalorder %s2605_s18, %s2600_s3 }
  0x2d   : > { %p2603_p11 = pnand %p2602_p10, %p2601_p9  ;;  %p2608_p1 = por %p2607_p0, %p2606_p13 }
  0x2f   : > { %p2604_p12 = pneg %p2603_p11 }
  0x31   : > { %p2609_p2 = pnand %p2608_p1, %p2604_p12 }
  0x33   : > { %2612 = shalt.err (!%p2609_p2)
}
  0x34   : > { %s3346_s29 = smov 64   ;;  %s3347_s21 = smov 4  }
  0x35   : > { %2504 = dma.hbm_to_vmem [thread:$0]  (!%p2904_p8), %s547_s17, 1024, %s549_s0, %s2914_s26, %s3346_s29, %s3346_s29, %s3347_s21  }
  0x36   : > { %p2135_p3 = scmp.ge.s32.totalorder %s2760_s27, 1  ;;  %p643_p4 = scmp.lt.s32.totalorder %s2760_s27, 3 }
  0x37   : > { %s2486_s3 = smul.u32 192, %s2902_s1  ;;  %s3369_s5 = sld [smem:[#allocation21_spill]] }
  0x38   : > { %p2936_p5 = pnand %p2135_p3, %p643_p4  ;;  %s2487_s22 = smul.u32 192, %s2760_s27 }
  0x39   : > { %s511_s30 = scalar_lea.vmem [#allocation3], %s2486_s3  ;;  %s508_s16 = scalar_lea.sflag [#allocation4], %s2902_s1 }
  0x3a   : > { %s519_s7 = sshll.u32 %s511_s30, 4  ;;  %s520_s7 = int_to_ptr.vmem [resolvable:$true] %s519_s7 }
  0x3d   : > { %s516_s23 = scalar_lea.hbm %s3369_s5, %s2487_s22  ;;  %s2635_s15 = scalar_lea.hbm %s3369_s5, 384 }
  0x3e   : > { %s517_s2 = sshll.u32 %s516_s23, 4  ;;  %s518_s2 = int_to_ptr.hbm [resolvable:$true] %s517_s2 }
  0x3f   : > { %s2628_s17 = sshra.s32 %s518_s2, 4  ;;  %s2629_s17 = int_to_ptr.hbm [resolvable:$true] %s2628_s17 }
  0x40   : > { %s2630_s0 = scalar_lea.hbm %s2629_s17, 192  ;;  %p2636_p12 = scmp.lt.s32.totalorder %s2629_s17, %s3369_s5 }
  0x41   : > { %p2631_p6 = scmp.ne.s32.totalorder %s2629_s17, %s2630_s0  ;;  %p2637_p13 = scmp.lt.s32.totalorder %s2635_s15, %s2630_s0 }
  0x43   : > { %p2633_p9 = pnand %p2631_p6, %p2602_p10  ;;  %p2638_p0 = por %p2637_p13, %p2636_p12 }
  0x45   : > { %p2634_p11 = pneg %p2633_p9 }
  0x47   : > { %p2639_p1 = pnand %p2638_p0, %p2634_p11 }
  0x49   : > { %2642 = shalt.err (!%p2639_p1)
}
  0x4a   : > { %s2764_s3 = smov 192   ;;  %s2765_s18 = smov 12  }
  0x4b   : > { %2501 = dma.hbm_to_vmem [thread:$0]  (!%p2904_p8), %s518_s2, 3072, %s520_s7, %s508_s16, %s2764_s3, %s2764_s3, %s2765_s18  }
  0x4c   : > { %s2129_s23 = sshll.u32 %s2902_s1, 7  ;;  %s2416_s30 = sshll.u32 %s2760_s27, 7 }
  0x4d   : > { %s3370_s11 = sld [smem:[#allocation24_spill]]  ;;  %s580_s17 = scalar_lea.vmem [#allocation7], %s2129_s23 }
  0x4e   : > { %s588_s15 = sshll.u32 %s580_s17, 4  ;;  %s589_s15 = int_to_ptr.vmem [resolvable:$true] %s588_s15 }
  0x53   : > { %s585_s14 = scalar_lea.hbm %s3370_s11, %s2416_s30  ;;  %s2665_s16 = scalar_lea.hbm %s3370_s11, 256 }
  0x54   : > { %s586_s24 = sshll.u32 %s585_s14, 4  ;;  %s587_s24 = int_to_ptr.hbm [resolvable:$true] %s586_s24 }
  0x55   : > { %s2658_s0 = sshra.s32 %s587_s24, 4  ;;  %s2659_s0 = int_to_ptr.hbm [resolvable:$true] %s2658_s0 }
  0x56   : > { %s2660_s22 = scalar_lea.hbm %s2659_s0, 128  ;;  %p2666_p6 = scmp.lt.s32.totalorder %s2659_s0, %s3370_s11 }
  0x57   : > { %p2661_p2 = scmp.ne.s32.totalorder %s2659_s0, %s2660_s22  ;;  %p2667_p9 = scmp.lt.s32.totalorder %s2665_s16, %s2660_s22 }
  0x59   : > { %p2663_p3 = pnand %p2661_p2, %p2602_p10  ;;  %p2668_p11 = por %p2667_p9, %p2666_p6 }
  0x5b   : > { %p2664_p4 = pneg %p2663_p3 }
  0x5d   : > { %p2669_p12 = pnand %p2668_p11, %p2664_p4 }
  0x5f   : > { %2672 = shalt.err (!%p2669_p12)
}
  0x60   : > { %s2766_s14 = smov 128   ;;  %s2767_s18 = smov 8  }
  0x61   : > { %2507 = dma.hbm_to_vmem [thread:$0]  (!%p2904_p8), %s587_s24, 2048, %s589_s15, %s2914_s26, %s2766_s14, %s2766_s14, %s2767_s18  }
  0x62   : > { %s3371_s13 = sld [smem:[#allocation25_spill]]  ;;  %s609_s2 = scalar_lea.vmem [#allocation8], %s2129_s23 }
  0x63   : > { %s617_s7 = sshll.u32 %s609_s2, 4  ;;  %s606_s0 = scalar_lea.sflag [#allocation9], %s2902_s1  ;;  %s618_s7 = int_to_ptr.vmem [resolvable:$true] %s617_s7 }
  0x68   : > { %s614_s17 = scalar_lea.hbm %s3371_s13, %s2416_s30  ;;  %s2695_s24 = scalar_lea.hbm %s3371_s13, 256 }
  0x69   : > { %s615_s27 = sshll.u32 %s614_s17, 4  ;;  %s616_s27 = int_to_ptr.hbm [resolvable:$true] %s615_s27 }
  0x6a   : > { %s2688_s22 = sshra.s32 %s616_s27, 4  ;;  %s2689_s22 = int_to_ptr.hbm [resolvable:$true] %s2688_s22 }
  0x6b   : > { %s2690_s16 = scalar_lea.hbm %s2689_s22, 128  ;;  %p2696_p2 = scmp.lt.s32.totalorder %s2689_s22, %s3371_s13 }
  0x6c   : > { %p2691_p13 = scmp.ne.s32.totalorder %s2689_s22, %s2690_s16  ;;  %p2697_p3 = scmp.lt.s32.totalorder %s2695_s24, %s2690_s16 }
  0x6e   : > { %p2693_p0 = pnand %p2691_p13, %p2602_p10  ;;  %p2698_p4 = por %p2697_p3, %p2696_p2 }
  0x70   : > { %p2694_p1 = pneg %p2693_p0 }
  0x72   : > { %p2699_p6 = pnand %p2698_p4, %p2694_p1 }
  0x74   : > { %2702 = shalt.err (!%p2699_p6)
}
  0x75   : > { %s3372_s1 = smov 4   ;;  %s3373_s23 = smov 64  }
  0x76   : > { %2510 = dma.hbm_to_vmem [thread:$0]  (!%p2904_p8), %s616_s27, 2048, %s618_s7, %s606_s0, %s3373_s23, %s3373_s23, %s3372_s1  }
  0x77   : > { %647 = sbr.rel (%p2936_p5) target bundleno = 2923 (0xb6b), region = 88  ;;  %s649_s14 = sand.u32 (!%p2936_p5), 1, %s2752_s25  }
  0x78   : > { %s2488_s18 = smul.u32 (!%p2936_p5), 192, %s649_s14  ;;  %s650_s29 = scalar_lea.sflag (!%p2936_p5), [#allocation4], %s649_s14 }
  0x7a   : > { %s2994_s21 = scalar_lea.vmem (!%p2936_p5), [#allocation3], %s2488_s18 }
  0x7c   : > { %2735 = dma.done.wait (%p2897_p7), %s650_s29, 3072  }
  0x7d   : > { %2737 = vsyncadd (%p2897_p7), %s650_s29, 4294964224  ;;  %s659_s20 = sand.u32 1, %s2880_s28   ;;  %s2136_s17 = sshll.u32 %s649_s14, 6 }
  0x7e   : > { %s660_s2 = scalar_lea.sflag [#allocation6], %s659_s20  ;;  %s3001_s7 = scalar_lea.vmem [#allocation5], %s2136_s17 }
  0x7f   : > { %2739 = dma.done.wait (%p2897_p7), %s660_s2, 3072  }
  0x80   : > { %2741 = vsyncadd (%p2897_p7), %s660_s2, 4294964224  ;;  %s2137_s4 = sshll.u32 %s649_s14, 7  ;;  %s680_s0 = scalar_lea.sflag [#allocation9], %s649_s14 }
  0x81   : > { %s3007_s27 = scalar_lea.vmem [#allocation7], %s2137_s4  ;;  %s3009_s22 = scalar_lea.vmem [#allocation8], %s2137_s4 }
  0x82   : > { %2743 = dma.done.wait (%p2897_p7), %s680_s0, 2048  }
  0x83   : > { %2745 = vsyncadd (%p2897_p7), %s680_s0, 4294965248  ;;  %p771_p8 = scmp.lt.s32.totalorder %s2880_s28, 1  ;;  %s3374_s6 = sld [smem:[#allocation22_spill]] }
  0x84   : > { %s3375_s15 = sld [smem:[#allocation26_spill]]  ;;  %p2140_p7 = scmp.ne.s32.totalorder %s2880_s28, 0 }
  0x85   : > { %s3017_s16 = scalar_select %p771_p8, %s2880_s28, 1 }
  0x86   : > { %s3376_s11 = sld [smem:[#allocation27_spill]] }
  0x87   : > { %s2489_s3 = smul.u32 3, %s3017_s16  ;;  %s2139_s2 = sshll.u32 %s3017_s16, 1 }
  0x88   : > { %s3041_s5 = scalar_lea.vmem %s3333_s12, %s2139_s2  ;;  %s3377_s13 = sld [smem:[#allocation28_spill]] }
  0x89   : > { %s3035_s17 = scalar_lea.vmem %s3374_s6, %s2489_s3  ;;  %s3378_s4 = sld [smem:[#allocation16_spill]] (!%p2140_p7) }
  0x8a   : > { %s790_s19 = scalar_lea.vmem %s3375_s15, %s3017_s16  ;;  %801 = sbr.rel (%p2140_p7) target bundleno = 547 (0x223), region = 108 }
  0x8b   : > { %s3379_s6 = sld [smem:[#allocation17_spill]] (!%p2140_p7) }
  0x8c   : > { %s793_s23 = scalar_lea.vmem %s3376_s11, %s3017_s16  ;;  %s3380_s3 = sld [smem:[#allocation18_spill]] (!%p2140_p7) }
  0x8d   : > { %s3381_s11 = sld [smem:[#allocation19_spill]] (!%p2140_p7) }
  0x8e   : > { %s796_s29 = scalar_lea.vmem %s3377_s13, %s3017_s16  ;;  %s3382_s28 = sld [smem:[#allocation20_spill]] (!%p2140_p7) }
  0x8f   : > { %v802_v0 = vld [vmem:[%s3378_s4] sm:$0xff]  ;;  %v2768_v2 = vmov 0   ;;  %v803_v5 = vld [vmem:[%s3378_s4 + $0x8] sm:$0xff]  ;;  %v804_v7 = vlaneseq  ;;  %vm824_vm0 = vcmask 261120   ;;  %v2769_v10 = vmov 0.0  }
  0x90   : > { %2553 = vset.pattern.permute.xlu0 %v2768_v2 }
  0x91   : > { %v821_v1 = vld [vmem:[%s3379_s6 + $0x18] sm:$0xff]  ;;  %v820_v3 = vld [vmem:[%s3379_s6 + $0x10] sm:$0xff]  ;;  %807 = vperm.xlu0 %2553, %v802_v0   ;;  %v819_v4 = vld [vmem:[%s3379_s6 + $0x8] sm:$0xff]  ;;  %v805_v8 = vand.u32 127, %v804_v7 }
  0x92   : > { %843 = vmatpush.msra.mxu0 %v821_v1  ;;  %2482 = vmatpush.msra.mxu1 %v821_v1  ;;  %v818_v6 = vld [vmem:[%s3379_s6] sm:$0xff]  ;;  %v823_v18 = vld [vmem:[%s3380_s3 + $0x8] sm:$0xff] }
  0x93   : > { %v822_v14 = vld [vmem:[%s3380_s3] sm:$0xff] }
  0x94   : > { %844 = vmatpush.msra.mxu0 %v820_v3  ;;  %2483 = vmatpush.msra.mxu1 %v820_v3  ;;  %v2554_v45 = vld [vmem:[%s3381_s11] ss:$0 sm:$0xff] }
  0x95   : > { %v2555_v48 = vld [vmem:[%s3382_s28] ss:$0 sm:$0xff] }
  0x96   : > { %845 = vmatpush.msra.mxu0 %v819_v4  ;;  %2484 = vmatpush.msra.mxu1 %v819_v4 }
  0x98   : > { %846 = vmatpush.msra.mxu0 %v818_v6  ;;  %2485 = vmatpush.msra.mxu1 %v818_v6 }
  0x99   : > { %810 = vperm.xlu0 %2553, %v803_v5  }
 0x103   : > { %v808_v9 = vpop.permute.xlu0 %807 }
 0x104   : > { %vm812_vm1 = vcmp.eq.s32.totalorder %v805_v8, %v808_v9 }
 0x105   : > { %v2141_v11 = vsel %vm812_vm1, 1.0, %v2769_v10 }
 0x106   : > { %2143 = vmatmul.msk.f32.vlgmr.msra.gmra.mxu0 %vm824_vm0, %v2141_v11 }
 0x10b   : > { %v811_v12 = vpop.permute.xlu0 %810 }
 0x10c   : > { %vm813_vm2 = vcmp.eq.s32.totalorder %v805_v8, %v811_v12 }
 0x10d   : > { %v2142_v13 = vsel %vm813_vm2, 1.0, %v2769_v10 }
 0x10e   : > { %2144 = vmatmul.msk.f32.vlgmr.msra.gmra.mxu1 %vm824_vm0, %v2142_v13 }
 0x183   : > { %v848_v15 = vpop.f32.mrf.mxu0 }
 0x184   : > { %v849_v16 = vadd.f32 %v848_v15, %v822_v14 }
 0x186   : > { %856 = vadd.xlane.f32.xlu1 %v849_v16  ;;  %v862_v17 = vmul.f32 %v849_v16, %v849_v16 }
 0x188   : > { %864 = vadd.xlane.f32.xlu2 %v862_v17 }
 0x18b   : > { %v851_v19 = vpop.f32.mrf.mxu1 }
 0x18c   : > { %v852_v20 = vadd.f32 %v851_v19, %v823_v18 }
 0x18e   : > { %858 = vadd.xlane.f32.xlu1 %v852_v20  ;;  %v863_v21 = vmul.f32 %v852_v20, %v852_v20 }
 0x190   : > { %866 = vadd.xlane.f32.xlu2 %v863_v21 }
 0x1f9   : > { %v857_v22 = vpop.xlane.xlu1 %856 }
 0x1fa   : > { %v860_v23 = vmul.f32 0.0078125, %v857_v22 }
 0x1fb   : > { %v865_v24 = vpop.xlane.xlu2 %864 }
 0x1fc   : > { %v870_v25 = vmul.f32 %v860_v23, %v860_v23  ;;  %v868_v26 = vmul.f32 0.0078125, %v865_v24  ;;  %v874_v44 = vsub.f32 %v849_v16, %v860_v23 }
 0x1fe   : > { %v872_v27 = vsub.f32 %v868_v26, %v870_v25 }
 0x200   : > { %v876_v28 = vadd.f32 1e-12, %v872_v27 }
 0x201   : > { %v859_v29 = vpop.xlane.xlu1 %858 }
 0x202   : > { %2556 = vrsqrt.f32 %v876_v28  ;;  %v861_v30 = vmul.f32 0.0078125, %v859_v29  ;;  %vm884_vm4 = vweird.f32 %v876_v28 }
 0x203   : > { %v867_v31 = vpop.xlane.xlu2 %866 }
 0x204   : > { %v871_v32 = vmul.f32 %v861_v30, %v861_v30  ;;  %v869_v33 = vmul.f32 0.0078125, %v867_v31  ;;  %v875_v55 = vsub.f32 %v852_v20, %v861_v30 }
 0x206   : > { %v873_v34 = vsub.f32 %v869_v33, %v871_v32 }
 0x208   : > { %v2557_v35 = vpop.eup %2556  ;;  %v877_v36 = vadd.f32 1e-12, %v873_v34 }
 0x209   : > { %v879_v37 = vmul.f32 %v2557_v35, %v876_v28  ;;  %vm885_vm3 = vweird.f32 %v2557_v35 }
 0x20a   : > { %2558 = vrsqrt.f32 %v877_v36  ;;  %vm886_vm5 = vmor %vm884_vm4, %vm885_vm3  ;;  %vm894_vm7 = vweird.f32 %v877_v36 }
 0x20b   : > { %v880_v38 = vmul.f32 %v2557_v35, %v879_v37 }
 0x20d   : > { %v881_v39 = vmul.f32 0.5, %v880_v38 }
 0x20f   : > { %v882_v40 = vsub.f32 1.5, %v881_v39 }
 0x210   : > { %v2559_v41 = vpop.eup %2558 }
 0x211   : > { %v883_v42 = vmul.f32 %v2557_v35, %v882_v40  ;;  %v889_v43 = vmul.f32 %v2559_v41, %v877_v36  ;;  %vm895_vm6 = vweird.f32 %v2559_v41 }
 0x212   : > { %vm896_vm8 = vmor %vm894_vm7, %vm895_vm6 }
 0x213   : > { %v887_v46 = vsel %vm886_vm5, %v2557_v35, %v883_v42  ;;  %v890_v47 = vmul.f32 %v2559_v41, %v889_v43 }
 0x214   : > { %v898_v49 = vmul.f32 %v887_v46, %v874_v44 }
 0x215   : > { %v891_v50 = vmul.f32 0.5, %v890_v47 }
 0x216   : > { %v903_v51 = vmul.f32 %v2554_v45, %v898_v49 }
 0x217   : > { %v892_v52 = vsub.f32 1.5, %v891_v50 }
 0x218   : > { %v908_v53 = vadd.f32 %v2555_v48, %v903_v51 }
 0x219   : > { %v893_v54 = vmul.f32 %v2559_v41, %v892_v52 }
 0x21a   : > { %910 = vst [vmem:[#allocation2] sm:$0xff] %v908_v53 }
 0x21b   : > { %v897_v56 = vsel %vm896_vm8, %v2559_v41, %v893_v54 }
 0x21c   : > { %v899_v57 = vmul.f32 %v897_v56, %v875_v55 }
 0x21e   : > { %v904_v58 = vmul.f32 %v2554_v45, %v899_v57 }
 0x220   : > { %v909_v59 = vadd.f32 %v2555_v48, %v904_v58 }
 0x222   : > { %911 = vst [vmem:[#allocation2 + $0x8] sm:$0xff] %v909_v59 }
 0x223 PF: > { %v2231_v60 = vld [vmem:[%s2994_s21 + $0xa8] sm:$0xf]  ;;  %v2440_v61 = vld [vmem:[%s2994_s21 + $0xb0] sm:$0xf0]  ;;  %v2439_v62 = vld [vmem:[%s2994_s21 + $0xac] sm:$0xf]  ;;  %s3384_s24 = scalar_lea.vmem %s3330_s9, %s3017_s16  ;;  %s3385_s20 = scalar_lea.vmem %s3331_s10, %s3017_s16 }
 0x224   : > { %v2232_v63 = vor.u32 %v2440_v61, %v2231_v60  ;;  %v2233_v0 = vld [vmem:[%s2994_s21 + $0xb4] sm:$0xf0]  ;;  %v2219_v1 = vld [vmem:[%s2994_s21 + $0x90] sm:$0xf]  ;;  %v2437_v2 = vld [vmem:[%s2994_s21 + $0x98] sm:$0xf0] }
 0x225   : > { %v2236_v3 = vor.u32 %v2439_v62, %v2233_v0  ;;  %v2436_v4 = vld [vmem:[%s2994_s21 + $0x94] sm:$0xf]  ;;  %v2221_v5 = vld [vmem:[%s2994_s21 + $0x9c] sm:$0xf0]  ;;  %v2220_v6 = vor.u32 %v2437_v2, %v2219_v1  ;;  %v2207_v8 = vld [vmem:[%s2994_s21 + $0x78] sm:$0xf] }
 0x226   : > { %1083 = vmatpush.bf16.msra.mxu0 %v2232_v63  ;;  %v2224_v7 = vor.u32 %v2436_v4, %v2221_v5  ;;  %v2434_v9 = vld [vmem:[%s2994_s21 + $0x80] sm:$0xf0]  ;;  %v2433_v10 = vld [vmem:[%s2994_s21 + $0x7c] sm:$0xf]  ;;  %v2209_v11 = vld [vmem:[%s2994_s21 + $0x84] sm:$0xf0] }
 0x227   : > { %1097 = vmatpush.bf16.msra.mxu1 %v2236_v3  ;;  %v2208_v12 = vor.u32 %v2434_v9, %v2207_v8  ;;  %v2212_v13 = vor.u32 %v2433_v10, %v2209_v11  ;;  %v2195_v14 = vld [vmem:[%s2994_s21 + $0x60] sm:$0xf]  ;;  %v2431_v15 = vld [vmem:[%s2994_s21 + $0x68] sm:$0xf0]  ;;  %v2430_v16 = vld [vmem:[%s2994_s21 + $0x64] sm:$0xf] }
 0x228   : > { %v2197_v17 = vld [vmem:[%s2994_s21 + $0x6c] sm:$0xf0]  ;;  %v2196_v18 = vor.u32 %v2431_v15, %v2195_v14  ;;  %v2183_v19 = vld [vmem:[%s2994_s21 + $0x48] sm:$0xf]  ;;  %v2441_v21 = vld [vmem:[%s2994_s21 + $0xb8] sm:$0xf0] }
 0x229   : > { %v2239_v20 = vld [vmem:[%s2994_s21 + $0xb0] sm:$0xf]  ;;  %v2200_v22 = vor.u32 %v2430_v16, %v2197_v17  ;;  %v2428_v23 = vld [vmem:[%s2994_s21 + $0x50] sm:$0xf0]  ;;  %v2227_v25 = vld [vmem:[%s2994_s21 + $0x98] sm:$0xf] }
 0x22a   : > { %1084 = vmatpush.bf16.msra.mxu0 %v2220_v6  ;;  %v2240_v24 = vor.u32 %v2441_v21, %v2239_v20  ;;  %v2438_v26 = vld [vmem:[%s2994_s21 + $0xa0] sm:$0xf0]  ;;  %v2427_v27 = vld [vmem:[%s2994_s21 + $0x4c] sm:$0xf]  ;;  %v2185_v28 = vld [vmem:[%s2994_s21 + $0x54] sm:$0xf0]  ;;  %v2184_v30 = vor.u32 %v2428_v23, %v2183_v19 }
 0x22b   : > { %1098 = vmatpush.bf16.msra.mxu1 %v2224_v7  ;;  %v2228_v29 = vor.u32 %v2438_v26, %v2227_v25  ;;  %v2215_v31 = vld [vmem:[%s2994_s21 + $0x80] sm:$0xf]  ;;  %v2435_v32 = vld [vmem:[%s2994_s21 + $0x88] sm:$0xf0]  ;;  %v2188_v33 = vor.u32 %v2427_v27, %v2185_v28  ;;  %v2171_v34 = vld [vmem:[%s2994_s21 + $0x30] sm:$0xf] }
 0x22c   : > { %1111 = vmatpush.bf16.msra.mxu2 %v2240_v24  ;;  %v2425_v35 = vld [vmem:[%s2994_s21 + $0x38] sm:$0xf0]  ;;  %v2424_v36 = vld [vmem:[%s2994_s21 + $0x34] sm:$0xf]  ;;  %v2173_v37 = vld [vmem:[%s2994_s21 + $0x3c] sm:$0xf0]  ;;  %v2216_v38 = vor.u32 %v2435_v32, %v2215_v31 }
 0x22d   : > { %v2172_v39 = vor.u32 %v2425_v35, %v2171_v34  ;;  %v2203_v40 = vld [vmem:[%s2994_s21 + $0x68] sm:$0xf]  ;;  %v2432_v41 = vld [vmem:[%s2994_s21 + $0x70] sm:$0xf0]  ;;  %v2176_v42 = vor.u32 %v2424_v36, %v2173_v37  ;;  %v2159_v43 = vld [vmem:[%s2994_s21 + $0x18] sm:$0xf] }
 0x22e   : > { %1085 = vmatpush.bf16.msra.mxu0 %v2208_v12  ;;  %v2422_v44 = vld [vmem:[%s2994_s21 + $0x20] sm:$0xf0]  ;;  %v2421_v45 = vld [vmem:[%s2994_s21 + $0x1c] sm:$0xf]  ;;  %v2161_v46 = vld [vmem:[%s2994_s21 + $0x24] sm:$0xf0]  ;;  %v2204_v47 = vor.u32 %v2432_v41, %v2203_v40 }
 0x22f   : > { %1099 = vmatpush.bf16.msra.mxu1 %v2212_v13  ;;  %v2160_v48 = vor.u32 %v2422_v44, %v2159_v43  ;;  %v2191_v49 = vld [vmem:[%s2994_s21 + $0x50] sm:$0xf]  ;;  %v2429_v50 = vld [vmem:[%s2994_s21 + $0x58] sm:$0xf0]  ;;  %v2164_v51 = vor.u32 %v2421_v45, %v2161_v46  ;;  %v2147_v52 = vld [vmem:[%s2994_s21] sm:$0xf] }
 0x230   : > { %1112 = vmatpush.bf16.msra.mxu2 %v2228_v29  ;;  %v2419_v53 = vld [vmem:[%s2994_s21 + $0x8] sm:$0xf0]  ;;  %v2418_v54 = vld [vmem:[%s2994_s21 + $0x4] sm:$0xf]  ;;  %v2149_v55 = vld [vmem:[%s2994_s21 + $0xc] sm:$0xf0]  ;;  %v2192_v57 = vor.u32 %v2429_v50, %v2191_v49 }
 0x231   : > { %v3128_v56 = vld [vmem:[#allocation2] sm:$0xff]  ;;  %v2148_v58 = vor.u32 %v2419_v53, %v2147_v52  ;;  %v3130_v59 = vld [vmem:[#allocation2 + $0x8] sm:$0xff]  ;;  %v2426_v61 = vld [vmem:[%s2994_s21 + $0x40] sm:$0xf0]  ;;  %v2152_v62 = vor.u32 %v2418_v54, %v2149_v55  ;;  %vm1144_vm9 = vcmask 523264   ;;  %s2770_s18 = smov 64  }
 0x232   : > { %1086 = vmatpush.bf16.msra.mxu0 %v2196_v18  ;;  %v2179_v60 = vld [vmem:[%s2994_s21 + $0x38] sm:$0xf]  ;;  %v914_v63 = vpack.c.bf16 %v3130_v59, %v3128_v56  ;;  %v2167_v1 = vld [vmem:[%s2994_s21 + $0x20] sm:$0xf]  ;;  %v2423_v2 = vld [vmem:[%s2994_s21 + $0x28] sm:$0xf0] }
 0x233   : > { %1100 = vmatpush.bf16.msra.mxu1 %v2200_v22  ;;  %v2180_v0 = vor.u32 %v2426_v61, %v2179_v60  ;;  %v2168_v3 = vor.u32 %v2423_v2, %v2167_v1  ;;  %v2155_v4 = vld [vmem:[%s2994_s21 + $0x8] sm:$0xf]  ;;  %v2420_v5 = vld [vmem:[%s2994_s21 + $0x10] sm:$0xf0]  ;;  %v3141_v7 = vld [vmem:[%s3035_s17] sm:$0x7]  ;;  %s3383_s17 = scalar_lea.vmem %s3329_s8, %s3017_s16 }
 0x234   : > { %1113 = vmatpush.bf16.msra.mxu2 %v2216_v38  ;;  %v2156_v6 = vor.u32 %v2420_v5, %v2155_v4  ;;  %v950_v8 = vperm.slane %v3141_v7, 1  ;;  %v949_v10 = vperm.slane %v3141_v7, 0  ;;  %v951_v20 = vperm.slane %v3141_v7, 2  ;;  %v2449_v25 = vld [vmem:[%s3001_s7 + $0x38] sm:$0xff]  ;;  %v2448_v26 = vld [vmem:[%s3001_s7 + $0x30] sm:$0xff]  ;;  %v2447_v27 = vld [vmem:[%s3001_s7 + $0x28] sm:$0xff] }
 0x235   : > { %vm1180_vm10 = vcmask 1043456   ;;  %v2446_v28 = vld [vmem:[%s3001_s7 + $0x20] sm:$0xff]  ;;  %vm1164_vm11 = vcmask 64512   ;;  %v2444_v50 = vld [vmem:[%s3001_s7 + $0x10] sm:$0xff]  ;;  %v2443_v52 = vld [vmem:[%s3001_s7 + $0x8] sm:$0xff] }
 0x236   : > { %1087 = vmatpush.bf16.msra.mxu0 %v2184_v30  ;;  %v2442_v61 = vld [vmem:[%s3001_s7] sm:$0xff] }
 0x237   : > { %1101 = vmatpush.bf16.msra.mxu1 %v2188_v33 }
 0x238   : > { %1114 = vmatpush.bf16.msra.mxu2 %v2204_v47 }
 0x23a   : > { %1088 = vmatpush.bf16.msra.mxu0 %v2172_v39 }
 0x23b   : > { %1102 = vmatpush.bf16.msra.mxu1 %v2176_v42 }
 0x23c   : > { %1115 = vmatpush.bf16.msra.mxu2 %v2192_v57 }
 0x23e   : > { %1089 = vmatpush.bf16.msra.mxu0 %v2160_v48  ;;  %v2445_v48 = vld [vmem:[%s3001_s7 + $0x18] sm:$0xff] }
 0x23f   : > { %1103 = vmatpush.bf16.msra.mxu1 %v2164_v51 }
 0x240   : > { %1116 = vmatpush.bf16.msra.mxu2 %v2180_v0 }
 0x242   : > { %1090 = vmatpush.bf16.msra.mxu0 %v2148_v58 }
 0x243   : > { %1104 = vmatpush.bf16.msra.mxu1 %v2152_v62 }
 0x244   : > { %1117 = vmatpush.bf16.msra.mxu2 %v2168_v3 }
 0x245   : > { %1091 = vmatmul.bf16.vlgmr.msra.gmra.mxu0 %v914_v63 }
 0x246   : > { %1105 = vmatmul.bf16.vlgmr.msra.gmra.mxu1 %v914_v63 }
 0x247   : > { %1289 = vmatpush.bf16.msrb.mxu1 %v2449_v25 }
 0x248   : > { %1118 = vmatpush.bf16.msra.mxu2 %v2156_v6 }
 0x24b   : > { %1119 = vmatmul.bf16.vlgmr.msra.gmra.mxu2 %v914_v63  ;;  %1290 = vmatpush.bf16.msrb.mxu1 %v2448_v26 }
 0x24c   : > { %1329 = vmatpush.bf16.msrb.mxu2 %v2445_v48 }
 0x24f   : > { %1291 = vmatpush.bf16.msrb.mxu1 %v2447_v27 }
 0x250   : > { %1330 = vmatpush.bf16.msrb.mxu2 %v2444_v50 }
 0x253   : > { %1292 = vmatpush.bf16.msrb.mxu1 %v2446_v28 }
 0x254   : > { %1331 = vmatpush.bf16.msrb.mxu2 %v2443_v52 }
 0x258   : > { %1332 = vmatpush.bf16.msrb.mxu2 %v2442_v61 }
 0x2c2   : > { %v1092_v13 = vpop.f32.mrf.mxu0 }
 0x2c3   : > { %v1106_v9 = vpop.f32.mrf.mxu1  ;;  %v1093_v14 = vadd.f32 %v1092_v13, %v949_v10 }
 0x2c4   : > { %v1107_v11 = vadd.f32 %v1106_v9, %v950_v8 }
 0x2c5   : > { %v1141_v16 = vpack.c.bf16 %v1093_v14, %v1093_v14 }
 0x2c6   : > { %v1142_v12 = vpack.c.bf16 %v1107_v11, %v1107_v11 }
 0x2c8   : > { %1202 = vrot.lane.b32.xlu1 %v1142_v12, %s2770_s18  ;;  %v1149_v15 = vsel %vm1144_vm9, %v1142_v12, 0 }
 0x2c9   : > { %1158 = vmatpush.bf16.xpose.msra.mxu3 %v1149_v15 }
 0x2ca   : > { %v1094_v57 = vpop.f32.mrf.mxu0 }
 0x2cb   : > { %v1108_v17 = vpop.f32.mrf.mxu1  ;;  %v1095_v58 = vadd.f32 %v1094_v57, %v949_v10 }
 0x2cc   : > { %v1109_v18 = vadd.f32 %v1108_v17, %v950_v8 }
 0x2cd   : > { %v1338_v60 = vpack.c.bf16 %v1095_v58, %v1095_v58 }
 0x2ce   : > { %v1339_v19 = vpack.c.bf16 %v1109_v18, %v1109_v18  ;;  %v1120_v21 = vpop.f32.mrf.mxu2 }
 0x2cf   : > { %v1121_v22 = vadd.f32 %v1120_v21, %v951_v20 }
 0x2d0   : > { %1199 = vrot.lane.b32.xlu1 %v1141_v16, %s2770_s18  ;;  %2241 = vmatmul.msk.bf16.vlgmr.msra.gmra.mxu3 %vm1144_vm9, %v1141_v16  ;;  %v1345_v47 = vsel %vm1144_vm9, %v1339_v19, 0 }
 0x2d1   : > { %v1143_v23 = vpack.c.bf16 %v1121_v22, %v1121_v22 }
 0x2d3   : > { %v1182_v24 = vsel %vm1180_vm10, %v1143_v23, 0 }
 0x2d4   : > { %1191 = vmatpush.bf16.msrb.mxu3 %v1182_v24 }
 0x2d6   : > { %v1122_v45 = vpop.f32.mrf.mxu2 }
 0x2d7   : > { %v1123_v49 = vadd.f32 %v1122_v45, %v951_v20 }
 0x2d8   : > { %1396 = vrot.lane.b32.xlu1 %v1339_v19, %s2770_s18 }
 0x2d9   : > { %v3167_v51 = vpack.c.bf16 %v1123_v49, %v1123_v49 }
 0x2db   : > { %v1376_v55 = vsel %vm1180_vm10, %v3167_v51, 0 }
 0x33a   : > { %v1203_v29 = vpop.permute.xlu1 %1202 }
 0x33b   : > { %v1208_v30 = vsel %vm1144_vm9, %v1203_v29, 0 }
 0x33c   : > { %1217 = vmatpush.bf16.xpose.msra.mxu3 %v1208_v30 }
 0x342   : > { %v1200_v31 = vpop.permute.xlu1 %1199 }
 0x34a   : > { %v1397_v32 = vpop.permute.xlu1 %1396 }
 0x34b   : > { %v1402_v33 = vsel %vm1144_vm9, %v1397_v32, 0 }
 0x34c   : > { %1411 = vmatpush.bf16.xpose.msra.mxu1 %v1402_v33 }
 0x353   : > { %v1160_v34 = vpop.f32.mrf.mxu3 }
 0x354   : > { %v1165_v35 = vsel %vm1164_vm11, %v1160_v34, -inf }
 0x355   : > { %1166 = vmax.xlane.f32.xlu0 %v1165_v35 }
 0x35b   : > { %v1162_v36 = vpop.f32.mrf.mxu3 }
 0x3c8   : > { %v1167_v37 = vpop.xlane.xlu0 %1166 }
 0x3c9   : > { %v1168_v38 = vsub.f32 %v1160_v34, %v1167_v37 }
 0x3cb   : > { %v1169_v39 = vmul.f32 1.442695, %v1168_v38 }
 0x3cd   : > { %2566 = vpow2.f32 %v1169_v39 }
 0x3d3   : > { %v2567_v40 = vpop.eup %2566 }
 0x3d4   : > { %v1171_v41 = vsel %vm1164_vm11, %v2567_v40, 0.0 }
 0x3d5   : > { %1172 = vadd.xlane.f32.xlu0 %v1171_v41 }
 0x3e9   : > { %1236 = vrot.lane.b32.xlu0 %v1143_v23, %s2770_s18 }
 0x448   : > { %v1173_v42 = vpop.xlane.xlu0 %1172 }
 0x449   : > { %2568 = vrcp.f32 %v1173_v42 }
 0x44f   : > { %v2569_v43 = vpop.eup %2568 }
 0x450   : > { %v1175_v44 = vmul.f32 %v2569_v43, %v2567_v40 }
 0x452   : > { %v1176_v46 = vpack.c.bf16 %v1175_v44, %v1175_v44 }
 0x454   : > { %2242 = vmatmul.msk.bf16.vlgmr.msrb.gmra.mxu3 %vm1164_vm11, %v1176_v46  ;;  %v2560_v46 = vld [vmem:[%s3383_s17] ss:$0 sm:$0xff] }
 0x455   : > { %1354 = vmatpush.bf16.xpose.msrb.mxu3 %v1345_v47 }
 0x45b   : > { %v1237_v53 = vpop.permute.xlu0 %1236 }
 0x45c   : > { %v1242_v54 = vsel %vm1180_vm10, %v1237_v53, 0 }
 0x45d   : > { %1251 = vmatpush.bf16.msrb.mxu0 %v1242_v54 }
 0x461   : > { %1385 = vmatpush.bf16.msra.mxu0 %v1376_v55 }
 0x464   : > { %2243 = vmatmul.msk.bf16.vlgmr.msra.gmra.mxu3 %vm1144_vm9, %v1200_v31 }
 0x465   : > { %1459 = vmatpush.bf16.msra.mxu3 %v2449_v25 }
 0x469   : > { %1460 = vmatpush.bf16.msra.mxu3 %v2448_v26 }
 0x46d   : > { %1461 = vmatpush.bf16.msra.mxu3 %v2447_v27 }
 0x471   : > { %1462 = vmatpush.bf16.msra.mxu3 %v2446_v28 }
 0x474   : > { %2279 = vmatmul.msk.bf16.vlgmr.msrb.gmra.mxu3 %vm1144_vm9, %v1338_v60 }
 0x4d7   : > { %v1193_v62 = vpop.f32.mrf.mxu3 }
 0x4d8   : > { %v1197_v63 = vpack.c.bf16 %v1193_v62, %v1193_v62 }
 0x4da   : > { %2278 = vmatmul.msk.bf16.vlgmr.msrb.gmra.mxu2 %vm1144_vm9, %v1197_v63 }
 0x4df   : > { %v1195_v0 = vpop.f32.mrf.mxu3 }
 0x4e7   : > { %v1219_v1 = vpop.f32.mrf.mxu3 }
 0x4e8   : > { %v1223_v2 = vsel %vm1164_vm11, %v1219_v1, -inf }
 0x4e9   : > { %1224 = vmax.xlane.f32.xlu2 %v1223_v2 }
 0x4ef   : > { %v1221_v3 = vpop.f32.mrf.mxu3 }
 0x4f7   : > { %v1356_v4 = vpop.f32.mrf.mxu3 }
 0x4f8   : > { %v1360_v5 = vsel %vm1164_vm11, %v1356_v4, -inf }
 0x4f9   : > { %1361 = vmax.xlane.f32.xlu0 %v1360_v5  ;;  %v2465_v5 = vld [vmem:[%s3007_s27 + $0x74] sm:$0xf0] }
 0x4ff   : > { %v1358_v6 = vpop.f32.mrf.mxu3 }
 0x500   : > { %v2464_v6 = vld [vmem:[%s3007_s27 + $0x74] sm:$0xf] }
 0x55c   : > { %v1225_v7 = vpop.xlane.xlu2 %1224 }
 0x55d   : > { %v1226_v8 = vsub.f32 %v1219_v1, %v1225_v7  ;;  %v1334_v9 = vpop.f32.mrf.mxu2 }
 0x55f   : > { %v1227_v10 = vmul.f32 1.442695, %v1226_v8  ;;  %v2345_v8 = vld [vmem:[%s3007_s27 + $0x78] sm:$0xf0] }
 0x561   : > { %2570 = vpow2.f32 %v1227_v10  ;;  %v2463_v10 = vld [vmem:[%s3007_s27 + $0x64] sm:$0xf0] }
 0x565   : > { %v1336_v11 = vpop.f32.mrf.mxu2 }
 0x566   : > { %v2462_v11 = vld [vmem:[%s3007_s27 + $0x64] sm:$0xf] }
 0x567   : > { %v2571_v12 = vpop.eup %2570 }
 0x568   : > { %v1229_v13 = vsel %vm1164_vm11, %v2571_v12, 0.0 }
 0x569   : > { %1230 = vadd.xlane.f32.xlu2 %v1229_v13  ;;  %v2337_v13 = vld [vmem:[%s3007_s27 + $0x68] sm:$0xf0] }
 0x56c   : > { %v1362_v14 = vpop.xlane.xlu0 %1361 }
 0x56d   : > { %v1363_v15 = vsub.f32 %v1356_v4, %v1362_v14  ;;  %v2343_v4 = vld [vmem:[%s3007_s27 + $0x70] sm:$0xf] }
 0x56e   : > { %v2344_v7 = vor.u32 %v2465_v5, %v2343_v4 }
 0x56f   : > { %v1364_v16 = vmul.f32 1.442695, %v1363_v15  ;;  %v2340_v15 = vor.u32 %v2462_v11, %v2337_v13 }
 0x571   : > { %2572 = vpow2.f32 %v1364_v16 }
 0x577   : > { %v2573_v17 = vpop.eup %2572 }
 0x578   : > { %v1366_v18 = vsel %vm1164_vm11, %v2573_v17, 0.0 }
 0x579   : > { %1367 = vadd.xlane.f32.xlu0 %v1366_v18  ;;  %v2461_v18 = vld [vmem:[%s3007_s27 + $0x54] sm:$0xf0] }
 0x581   : > { %1393 = vrot.lane.b32.xlu2 %v1338_v60, %s2770_s18 }
 0x5dc   : > { %v1231_v19 = vpop.xlane.xlu2 %1230 }
 0x5dd   : > { %2574 = vrcp.f32 %v1231_v19  ;;  %v2460_v19 = vld [vmem:[%s3007_s27 + $0x54] sm:$0xf] }
 0x5e3   : > { %v2575_v20 = vpop.eup %2574 }
 0x5e4   : > { %v1233_v21 = vmul.f32 %v2575_v20, %v2571_v12  ;;  %v1394_v32 = vpop.permute.xlu2 %1393 }
 0x5e6   : > { %v1234_v22 = vpack.c.bf16 %v1233_v21, %v1233_v21 }
 0x5e8   : > { %2244 = vmatmul.msk.bf16.vlgmr.msrb.gmra.mxu0 %vm1164_vm11, %v1234_v22  ;;  %v2329_v22 = vld [vmem:[%s3007_s27 + $0x58] sm:$0xf0] }
 0x5e9   : > { %1475 = vmatpush.bf16.msrb.mxu0 %v2445_v48 }
 0x5ec   : > { %v1368_v23 = vpop.xlane.xlu0 %1367 }
 0x5ed   : > { %2576 = vrcp.f32 %v1368_v23  ;;  %1476 = vmatpush.bf16.msrb.mxu0 %v2444_v50  ;;  %v2332_v23 = vor.u32 %v2460_v19, %v2329_v22 }
 0x5f1   : > { %1477 = vmatpush.bf16.msrb.mxu0 %v2443_v52 }
 0x5f3   : > { %v2577_v24 = vpop.eup %2576 }
 0x5f4   : > { %v1370_v25 = vmul.f32 %v2577_v24, %v2573_v17  ;;  %v2327_v17 = vld [vmem:[%s3007_s27 + $0x50] sm:$0xf] }
 0x5f5   : > { %1478 = vmatpush.bf16.msrb.mxu0 %v2442_v61  ;;  %v2328_v21 = vor.u32 %v2461_v18, %v2327_v17  ;;  %v2561_v17 = vld [vmem:[%s3384_s24] ss:$0 sm:$0xff] }
 0x5f6   : > { %v1371_v26 = vpack.c.bf16 %v1370_v25, %v1370_v25  ;;  %v2319_v25 = vld [vmem:[%s3007_s27 + $0x40] sm:$0xf] }
 0x5f8   : > { %2280 = vmatmul.msk.bf16.vlgmr.msra.gmra.mxu0 %vm1164_vm11, %v1371_v26  ;;  %v2459_v26 = vld [vmem:[%s3007_s27 + $0x44] sm:$0xf0] }
 0x665   : > { %v1253_v27 = vpop.f32.mrf.mxu0 }
 0x666   : > { %v1257_v28 = vpack.c.bf16 %v1253_v27, %v1253_v27  ;;  %v2458_v27 = vld [vmem:[%s3007_s27 + $0x44] sm:$0xf] }
 0x668   : > { %2261 = vmatmul.msk.bf16.vlgmr.msrb.gmra.mxu1 %vm1144_vm9, %v1257_v28 }
 0x669   : > { %1651 = vmatpush.bf16.msrb.mxu1 %v2344_v7 }
 0x66d   : > { %v1255_v29 = vpop.f32.mrf.mxu0 }
 0x66e   : > { %v2320_v29 = vor.u32 %v2459_v26, %v2319_v25  ;;  %v2473_v25 = vld [vmem:[%s3009_s22 + $0x38] sm:$0xff]  ;;  %v2472_v26 = vld [vmem:[%s3009_s22 + $0x30] sm:$0xff] }
 0x66f   : > { %1849 = vmatpush.bf16.msrb.mxu3 %v2473_v25 }
 0x673   : > { %1850 = vmatpush.bf16.msrb.mxu3 %v2472_v26 }
 0x675   : > { %v1387_v30 = vpop.f32.mrf.mxu0 }
 0x676   : > { %v1391_v31 = vpack.c.bf16 %v1387_v30, %v1387_v30  ;;  %v2321_v30 = vld [vmem:[%s3007_s27 + $0x48] sm:$0xf0] }
 0x678   : > { %2281 = vmatmul.msk.bf16.vlgmr.msra.gmra.mxu1 %vm1144_vm9, %v1394_v32  ;;  %2284 = vmatmul.msk.bf16.vlgmr.msrb.gmra.mxu0 %vm1144_vm9, %v1391_v31  ;;  %v2324_v31 = vor.u32 %v2458_v27, %v2321_v30  ;;  %v2311_v32 = vld [vmem:[%s3007_s27 + $0x30] sm:$0xf]  ;;  %v2481_v27 = vld [vmem:[%s3009_s22 + $0x78] sm:$0xff]  ;;  %v2470_v30 = vld [vmem:[%s3009_s22 + $0x20] sm:$0xff] }
 0x679   : > { %1863 = vmatpush.bf16.msra.mxu0 %v2481_v27 }
 0x67d   : > { %v1389_v33 = vpop.f32.mrf.mxu0 }
 0x67e   : > { %v2457_v33 = vld [vmem:[%s3007_s27 + $0x34] sm:$0xf0] }
 0x6e5   : > { %v1294_v34 = vpop.f32.mrf.mxu1 }
 0x6e6   : > { %v1335_v45 = vadd.f32 %v1334_v9, %v1294_v34  ;;  %v2335_v9 = vld [vmem:[%s3007_s27 + $0x60] sm:$0xf]  ;;  %v2456_v34 = vld [vmem:[%s3007_s27 + $0x34] sm:$0xf] }
 0x6e7   : > { %v2336_v12 = vor.u32 %v2463_v10, %v2335_v9 }
 0x6e8   : > { %v1488_v48 = vadd.f32 %v2560_v46, %v1335_v45  ;;  %v2295_v45 = vld [vmem:[%s3007_s27 + $0x10] sm:$0xf] }
 0x6e9   : > { %1652 = vmatpush.bf16.msrb.mxu1 %v2336_v12 }
 0x6ea   : > { %v3199_v49 = vadd.f32 %v1488_v48, %v3128_v56 }
 0x6ec   : > { %v1500_v52 = vmul.f32 %v3199_v49, %v3199_v49 }
 0x6ed   : > { %v1296_v35 = vpop.f32.mrf.mxu1  ;;  %1653 = vmatpush.bf16.msrb.mxu1 %v2328_v21 }
 0x6f1   : > { %1654 = vmatpush.bf16.msrb.mxu1 %v2320_v29  ;;  %v2480_v29 = vld [vmem:[%s3009_s22 + $0x70] sm:$0xff] }
 0x6f2   : > { %1864 = vmatpush.bf16.msra.mxu0 %v2480_v29 }
 0x6f5   : > { %v1413_v36 = vpop.f32.mrf.mxu1  ;;  %v1480_v37 = vpop.f32.mrf.mxu0 }
 0x6f6   : > { %v1417_v38 = vsel %vm1164_vm11, %v1413_v36, -inf }
 0x6f7   : > { %1418 = vmax.xlane.f32.xlu1 %v1417_v38 }
 0x6fd   : > { %v1415_v39 = vpop.f32.mrf.mxu1  ;;  %v1482_v40 = vpop.f32.mrf.mxu0 }
 0x6fe   : > { %v2303_v39 = vld [vmem:[%s3007_s27 + $0x20] sm:$0xf]  ;;  %v2455_v40 = vld [vmem:[%s3007_s27 + $0x24] sm:$0xf0] }
 0x710   : > { %1430 = vrot.lane.b32.xlu1 %v3167_v51, %s2770_s18  ;;  %s3389_s18 = sld [smem:[#allocation29_spill]] }
 0x76a   : > { %v1419_v41 = vpop.xlane.xlu1 %1418 }
 0x76b   : > { %v1420_v42 = vsub.f32 %v1413_v36, %v1419_v41  ;;  %v2312_v36 = vor.u32 %v2457_v33, %v2311_v32  ;;  %v2454_v41 = vld [vmem:[%s3007_s27 + $0x24] sm:$0xf]  ;;  %v2469_v32 = vld [vmem:[%s3009_s22 + $0x18] sm:$0xff] }
 0x76c   : > { %v2478_v33 = vld [vmem:[%s3009_s22 + $0x60] sm:$0xff] }
 0x76d   : > { %v1421_v43 = vmul.f32 1.442695, %v1420_v42  ;;  %1655 = vmatpush.bf16.msrb.mxu1 %v2312_v36  ;;  %v2304_v42 = vor.u32 %v2455_v40, %v2303_v39  ;;  %v2477_v36 = vld [vmem:[%s3009_s22 + $0x58] sm:$0xff]  ;;  %v2476_v39 = vld [vmem:[%s3009_s22 + $0x50] sm:$0xff] }
 0x76f   : > { %2578 = vpow2.f32 %v1421_v43  ;;  %v2305_v43 = vld [vmem:[%s3007_s27 + $0x28] sm:$0xf0] }
 0x771   : > { %1656 = vmatpush.bf16.msrb.mxu1 %v2304_v42 }
 0x775   : > { %v2579_v44 = vpop.eup %2578 }
 0x776   : > { %v1423_v47 = vsel %vm1164_vm11, %v2579_v44, 0.0 }
 0x777   : > { %1424 = vadd.xlane.f32.xlu2 %v1423_v47  ;;  %v2452_v47 = vld [vmem:[%s3007_s27 + $0x14] sm:$0xf] }
 0x77f   : > { %1494 = vadd.xlane.f32.xlu2 %v3199_v49 }
 0x782   : > { %v1431_v50 = vpop.permute.xlu1 %1430 }
 0x783   : > { %v1436_v51 = vsel %vm1180_vm10, %v1431_v50, 0  ;;  %v2297_v50 = vld [vmem:[%s3007_s27 + $0x18] sm:$0xf0] }
 0x784   : > { %1445 = vmatpush.bf16.msra.mxu2 %v1436_v51  ;;  %v2287_v51 = vld [vmem:[%s3007_s27] sm:$0xf] }
 0x787   : > { %1502 = vadd.xlane.f32.xlu2 %v1500_v52  ;;  %v2451_v52 = vld [vmem:[%s3007_s27 + $0x4] sm:$0xf0] }
 0x7ea   : > { %v1425_v53 = vpop.xlane.xlu2 %1424 }
 0x7eb   : > { %2580 = vrcp.f32 %v1425_v53  ;;  %v2300_v53 = vor.u32 %v2452_v47, %v2297_v50 }
 0x7f1   : > { %v2581_v54 = vpop.eup %2580 }
 0x7f2   : > { %v1427_v55 = vmul.f32 %v2581_v54, %v2579_v44  ;;  %v1495_v3 = vpop.xlane.xlu2 %1494  ;;  %v2308_v44 = vor.u32 %v2454_v41, %v2305_v43  ;;  %v2450_v54 = vld [vmem:[%s3007_s27 + $0x4] sm:$0xf]  ;;  %v2475_v43 = vld [vmem:[%s3009_s22 + $0x48] sm:$0xff] }
 0x7f3   : > { %v3221_v16 = vmul.f32 0.0078125, %v1495_v3  ;;  %v2466_v41 = vld [vmem:[%s3009_s22] sm:$0xff] }
 0x7f4   : > { %v1428_v57 = vpack.c.bf16 %v1427_v55, %v1427_v55  ;;  %v2289_v55 = vld [vmem:[%s3007_s27 + $0x8] sm:$0xf0] }
 0x7f5   : > { %v1508_v24 = vmul.f32 %v3221_v16, %v3221_v16  ;;  %v1512_v13 = vsub.f32 %v3199_v49, %v3221_v16  ;;  %v2562_v16 = vld [vmem:[%s3385_s20] ss:$0 sm:$0xff] }
 0x7f6   : > { %2282 = vmatmul.msk.bf16.vlgmr.msra.gmra.mxu2 %vm1164_vm11, %v1428_v57 }
 0x7fa   : > { %v1503_v14 = vpop.xlane.xlu2 %1502 }
 0x7fb   : > { %v1506_v20 = vmul.f32 0.0078125, %v1503_v14 }
 0x7fd   : > { %v1510_v28 = vsub.f32 %v1506_v20, %v1508_v24 }
 0x7ff   : > { %v1514_v35 = vadd.f32 1e-12, %v1510_v28  ;;  %v2471_v28 = vld [vmem:[%s3009_s22 + $0x28] sm:$0xff] }
 0x800   : > { %1851 = vmatpush.bf16.msrb.mxu3 %v2471_v28  ;;  %v2563_v28 = vld [vmem:[%s790_s19] ss:$0 sm:$0xff] }
 0x801   : > { %2582 = vrsqrt.f32 %v1514_v35  ;;  %vm1522_vm13 = vweird.f32 %v1514_v35 }
 0x804   : > { %1852 = vmatpush.bf16.msrb.mxu3 %v2470_v30 }
 0x807   : > { %v2583_v57 = vpop.eup %2582 }
 0x808   : > { %vm1523_vm12 = vweird.f32 %v2583_v57  ;;  %1853 = vmatpush.bf16.msrb.mxu3 %v2469_v32 }
 0x809   : > { %vm1524_vm14 = vmor %vm1522_vm13, %vm1523_vm12 }
 0x879   : > { %v1447_v56 = vpop.f32.mrf.mxu2 }
 0x87a   : > { %v1451_v58 = vpack.c.bf16 %v1447_v56, %v1447_v56  ;;  %v2288_v56 = vor.u32 %v2451_v52, %v2287_v51 }
 0x87c   : > { %2283 = vmatmul.msk.bf16.vlgmr.msra.gmra.mxu3 %vm1144_vm9, %v1451_v58  ;;  %v2292_v58 = vor.u32 %v2450_v54, %v2289_v55 }
 0x881   : > { %v1449_v60 = vpop.f32.mrf.mxu2 }
 0x882   : > { %v1517_v60 = vmul.f32 %v2583_v57, %v1514_v35  ;;  %v1565_v35 = vld [vmem:[%s3041_s5] sm:$0x3] }
 0x884   : > { %v1518_v3 = vmul.f32 %v2583_v57, %v1517_v60 }
 0x8ff   : > { %v1464_v61 = vpop.f32.mrf.mxu3 }
 0x900   : > { %v1481_v62 = vadd.f32 %v1480_v37, %v1464_v61  ;;  %v2313_v37 = vld [vmem:[%s3007_s27 + $0x38] sm:$0xf0] }
 0x901   : > { %v2316_v38 = vor.u32 %v2456_v34, %v2313_v37  ;;  %v2468_v34 = vld [vmem:[%s3009_s22 + $0x10] sm:$0xff]  ;;  %v2467_v37 = vld [vmem:[%s3009_s22 + $0x8] sm:$0xff] }
 0x902   : > { %v1489_v63 = vadd.f32 %v2560_v46, %v1481_v62  ;;  %v2453_v46 = vld [vmem:[%s3007_s27 + $0x14] sm:$0xf0]  ;;  %1854 = vmatpush.bf16.msrb.mxu3 %v2468_v34 }
 0x903   : > { %v2296_v48 = vor.u32 %v2453_v46, %v2295_v45  ;;  %v1568_v45 = vperm.slane %v1565_v35, 1 }
 0x904   : > { %v3208_v0 = vadd.f32 %v1489_v63, %v3130_v59  ;;  %v2348_v59 = vor.u32 %v2464_v6, %v2345_v8  ;;  %v1519_v6 = vmul.f32 0.5, %v1518_v3 }
 0x905   : > { %1657 = vmatpush.bf16.msrb.mxu1 %v2296_v48  ;;  %v2474_v48 = vld [vmem:[%s3009_s22 + $0x40] sm:$0xff] }
 0x906   : > { %1496 = vadd.xlane.f32.xlu0 %v3208_v0  ;;  %v1501_v1 = vmul.f32 %v3208_v0, %v3208_v0  ;;  %1665 = vmatpush.bf16.msrb.mxu2 %v2348_v59  ;;  %v1520_v7 = vsub.f32 1.5, %v1519_v6 }
 0x907   : > { %v1466_v2 = vpop.f32.mrf.mxu3  ;;  %1855 = vmatpush.bf16.msrb.mxu3 %v2467_v37 }
 0x908   : > { %1504 = vadd.xlane.f32.xlu1 %v1501_v1  ;;  %v1521_v59 = vmul.f32 %v2583_v57, %v1520_v7 }
 0x909   : > { %1658 = vmatpush.bf16.msrb.mxu1 %v2288_v56 }
 0x90a   : > { %1666 = vmatpush.bf16.msrb.mxu2 %v2340_v15  ;;  %v1525_v11 = vsel %vm1524_vm14, %v2583_v57, %v1521_v59 }
 0x90b   : > { %v1536_v15 = vmul.f32 %v1525_v11, %v1512_v13  ;;  %1856 = vmatpush.bf16.msrb.mxu3 %v2466_v41 }
 0x90d   : > { %v1541_v49 = vmul.f32 %v2561_v17, %v1536_v15 }
 0x90e   : > { %1667 = vmatpush.bf16.msrb.mxu2 %v2332_v23 }
 0x90f   : > { %v3262_v23 = vadd.f32 %v2562_v16, %v1541_v49 }
 0x912   : > { %1668 = vmatpush.bf16.msrb.mxu2 %v2324_v31  ;;  %v2479_v31 = vld [vmem:[%s3009_s22 + $0x68] sm:$0xff] }
 0x913   : > { %1865 = vmatpush.bf16.msra.mxu0 %v2479_v31 }
 0x916   : > { %1669 = vmatpush.bf16.msrb.mxu2 %v2316_v38  ;;  %v1567_v38 = vperm.slane %v1565_v35, 0 }
 0x917   : > { %1866 = vmatpush.bf16.msra.mxu0 %v2478_v33 }
 0x91a   : > { %1670 = vmatpush.bf16.msrb.mxu2 %v2308_v44 }
 0x91b   : > { %1867 = vmatpush.bf16.msra.mxu0 %v2477_v36 }
 0x91e   : > { %1671 = vmatpush.bf16.msrb.mxu2 %v2300_v53 }
 0x91f   : > { %1868 = vmatpush.bf16.msra.mxu0 %v2476_v39 }
 0x922   : > { %1672 = vmatpush.bf16.msrb.mxu2 %v2292_v58 }
 0x923   : > { %1869 = vmatpush.bf16.msra.mxu0 %v2475_v43 }
 0x927   : > { %1870 = vmatpush.bf16.msra.mxu0 %v2474_v48 }
 0x979   : > { %v1497_v61 = vpop.xlane.xlu0 %1496 }
 0x97a   : > { %v1499_v62 = vmul.f32 0.0078125, %v1497_v61 }
 0x97b   : > { %v1505_v63 = vpop.xlane.xlu1 %1504 }
 0x97c   : > { %v1509_v1 = vmul.f32 %v1499_v62, %v1499_v62  ;;  %v1507_v2 = vmul.f32 0.0078125, %v1505_v63  ;;  %v1513_v19 = vsub.f32 %v3208_v0, %v1499_v62 }
 0x97e   : > { %v1511_v4 = vsub.f32 %v1507_v2, %v1509_v1 }
 0x980   : > { %v1515_v5 = vadd.f32 1e-12, %v1511_v4 }
 0x982   : > { %2584 = vrsqrt.f32 %v1515_v5  ;;  %vm1532_vm0 = vweird.f32 %v1515_v5 }
 0x988   : > { %v2585_v8 = vpop.eup %2584 }
 0x989   : > { %v1527_v9 = vmul.f32 %v2585_v8, %v1515_v5  ;;  %vm1533_vm15 = vweird.f32 %v2585_v8 }
 0x98a   : > { %vm1534_vm1 = vmor %vm1532_vm0, %vm1533_vm15 }
 0x98b   : > { %v1528_v10 = vmul.f32 %v2585_v8, %v1527_v9 }
 0x98d   : > { %v1529_v12 = vmul.f32 0.5, %v1528_v10 }
 0x98f   : > { %v1530_v14 = vsub.f32 1.5, %v1529_v12 }
 0x991   : > { %v1531_v18 = vmul.f32 %v2585_v8, %v1530_v14 }
 0x993   : > { %v1535_v20 = vsel %vm1534_vm1, %v2585_v8, %v1531_v18 }
 0x994   : > { %v1537_v21 = vmul.f32 %v1535_v20, %v1513_v19 }
 0x996   : > { %v1542_v22 = vmul.f32 %v2561_v17, %v1537_v21 }
 0x998   : > { %v3264_v24 = vadd.f32 %v2562_v16, %v1542_v22 }
 0x99a   : > { %v1548_v0 = vpack.c.bf16 %v3264_v24, %v3262_v23 }
 0x99c   : > { %1659 = vmatmul.bf16.vlgmr.msrb.gmra.mxu1 %v1548_v0  ;;  %1673 = vmatmul.bf16.vlgmr.msrb.gmra.mxu2 %v1548_v0 }
 0xa19   : > { %v1660_v40 = vpop.f32.mrf.mxu1 }
 0xa1a   : > { %v1661_v42 = vadd.f32 %v1660_v40, %v1567_v38 }
 0xa1c   : > { %v1679_v44 = vmul.f32 %v1661_v42, %v1661_v42 }
 0xa1e   : > { %v1683_v46 = vmul.f32 %v1679_v44, %v1661_v42 }
 0xa1f   : > { %v1674_v47 = vpop.f32.mrf.mxu2 }
 0xa20   : > { %v1687_v50 = vmul.f32 0.044715, %v1683_v46  ;;  %v1675_v51 = vadd.f32 %v1674_v47, %v1568_v45 }
 0xa21   : > { %v1662_v52 = vpop.f32.mrf.mxu1 }
 0xa22   : > { %v1691_v53 = vadd.f32 %v1687_v50, %v1661_v42  ;;  %v1680_v54 = vmul.f32 %v1675_v51, %v1675_v51  ;;  %v1663_v55 = vadd.f32 %v1662_v52, %v1567_v38 }
 0xa24   : > { %v1695_v57 = vmul.f32 0.7978846, %v1691_v53  ;;  %v1684_v56 = vmul.f32 %v1680_v54, %v1675_v51  ;;  %v1681_v58 = vmul.f32 %v1663_v55, %v1663_v55 }
 0xa26   : > { %v1688_v60 = vmul.f32 0.044715, %v1684_v56  ;;  %v1685_v61 = vmul.f32 %v1681_v58, %v1663_v55  ;;  %2586 = vtanh.f32 %v1695_v57 }
 0xa27   : > { %v1676_v62 = vpop.f32.mrf.mxu2 }
 0xa28   : > { %v1692_v63 = vadd.f32 %v1688_v60, %v1675_v51  ;;  %v1689_v1 = vmul.f32 0.044715, %v1685_v61  ;;  %v1677_v2 = vadd.f32 %v1676_v62, %v1568_v45 }
 0xa2a   : > { %v1696_v3 = vmul.f32 0.7978846, %v1692_v63  ;;  %v1693_v4 = vadd.f32 %v1689_v1, %v1663_v55  ;;  %v1682_v5 = vmul.f32 %v1677_v2, %v1677_v2  ;;  %v2564_v1 = vld [vmem:[%s793_s23] ss:$0 sm:$0xff] }
 0xa2c   : > { %v1697_v6 = vmul.f32 0.7978846, %v1693_v4  ;;  %v1686_v7 = vmul.f32 %v1682_v5, %v1677_v2  ;;  %2588 = vtanh.f32 %v1696_v3  ;;  %v2587_v8 = vpop.eup %2586  ;;  %v2565_v4 = vld [vmem:[%s796_s29] ss:$0 sm:$0xff] }
 0xa2d   : > { %v1703_v10 = vadd.f32 1.0, %v2587_v8 }
 0xa2e   : > { %2590 = vtanh.f32 %v1697_v6  ;;  %v1690_v59 = vmul.f32 0.044715, %v1686_v7 }
 0xa2f   : > { %v1707_v14 = vmul.f32 0.5, %v1703_v10 }
 0xa30   : > { %v1694_v9 = vadd.f32 %v1690_v59, %v1677_v2 }
 0xa31   : > { %v1711_v19 = vmul.f32 %v1707_v14, %v1661_v42 }
 0xa32   : > { %v1698_v11 = vmul.f32 0.7978846, %v1694_v9  ;;  %v2589_v12 = vpop.eup %2588 }
 0xa33   : > { %v1704_v17 = vadd.f32 1.0, %v2589_v12 }
 0xa34   : > { %v2591_v13 = vpop.eup %2590  ;;  %2592 = vtanh.f32 %v1698_v11 }
 0xa35   : > { %v1705_v15 = vadd.f32 1.0, %v2591_v13  ;;  %v1708_v49 = vmul.f32 0.5, %v1704_v17 }
 0xa37   : > { %v1709_v18 = vmul.f32 0.5, %v1705_v15  ;;  %v1712_v25 = vmul.f32 %v1708_v49, %v1675_v51 }
 0xa39   : > { %v1713_v20 = vmul.f32 %v1709_v18, %v1663_v55 }
 0xa3a   : > { %v2593_v21 = vpop.eup %2592 }
 0xa3b   : > { %v1706_v16 = vadd.f32 1.0, %v2593_v21  ;;  %v1715_v22 = vpack.c.bf16 %v1713_v20, %v1711_v19 }
 0xa3d   : > { %v1710_v0 = vmul.f32 0.5, %v1706_v16  ;;  %1857 = vmatmul.bf16.vlgmr.msrb.gmra.mxu3 %v1715_v22 }
 0xa3f   : > { %v1714_v26 = vmul.f32 %v1710_v0, %v1677_v2 }
 0xa41   : > { %v1716_v27 = vpack.c.bf16 %v1714_v26, %v1712_v25 }
 0xa43   : > { %1871 = vmatmul.bf16.vlgmr.msra.gmra.mxu0 %v1716_v27 }
 0xac0   : > { %v1858_v29 = vpop.f32.mrf.mxu3  ;;  %v1872_v30 = vpop.f32.mrf.mxu0 }
 0xac1   : > { %v1859_v31 = vadd.f32 %v2563_v28, %v1858_v29 }
 0xac3   : > { %v1873_v32 = vadd.f32 %v1872_v30, %v1859_v31 }
 0xac5   : > { %v1877_v33 = vadd.f32 %v1873_v32, %v3262_v23 }
 0xac7   : > { %1881 = vadd.xlane.f32.xlu0 %v1877_v33  ;;  %v1887_v39 = vmul.f32 %v1877_v33, %v1877_v33 }
 0xac8   : > { %v1860_v34 = vpop.f32.mrf.mxu3  ;;  %v1874_v36 = vpop.f32.mrf.mxu0 }
 0xac9   : > { %v1861_v35 = vadd.f32 %v2563_v28, %v1860_v34 }
 0xacb   : > { %v1875_v37 = vadd.f32 %v1874_v36, %v1861_v35 }
 0xacd   : > { %v1878_v38 = vadd.f32 %v1875_v37, %v3264_v24 }
 0xacf   : > { %1883 = vadd.xlane.f32.xlu2 %v1878_v38  ;;  %1889 = vadd.xlane.f32.xlu0 %v1887_v39  ;;  %v1888_v40 = vmul.f32 %v1878_v38, %v1878_v38 }
 0xad7   : > { %1891 = vadd.xlane.f32.xlu2 %v1888_v40 }
 0xb3a   : > { %v1882_v41 = vpop.xlane.xlu0 %1881 }
 0xb3b   : > { %v1885_v42 = vmul.f32 0.0078125, %v1882_v41 }
 0xb3d   : > { %v1895_v45 = vmul.f32 %v1885_v42, %v1885_v42  ;;  %v1899_v63 = vsub.f32 %v1877_v33, %v1885_v42 }
 0xb42   : > { %v1884_v43 = vpop.xlane.xlu2 %1883  ;;  %v1890_v44 = vpop.xlane.xlu0 %1889 }
 0xb43   : > { %v1893_v46 = vmul.f32 0.0078125, %v1890_v44  ;;  %v1886_v23 = vmul.f32 0.0078125, %v1884_v43 }
 0xb45   : > { %v1897_v47 = vsub.f32 %v1893_v46, %v1895_v45  ;;  %v1896_v51 = vmul.f32 %v1886_v23, %v1886_v23  ;;  %v1900_v10 = vsub.f32 %v1878_v38, %v1886_v23 }
 0xb47   : > { %v1901_v48 = vadd.f32 1e-12, %v1897_v47 }
 0xb49   : > { %2594 = vrsqrt.f32 %v1901_v48  ;;  %vm1909_vm3 = vweird.f32 %v1901_v48 }
 0xb4a   : > { %v1892_v50 = vpop.xlane.xlu2 %1891 }
 0xb4b   : > { %v1894_v52 = vmul.f32 0.0078125, %v1892_v50 }
 0xb4d   : > { %v1898_v24 = vsub.f32 %v1894_v52, %v1896_v51 }
 0xb4f   : > { %v2595_v53 = vpop.eup %2594  ;;  %v1902_v54 = vadd.f32 1e-12, %v1898_v24 }
 0xb50   : > { %v1904_v55 = vmul.f32 %v2595_v53, %v1901_v48  ;;  %vm1910_vm2 = vweird.f32 %v2595_v53 }
 0xb51   : > { %2596 = vrsqrt.f32 %v1902_v54  ;;  %vm1911_vm4 = vmor %vm1909_vm3, %vm1910_vm2  ;;  %vm1919_vm6 = vweird.f32 %v1902_v54 }
 0xb52   : > { %v1905_v57 = vmul.f32 %v2595_v53, %v1904_v55 }
 0xb54   : > { %v1906_v56 = vmul.f32 0.5, %v1905_v57 }
 0xb56   : > { %v1907_v58 = vsub.f32 1.5, %v1906_v56 }
 0xb57   : > { %v2597_v60 = vpop.eup %2596 }
 0xb58   : > { %v1908_v61 = vmul.f32 %v2595_v53, %v1907_v58  ;;  %v1914_v62 = vmul.f32 %v2597_v60, %v1902_v54  ;;  %vm1920_vm5 = vweird.f32 %v2597_v60 }
 0xb59   : > { %vm1921_vm7 = vmor %vm1919_vm6, %vm1920_vm5 }
 0xb5a   : > { %v1912_v2 = vsel %vm1911_vm4, %v2595_v53, %v1908_v61  ;;  %v1915_v3 = vmul.f32 %v2597_v60, %v1914_v62 }
 0xb5b   : > { %v1923_v5 = vmul.f32 %v1912_v2, %v1899_v63 }
 0xb5c   : > { %v1916_v6 = vmul.f32 0.5, %v1915_v3 }
 0xb5d   : > { %v1928_v7 = vmul.f32 %v2564_v1, %v1923_v5 }
 0xb5e   : > { %v1917_v8 = vsub.f32 1.5, %v1916_v6 }
 0xb5f   : > { %v1933_v59 = vadd.f32 %v2565_v4, %v1928_v7 }
 0xb60   : > { %v1918_v9 = vmul.f32 %v2597_v60, %v1917_v8 }
 0xb61   : > { %1935 = vst [vmem:[#allocation2] sm:$0xff] %v1933_v59 }
 0xb62   : > { %1937 = vst [vmem:[%s3389_s18] sm:$0xff] %v1933_v59  ;;  %v1922_v11 = vsel %vm1921_vm7, %v2597_v60, %v1918_v9 }
 0xb63   : > { %v1924_v12 = vmul.f32 %v1922_v11, %v1900_v10 }
 0xb65   : > { %v1929_v13 = vmul.f32 %v2564_v1, %v1924_v12 }
 0xb67   : > { %v1934_v14 = vadd.f32 %v2565_v4, %v1929_v13 }
 0xb69   : > { %1936 = vst [vmem:[#allocation2 + $0x8] sm:$0xff] %v1934_v14 }
 0xb6a   : > { %1938 = vst [vmem:[%s3389_s18 + $0x8] sm:$0xff] %v1934_v14 }
 0xb6b PF: > { %s3390_s27 = sld [smem:[#allocation14_spill]]  ;;  %s3393_s24 = smov %s2752_s25 }
 0xb6c   : > { %s3391_s21 = sld [smem:[#allocation13_spill]] }
 0xb6d   : > { %s3392_s26 = sld [smem:[#allocation15_spill]] }
 0xb71   : > { %p33_p10 = scmp.ge.s32.totalorder %s3390_s27, 4  }
 0xb72   : > { %s3394_s25 = smov %s3391_s21 }
 0xb73   :  { %35 = sbr.rel (!%p33_p10) target bundleno = 22 (0x16), region = 189 }
 0xb78   :  { %1950 = vsyncpa [#allocation4], 1 }
 0xb79   :  { %1952 = vsyncpa [#allocation4 + $0x1], 1 }
 0xb7a   :  { %1953 = vsyncpa [#allocation6], 1 }
 0xb7b   :  { %1955 = vsyncpa [#allocation6 + $0x1], 1 }
 0xb7c   :  { %1956 = vsyncpa [#allocation9], 1 }
 0xb7d   :  { %1958 = vsyncpa [#allocation9 + $0x1], 1 }

// kernel: bert_lstm_forward.3
= control target key start
LH: loop header
LB: loop body
LE: loop exit
PB: predicated region body
PF: predicated region fallthrough
CT: control target
= control target key end

     0   :  { %9 = vsyncpa [#allocation4], 0  ;;  %s4898_s0 = inlined_call_operand.vmem [shape: f32[64,128], index: 0, kind: input, shape index: {}]   ;;  %s4899_s1 = inlined_call_operand.hbm [shape: bf16[128,512], index: 1, kind: input, shape index: {}]   ;;  %s4900_s2 = inlined_call_operand.hbm [shape: bf16[128,512], index: 2, kind: input, shape index: {}]   ;;  %s4901_s3 = inlined_call_operand.vmem [shape: f32[1,512], index: 3, kind: input, shape index: {}]   ;;  %s4902_s4 = inlined_call_operand.vmem [shape: f32[64,128], index: 4, kind: output, shape index: {}]  }
   0x1   :  { %s17_s17 = sshll.u32 %s4899_s1, 4  ;;  %s18_s17 = int_to_ptr.hbm [resolvable:$true] %s17_s17 }
   0x2   :  { %10 = vsyncpa [#allocation6], 0  ;;  %s4647_s18 = smov [#allocation3]   ;;  %s30_s22 = sshll.u32 %s4900_s2, 4  ;;  %s31_s22 = int_to_ptr.hbm [resolvable:$true] %s30_s22 }
   0x3   :  { %s19_s19 = sshll.u32 %s4647_s18, 4  ;;  %s4648_s23 = smov 256   ;;  %s20_s19 = int_to_ptr.vmem [resolvable:$true] %s19_s19 }
   0x4   :  { %s4649_s24 = smov 16   ;;  %s4650_s25 = smov [#allocation5]  }
   0x5   :  { %25 = dma.hbm_to_vmem [thread:$0]  %s18_s17, 4096, %s20_s19, [#allocation4], %s4648_s23, %s4648_s23, %s4649_s24  }
   0x6   :  { %s32_s26 = sshll.u32 %s4650_s25, 4  ;;  %s33_s26 = int_to_ptr.vmem [resolvable:$true] %s32_s26 }
   0x7   :  { %38 = dma.hbm_to_vmem [thread:$0]  %s31_s22, 4096, %s33_s26, [#allocation6], %s4648_s23, %s4648_s23, %s4649_s24  }
   0x8   :  { %4643 = dma.done.wait [#allocation4], 4096  }
   0x9   :  { %4644 = vsyncadd [#allocation4], 4294963200 }
   0xa   :  { %4645 = dma.done.wait [#allocation6], 4096  }
   0xb   :  { %4646 = vsyncadd [#allocation6], 4294963200  ;;  %v3105_v0 = vld [vmem:[#allocation3 + $0xe0] sm:$0xf]  ;;  %v4204_v1 = vld [vmem:[#allocation3 + $0xec] sm:$0xf0] }
   0xc   :  { %v4202_v2 = vld [vmem:[#allocation3 + $0xe4] sm:$0xf]  ;;  %v3106_v3 = vor.u32 %v4204_v1, %v3105_v0  ;;  %v3107_v4 = vld [vmem:[#allocation3 + $0xf0] sm:$0xf0]  ;;  %v3113_v5 = vld [vmem:[#allocation3 + $0xe8] sm:$0xf] }
   0xd   :  { %v4205_v6 = vld [vmem:[#allocation3 + $0xf4] sm:$0xf0]  ;;  %v3110_v7 = vor.u32 %v4202_v2, %v3107_v4  ;;  %v4203_v9 = vld [vmem:[#allocation3 + $0xec] sm:$0xf]  ;;  %v3115_v10 = vld [vmem:[#allocation3 + $0xf8] sm:$0xf0] }
   0xe   :  { %v3114_v8 = vor.u32 %v4205_v6, %v3113_v5  ;;  %v3089_v11 = vld [vmem:[#allocation3 + $0xc0] sm:$0xf]  ;;  %264 = vmatpush.bf16.msra.mxu0 %v3106_v3  ;;  %v3118_v12 = vor.u32 %v4203_v9, %v3115_v10  ;;  %v4200_v13 = vld [vmem:[#allocation3 + $0xcc] sm:$0xf0]  ;;  %v4198_v14 = vld [vmem:[#allocation3 + $0xc4] sm:$0xf] }
   0xf   :  { %v3091_v15 = vld [vmem:[#allocation3 + $0xd0] sm:$0xf0]  ;;  %293 = vmatpush.bf16.msra.mxu1 %v3110_v7  ;;  %v3090_v16 = vor.u32 %v4200_v13, %v3089_v11  ;;  %v3097_v18 = vld [vmem:[#allocation3 + $0xc8] sm:$0xf]  ;;  %v4201_v19 = vld [vmem:[#allocation3 + $0xd4] sm:$0xf0] }
  0x10   :  { %322 = vmatpush.bf16.msra.mxu2 %v3114_v8  ;;  %v3094_v17 = vor.u32 %v4198_v14, %v3091_v15  ;;  %v4199_v20 = vld [vmem:[#allocation3 + $0xcc] sm:$0xf]  ;;  %351 = vmatpush.bf16.msra.mxu3 %v3118_v12  ;;  %v3098_v21 = vor.u32 %v4201_v19, %v3097_v18  ;;  %v3099_v22 = vld [vmem:[#allocation3 + $0xd8] sm:$0xf0]  ;;  %v3073_v23 = vld [vmem:[#allocation3 + $0xa0] sm:$0xf] }
  0x11   :  { %v4196_v24 = vld [vmem:[#allocation3 + $0xac] sm:$0xf0]  ;;  %v3102_v25 = vor.u32 %v4199_v20, %v3099_v22  ;;  %v4194_v26 = vld [vmem:[#allocation3 + $0xa4] sm:$0xf]  ;;  %v3075_v27 = vld [vmem:[#allocation3 + $0xb0] sm:$0xf0] }
  0x12   :  { %v3081_v28 = vld [vmem:[#allocation3 + $0xa8] sm:$0xf]  ;;  %265 = vmatpush.bf16.msra.mxu0 %v3090_v16  ;;  %v3074_v29 = vor.u32 %v4196_v24, %v3073_v23  ;;  %v4197_v30 = vld [vmem:[#allocation3 + $0xb4] sm:$0xf0]  ;;  %v4195_v31 = vld [vmem:[#allocation3 + $0xac] sm:$0xf]  ;;  %v3078_v33 = vor.u32 %v4194_v26, %v3075_v27 }
  0x13   :  { %v3083_v32 = vld [vmem:[#allocation3 + $0xb8] sm:$0xf0]  ;;  %294 = vmatpush.bf16.msra.mxu1 %v3094_v17  ;;  %v3082_v34 = vor.u32 %v4197_v30, %v3081_v28  ;;  %v3057_v35 = vld [vmem:[#allocation3 + $0x80] sm:$0xf]  ;;  %v4192_v36 = vld [vmem:[#allocation3 + $0x8c] sm:$0xf0] }
  0x14   :  { %323 = vmatpush.bf16.msra.mxu2 %v3098_v21  ;;  %v4190_v37 = vld [vmem:[#allocation3 + $0x84] sm:$0xf]  ;;  %352 = vmatpush.bf16.msra.mxu3 %v3102_v25  ;;  %v3086_v38 = vor.u32 %v4195_v31, %v3083_v32  ;;  %v3059_v39 = vld [vmem:[#allocation3 + $0x90] sm:$0xf0]  ;;  %v3065_v40 = vld [vmem:[#allocation3 + $0x88] sm:$0xf]  ;;  %v3058_v44 = vor.u32 %v4192_v36, %v3057_v35 }
  0x15   :  { %v4193_v41 = vld [vmem:[#allocation3 + $0x94] sm:$0xf0]  ;;  %v4191_v42 = vld [vmem:[#allocation3 + $0x8c] sm:$0xf]  ;;  %v3067_v43 = vld [vmem:[#allocation3 + $0x98] sm:$0xf0]  ;;  %v3062_v45 = vor.u32 %v4190_v37, %v3059_v39 }
  0x16   :  { %266 = vmatpush.bf16.msra.mxu0 %v3074_v29  ;;  %v3066_v46 = vor.u32 %v4193_v41, %v3065_v40  ;;  %v3041_v47 = vld [vmem:[#allocation3 + $0x60] sm:$0xf]  ;;  %v4188_v48 = vld [vmem:[#allocation3 + $0x6c] sm:$0xf0]  ;;  %v4186_v49 = vld [vmem:[#allocation3 + $0x64] sm:$0xf]  ;;  %v3070_v50 = vor.u32 %v4191_v42, %v3067_v43 }
  0x17   :  { %295 = vmatpush.bf16.msra.mxu1 %v3078_v33  ;;  %v3043_v51 = vld [vmem:[#allocation3 + $0x70] sm:$0xf0]  ;;  %v3049_v52 = vld [vmem:[#allocation3 + $0x68] sm:$0xf]  ;;  %v4189_v53 = vld [vmem:[#allocation3 + $0x74] sm:$0xf0]  ;;  %v3042_v56 = vor.u32 %v4188_v48, %v3041_v47 }
  0x18   :  { %324 = vmatpush.bf16.msra.mxu2 %v3082_v34  ;;  %353 = vmatpush.bf16.msra.mxu3 %v3086_v38  ;;  %v4187_v54 = vld [vmem:[#allocation3 + $0x6c] sm:$0xf]  ;;  %v3051_v55 = vld [vmem:[#allocation3 + $0x78] sm:$0xf0]  ;;  %v3046_v57 = vor.u32 %v4186_v49, %v3043_v51  ;;  %v3050_v58 = vor.u32 %v4189_v53, %v3049_v52  ;;  %v3025_v59 = vld [vmem:[#allocation3 + $0x40] sm:$0xf] }
  0x19   :  { %v4184_v60 = vld [vmem:[#allocation3 + $0x4c] sm:$0xf0]  ;;  %v4182_v61 = vld [vmem:[#allocation3 + $0x44] sm:$0xf]  ;;  %v3054_v62 = vor.u32 %v4187_v54, %v3051_v55  ;;  %v3027_v63 = vld [vmem:[#allocation3 + $0x50] sm:$0xf0] }
  0x1a   :  { %267 = vmatpush.bf16.msra.mxu0 %v3058_v44  ;;  %v3033_v0 = vld [vmem:[#allocation3 + $0x48] sm:$0xf]  ;;  %v4185_v1 = vld [vmem:[#allocation3 + $0x54] sm:$0xf0]  ;;  %v4183_v2 = vld [vmem:[#allocation3 + $0x4c] sm:$0xf]  ;;  %v3026_v4 = vor.u32 %v4184_v60, %v3025_v59  ;;  %v3030_v5 = vor.u32 %v4182_v61, %v3027_v63 }
  0x1b   :  { %296 = vmatpush.bf16.msra.mxu1 %v3062_v45  ;;  %v3035_v3 = vld [vmem:[#allocation3 + $0x58] sm:$0xf0]  ;;  %v3034_v6 = vor.u32 %v4185_v1, %v3033_v0  ;;  %v3009_v7 = vld [vmem:[#allocation3 + $0x20] sm:$0xf]  ;;  %v4180_v8 = vld [vmem:[#allocation3 + $0x2c] sm:$0xf0] }
  0x1c   :  { %325 = vmatpush.bf16.msra.mxu2 %v3066_v46  ;;  %354 = vmatpush.bf16.msra.mxu3 %v3070_v50  ;;  %v4178_v9 = vld [vmem:[#allocation3 + $0x24] sm:$0xf]  ;;  %v3038_v10 = vor.u32 %v4183_v2, %v3035_v3  ;;  %v3011_v11 = vld [vmem:[#allocation3 + $0x30] sm:$0xf0]  ;;  %v3017_v12 = vld [vmem:[#allocation3 + $0x28] sm:$0xf]  ;;  %v3010_v16 = vor.u32 %v4180_v8, %v3009_v7 }
  0x1d   :  { %v4181_v13 = vld [vmem:[#allocation3 + $0x34] sm:$0xf0]  ;;  %v4179_v14 = vld [vmem:[#allocation3 + $0x2c] sm:$0xf]  ;;  %v3019_v15 = vld [vmem:[#allocation3 + $0x38] sm:$0xf0]  ;;  %v3014_v19 = vor.u32 %v4178_v9, %v3011_v11 }
  0x1e   :  { %268 = vmatpush.bf16.msra.mxu0 %v3042_v56  ;;  %v2993_v17 = vld [vmem:[#allocation3] sm:$0xf]  ;;  %v4176_v18 = vld [vmem:[#allocation3 + $0xc] sm:$0xf0]  ;;  %v3018_v20 = vor.u32 %v4181_v13, %v3017_v12  ;;  %v4174_v21 = vld [vmem:[#allocation3 + $0x4] sm:$0xf]  ;;  %v3022_v24 = vor.u32 %v4179_v14, %v3019_v15 }
  0x1f   :  { %297 = vmatpush.bf16.msra.mxu1 %v3046_v57  ;;  %v2995_v22 = vld [vmem:[#allocation3 + $0x10] sm:$0xf0]  ;;  %v3001_v23 = vld [vmem:[#allocation3 + $0x8] sm:$0xf]  ;;  %v4177_v25 = vld [vmem:[#allocation3 + $0x14] sm:$0xf0]  ;;  %v2994_v31 = vor.u32 %v4176_v18, %v2993_v17 }
  0x20   :  { %326 = vmatpush.bf16.msra.mxu2 %v3050_v58  ;;  %355 = vmatpush.bf16.msra.mxu3 %v3054_v62  ;;  %v4175_v26 = vld [vmem:[#allocation3 + $0xc] sm:$0xf]  ;;  %v3003_v27 = vld [vmem:[#allocation3 + $0x18] sm:$0xf0]  ;;  %v50_v28 = vld [vmem:[%s4898_s0] sm:$0xff]  ;;  %v2998_v35 = vor.u32 %v4174_v21, %v2995_v22  ;;  %v3002_v36 = vor.u32 %v4177_v25, %v3001_v23 }
  0x21   :  { %v3233_v29 = vld [vmem:[#allocation5 + $0xe0] sm:$0xf]  ;;  %v4236_v30 = vld [vmem:[#allocation5 + $0xec] sm:$0xf0]  ;;  %v51_v32 = vld [vmem:[%s4898_s0 + $0x8] sm:$0xff]  ;;  %v3006_v37 = vor.u32 %v4175_v26, %v3003_v27 }
  0x22   :  { %269 = vmatpush.bf16.msra.mxu0 %v3026_v4  ;;  %v4234_v33 = vld [vmem:[#allocation5 + $0xe4] sm:$0xf]  ;;  %v3235_v34 = vld [vmem:[#allocation5 + $0xf0] sm:$0xf0]  ;;  %v3234_v38 = vor.u32 %v4236_v30, %v3233_v29  ;;  %v3241_v39 = vld [vmem:[#allocation5 + $0xe8] sm:$0xf]  ;;  %v58_v42 = vpack.c.bf16 %v51_v32, %v50_v28 }
  0x23   :  { %298 = vmatpush.bf16.msra.mxu1 %v3030_v5  ;;  %v4237_v40 = vld [vmem:[#allocation5 + $0xf4] sm:$0xf0]  ;;  %v3217_v41 = vld [vmem:[#allocation5 + $0xc0] sm:$0xf]  ;;  %v3238_v43 = vor.u32 %v4234_v33, %v3235_v34  ;;  %v4232_v44 = vld [vmem:[#allocation5 + $0xcc] sm:$0xf0] }
  0x24   :  { %327 = vmatpush.bf16.msra.mxu2 %v3034_v6  ;;  %356 = vmatpush.bf16.msra.mxu3 %v3038_v10  ;;  %v4235_v45 = vld [vmem:[#allocation5 + $0xec] sm:$0xf]  ;;  %v3243_v46 = vld [vmem:[#allocation5 + $0xf8] sm:$0xf0]  ;;  %v4230_v47 = vld [vmem:[#allocation5 + $0xc4] sm:$0xf]  ;;  %v3242_v49 = vor.u32 %v4237_v40, %v3241_v39  ;;  %v3218_v50 = vor.u32 %v4232_v44, %v3217_v41 }
  0x25   :  { %v3219_v48 = vld [vmem:[#allocation5 + $0xd0] sm:$0xf0]  ;;  %v3225_v51 = vld [vmem:[#allocation5 + $0xc8] sm:$0xf]  ;;  %v4233_v52 = vld [vmem:[#allocation5 + $0xd4] sm:$0xf0]  ;;  %v3246_v53 = vor.u32 %v4235_v45, %v3243_v46 }
  0x26   :  { %270 = vmatpush.bf16.msra.mxu0 %v3010_v16  ;;  %v3201_v54 = vld [vmem:[#allocation5 + $0xa0] sm:$0xf]  ;;  %v3222_v55 = vor.u32 %v4230_v47, %v3219_v48  ;;  %v4228_v56 = vld [vmem:[#allocation5 + $0xac] sm:$0xf0]  ;;  %v4231_v57 = vld [vmem:[#allocation5 + $0xcc] sm:$0xf]  ;;  %v3226_v61 = vor.u32 %v4233_v52, %v3225_v51 }
  0x27   :  { %299 = vmatpush.bf16.msra.mxu1 %v3014_v19  ;;  %v3227_v58 = vld [vmem:[#allocation5 + $0xd8] sm:$0xf0]  ;;  %v4226_v59 = vld [vmem:[#allocation5 + $0xa4] sm:$0xf]  ;;  %v3203_v60 = vld [vmem:[#allocation5 + $0xb0] sm:$0xf0]  ;;  %v3202_v62 = vor.u32 %v4228_v56, %v3201_v54 }
  0x28   :  { %328 = vmatpush.bf16.msra.mxu2 %v3018_v20  ;;  %357 = vmatpush.bf16.msra.mxu3 %v3022_v24  ;;  %v3209_v63 = vld [vmem:[#allocation5 + $0xa8] sm:$0xf]  ;;  %v4229_v0 = vld [vmem:[#allocation5 + $0xb4] sm:$0xf0]  ;;  %v3230_v1 = vor.u32 %v4231_v57, %v3227_v58  ;;  %v3185_v2 = vld [vmem:[#allocation5 + $0x80] sm:$0xf]  ;;  %v3206_v3 = vor.u32 %v4226_v59, %v3203_v60 }
  0x29   :  { %v4224_v4 = vld [vmem:[#allocation5 + $0x8c] sm:$0xf0]  ;;  %v4227_v5 = vld [vmem:[#allocation5 + $0xac] sm:$0xf]  ;;  %v3211_v6 = vld [vmem:[#allocation5 + $0xb8] sm:$0xf0]  ;;  %v3210_v9 = vor.u32 %v4229_v0, %v3209_v63 }
  0x2a   :  { %271 = vmatpush.bf16.msra.mxu0 %v2994_v31  ;;  %v4222_v7 = vld [vmem:[#allocation5 + $0x84] sm:$0xf]  ;;  %v3187_v8 = vld [vmem:[#allocation5 + $0x90] sm:$0xf0]  ;;  %v3186_v11 = vor.u32 %v4224_v4, %v3185_v2  ;;  %v3193_v12 = vld [vmem:[#allocation5 + $0x88] sm:$0xf]  ;;  %v3214_v14 = vor.u32 %v4227_v5, %v3211_v6 }
  0x2b   :  { %300 = vmatpush.bf16.msra.mxu1 %v2998_v35  ;;  %v52_v10 = vld [vmem:[%s4898_s0 + $0x10] sm:$0xff]  ;;  %v4225_v13 = vld [vmem:[#allocation5 + $0x94] sm:$0xf0]  ;;  %v3169_v15 = vld [vmem:[#allocation5 + $0x60] sm:$0xf]  ;;  %v3190_v16 = vor.u32 %v4222_v7, %v3187_v8 }
  0x2c   :  { %329 = vmatpush.bf16.msra.mxu2 %v3002_v36  ;;  %358 = vmatpush.bf16.msra.mxu3 %v3006_v37  ;;  %v4220_v17 = vld [vmem:[#allocation5 + $0x6c] sm:$0xf0]  ;;  %v4223_v18 = vld [vmem:[#allocation5 + $0x8c] sm:$0xf]  ;;  %v3195_v19 = vld [vmem:[#allocation5 + $0x98] sm:$0xf0]  ;;  %v3194_v23 = vor.u32 %v4225_v13, %v3193_v12 }
  0x2d   :  { %272 = vmatmul.bf16.vlgmr.msra.gmra.mxu0 %v58_v42  ;;  %v53_v20 = vld [vmem:[%s4898_s0 + $0x18] sm:$0xff]  ;;  %v4218_v21 = vld [vmem:[#allocation5 + $0x64] sm:$0xf]  ;;  %v3171_v22 = vld [vmem:[#allocation5 + $0x70] sm:$0xf0]  ;;  %v3170_v24 = vor.u32 %v4220_v17, %v3169_v15  ;;  %v3198_v27 = vor.u32 %v4223_v18, %v3195_v19  ;;  %v4651_v12 = vmov 0  }
  0x2e   :  { %611 = vmatpush.bf16.msrb.mxu0 %v3234_v38  ;;  %301 = vmatmul.bf16.vlgmr.msra.gmra.mxu1 %v58_v42  ;;  %v3177_v25 = vld [vmem:[#allocation5 + $0x68] sm:$0xf]  ;;  %v4221_v26 = vld [vmem:[#allocation5 + $0x74] sm:$0xf0]  ;;  %v3153_v28 = vld [vmem:[#allocation5 + $0x40] sm:$0xf]  ;;  %v59_v29 = vpack.c.bf16 %v53_v20, %v52_v10  ;;  %v3174_v30 = vor.u32 %v4218_v21, %v3171_v22 }
  0x2f   :  { %624 = vmatpush.bf16.msrb.mxu1 %v3238_v43  ;;  %330 = vmatmul.bf16.vlgmr.msra.gmra.mxu2 %v58_v42  ;;  %v4216_v31 = vld [vmem:[#allocation5 + $0x4c] sm:$0xf0]  ;;  %v4219_v32 = vld [vmem:[#allocation5 + $0x6c] sm:$0xf]  ;;  %v3179_v33 = vld [vmem:[#allocation5 + $0x78] sm:$0xf0]  ;;  %v3178_v36 = vor.u32 %v4221_v26, %v3177_v25 }
  0x30   :  { %359 = vmatmul.bf16.vlgmr.msra.gmra.mxu3 %v58_v42  ;;  %637 = vmatpush.bf16.msrb.mxu2 %v3242_v49  ;;  %v4214_v34 = vld [vmem:[#allocation5 + $0x44] sm:$0xf]  ;;  %v3155_v35 = vld [vmem:[#allocation5 + $0x50] sm:$0xf0]  ;;  %v3154_v37 = vor.u32 %v4216_v31, %v3153_v28  ;;  %v3161_v38 = vld [vmem:[#allocation5 + $0x48] sm:$0xf]  ;;  %v3182_v40 = vor.u32 %v4219_v32, %v3179_v33 }
  0x31   :  { %650 = vmatpush.bf16.msrb.mxu3 %v3246_v53  ;;  %v4217_v39 = vld [vmem:[#allocation5 + $0x54] sm:$0xf0]  ;;  %v3158_v41 = vor.u32 %v4214_v34, %v3155_v35  ;;  %v3137_v43 = vld [vmem:[#allocation5 + $0x20] sm:$0xf]  ;;  %v4212_v44 = vld [vmem:[#allocation5 + $0x2c] sm:$0xf0] }
  0x32   :  { %612 = vmatpush.bf16.msrb.mxu0 %v3218_v50  ;;  %v3162_v42 = vor.u32 %v4217_v39, %v3161_v38  ;;  %v4210_v45 = vld [vmem:[#allocation5 + $0x24] sm:$0xf]  ;;  %v3138_v46 = vor.u32 %v4212_v44, %v3137_v43  ;;  %v3139_v47 = vld [vmem:[#allocation5 + $0x30] sm:$0xf0]  ;;  %v3145_v48 = vld [vmem:[#allocation5 + $0x28] sm:$0xf] }
  0x33   :  { %625 = vmatpush.bf16.msrb.mxu1 %v3222_v55  ;;  %v4213_v49 = vld [vmem:[#allocation5 + $0x34] sm:$0xf0]  ;;  %v3142_v50 = vor.u32 %v4210_v45, %v3139_v47  ;;  %v4215_v51 = vld [vmem:[#allocation5 + $0x4c] sm:$0xf]  ;;  %v3163_v52 = vld [vmem:[#allocation5 + $0x58] sm:$0xf0] }
  0x34   :  { %638 = vmatpush.bf16.msrb.mxu2 %v3226_v61  ;;  %v3121_v53 = vld [vmem:[#allocation5] sm:$0xf]  ;;  %v3166_v54 = vor.u32 %v4215_v51, %v3163_v52  ;;  %v4208_v55 = vld [vmem:[#allocation5 + $0xc] sm:$0xf0]  ;;  %v4206_v56 = vld [vmem:[#allocation5 + $0x4] sm:$0xf]  ;;  %v3146_v58 = vor.u32 %v4213_v49, %v3145_v48 }
  0x35   :  { %651 = vmatpush.bf16.msrb.mxu3 %v3230_v1  ;;  %v3123_v57 = vld [vmem:[#allocation5 + $0x10] sm:$0xf0]  ;;  %v4211_v59 = vld [vmem:[#allocation5 + $0x2c] sm:$0xf]  ;;  %v3147_v60 = vld [vmem:[#allocation5 + $0x38] sm:$0xf0]  ;;  %v3122_v61 = vor.u32 %v4208_v55, %v3121_v53 }
  0x36   :  { %613 = vmatpush.bf16.msrb.mxu0 %v3202_v62  ;;  %v3150_v62 = vor.u32 %v4211_v59, %v3147_v60  ;;  %v3129_v63 = vld [vmem:[#allocation5 + $0x8] sm:$0xf]  ;;  %v4209_v0 = vld [vmem:[#allocation5 + $0x14] sm:$0xf0]  ;;  %v3126_v1 = vor.u32 %v4206_v56, %v3123_v57  ;;  %v4207_v2 = vld [vmem:[#allocation5 + $0xc] sm:$0xf] }
  0x37   :  { %626 = vmatpush.bf16.msrb.mxu1 %v3206_v3  ;;  %v3131_v3 = vld [vmem:[#allocation5 + $0x18] sm:$0xf0]  ;;  %v54_v4 = vld [vmem:[%s4898_s0 + $0x20] sm:$0xff]  ;;  %v55_v5 = vld [vmem:[%s4898_s0 + $0x28] sm:$0xff]  ;;  %v3130_v6 = vor.u32 %v4209_v0, %v3129_v63 }
  0x38   :  { %639 = vmatpush.bf16.msrb.mxu2 %v3210_v9  ;;  %v3134_v7 = vor.u32 %v4207_v2, %v3131_v3  ;;  %v60_v8 = vpack.c.bf16 %v55_v5, %v54_v4  ;;  %v56_v9 = vld [vmem:[%s4898_s0 + $0x30] sm:$0xff]  ;;  %v57_v10 = vld [vmem:[%s4898_s0 + $0x38] sm:$0xff]  ;;  %v94_v15 = vld [vmem:[%s4901_s3] sm:$0xf] }
  0x39   :  { %652 = vmatpush.bf16.msrb.mxu3 %v3214_v14  ;;  %v4718_v18 = vperm.slane %v94_v15, 1  ;;  %v4730_v25 = vperm.slane %v94_v15, 2  ;;  %v4268_v59 = vld [vmem:[#allocation5 + $0xec] sm:$0xf0]  ;;  %v4266_v60 = vld [vmem:[#allocation5 + $0xe4] sm:$0xf] }
  0x3a   :  { %614 = vmatpush.bf16.msrb.mxu0 %v3186_v11  ;;  %v61_v11 = vpack.c.bf16 %v57_v10, %v56_v9  ;;  %v3366_v63 = vld [vmem:[#allocation5 + $0xf0] sm:$0xf0]  ;;  %v3372_v0 = vld [vmem:[#allocation5 + $0xe8] sm:$0xf] }
  0x3b   :  { %627 = vmatpush.bf16.msrb.mxu1 %v3190_v16  ;;  %v4714_v16 = vperm.slane %v94_v15, 0  ;;  %v3369_v5 = vor.u32 %v4266_v60, %v3366_v63 }
  0x3c   :  { %640 = vmatpush.bf16.msrb.mxu2 %v3194_v23 }
  0x3d   :  { %653 = vmatpush.bf16.msrb.mxu3 %v3198_v27  ;;  %277 = vmatmul.bf16.gmra.mxu0 %v59_v29 }
  0x3e   :  { %615 = vmatpush.bf16.msrb.mxu0 %v3170_v24  ;;  %306 = vmatmul.bf16.gmra.mxu1 %v59_v29  ;;  %v4728_v24 = vperm.slane %v94_v15, 3 }
  0x3f   :  { %628 = vmatpush.bf16.msrb.mxu1 %v3174_v30  ;;  %335 = vmatmul.bf16.gmra.mxu2 %v59_v29 }
  0x40   :  { %364 = vmatmul.bf16.gmra.mxu3 %v59_v29  ;;  %641 = vmatpush.bf16.msrb.mxu2 %v3178_v36 }
  0x41   :  { %654 = vmatpush.bf16.msrb.mxu3 %v3182_v40 }
  0x42   :  { %616 = vmatpush.bf16.msrb.mxu0 %v3154_v37 }
  0x43   :  { %629 = vmatpush.bf16.msrb.mxu1 %v3158_v41 }
  0x44   :  { %642 = vmatpush.bf16.msrb.mxu2 %v3162_v42 }
  0x45   :  { %655 = vmatpush.bf16.msrb.mxu3 %v3166_v54 }
  0x46   :  { %617 = vmatpush.bf16.msrb.mxu0 %v3138_v46 }
  0x47   :  { %630 = vmatpush.bf16.msrb.mxu1 %v3142_v50 }
  0x48   :  { %643 = vmatpush.bf16.msrb.mxu2 %v3146_v58  ;;  %v3364_v58 = vld [vmem:[#allocation5 + $0xe0] sm:$0xf] }
  0x49   :  { %656 = vmatpush.bf16.msrb.mxu3 %v3150_v62  ;;  %v3365_v62 = vor.u32 %v4268_v59, %v3364_v58  ;;  %v3340_v58 = vld [vmem:[#allocation5 + $0xa8] sm:$0xf]  ;;  %v4261_v59 = vld [vmem:[#allocation5 + $0xb4] sm:$0xf0] }
  0x4a   :  { %618 = vmatpush.bf16.msrb.mxu0 %v3122_v61 }
  0x4b   :  { %631 = vmatpush.bf16.msrb.mxu1 %v3126_v1  ;;  %v4269_v1 = vld [vmem:[#allocation5 + $0xf4] sm:$0xf0] }
  0x4c   :  { %644 = vmatpush.bf16.msrb.mxu2 %v3130_v6  ;;  %v3373_v6 = vor.u32 %v4269_v1, %v3372_v0  ;;  %v3341_v0 = vor.u32 %v4261_v59, %v3340_v58  ;;  %v4259_v1 = vld [vmem:[#allocation5 + $0xac] sm:$0xf]  ;;  %v4253_v58 = vld [vmem:[#allocation5 + $0x74] sm:$0xf0] }
  0x4d   :  { %657 = vmatpush.bf16.msrb.mxu3 %v3134_v7  ;;  %282 = vmatmul.bf16.gmra.mxu0 %v60_v8  ;;  %v4267_v7 = vld [vmem:[#allocation5 + $0xec] sm:$0xf] }
  0x4e   :  { %311 = vmatmul.bf16.gmra.mxu1 %v60_v8  ;;  %931 = vmatpush.bf16.msra.mxu0 %v3365_v62 }
  0x4f   :  { %340 = vmatmul.bf16.gmra.mxu2 %v60_v8  ;;  %944 = vmatpush.bf16.msra.mxu1 %v3369_v5 }
  0x50   :  { %369 = vmatmul.bf16.gmra.mxu3 %v60_v8  ;;  %v3374_v8 = vld [vmem:[#allocation5 + $0xf8] sm:$0xf0]  ;;  %957 = vmatpush.bf16.msra.mxu2 %v3373_v6 }
  0x5d   :  { %287 = vmatmul.bf16.gmra.mxu0 %v61_v11 }
  0x5e   :  { %316 = vmatmul.bf16.gmra.mxu1 %v61_v11 }
  0x5f   :  { %345 = vmatmul.bf16.gmra.mxu2 %v61_v11 }
  0x60   :  { %374 = vmatmul.bf16.gmra.mxu3 %v61_v11 }
  0x6d   :  { %619 = vmatmul.bf16.vlgmr.msrb.gmra.mxu0 %v4651_v12 }
  0x6e   :  { %632 = vmatmul.bf16.vlgmr.msrb.gmra.mxu1 %v4651_v12 }
  0x6f   :  { %645 = vmatmul.bf16.vlgmr.msrb.gmra.mxu2 %v4651_v12 }
  0x70   :  { %658 = vmatmul.bf16.vlgmr.msrb.gmra.mxu3 %v4651_v12  ;;  %v3377_v12 = vor.u32 %v4267_v7, %v3374_v8 }
  0x72   :  { %970 = vmatpush.bf16.msra.mxu3 %v3377_v12  ;;  %v4256_v12 = vld [vmem:[#allocation5 + $0x8c] sm:$0xf0] }
  0xaa   :  { %v4707_v13 = vpop.f32.mrf.mxu0 }
  0xab   :  { %v4709_v14 = vpop.f32.mrf.mxu1 }
  0xac   :  { %v303_v59 = vadd.f32 %v4709_v14, %v4718_v18  ;;  %v3284_v14 = vld [vmem:[#allocation5 + $0x40] sm:$0xf] }
  0xb2   :  { %v4716_v17 = vpop.f32.mrf.mxu2  ;;  %v275_v20 = vpop.f32.mrf.mxu0 }
  0xb3   :  { %v4720_v19 = vpop.f32.mrf.mxu3  ;;  %v4723_v21 = vadd.f32 %v275_v20, %v4714_v16  ;;  %v304_v22 = vpop.f32.mrf.mxu1  ;;  %v3348_v20 = vld [vmem:[#allocation5 + $0xc0] sm:$0xf] }
  0xb4   :  { %v4726_v23 = vadd.f32 %v304_v22, %v4718_v18  ;;  %v4264_v22 = vld [vmem:[#allocation5 + $0xcc] sm:$0xf0] }
  0xba   :  { %v333_v26 = vpop.f32.mrf.mxu2  ;;  %v278_v29 = vpop.f32.mrf.mxu0 }
  0xbb   :  { %v4733_v27 = vadd.f32 %v333_v26, %v4730_v25  ;;  %v362_v28 = vpop.f32.mrf.mxu3  ;;  %v4739_v31 = vadd.f32 %v278_v29, %v4714_v16  ;;  %v307_v32 = vpop.f32.mrf.mxu1  ;;  %v4262_v26 = vld [vmem:[#allocation5 + $0xc4] sm:$0xf]  ;;  %v3350_v29 = vld [vmem:[#allocation5 + $0xd0] sm:$0xf0] }
  0xbc   :  { %v4736_v30 = vadd.f32 %v362_v28, %v4728_v24  ;;  %v4742_v33 = vadd.f32 %v307_v32, %v4718_v18  ;;  %v3349_v28 = vor.u32 %v4264_v22, %v3348_v20  ;;  %v3356_v32 = vld [vmem:[#allocation5 + $0xc8] sm:$0xf]  ;;  %v4254_v20 = vld [vmem:[#allocation5 + $0x84] sm:$0xf] }
  0xbe   :  { %932 = vmatpush.bf16.msra.mxu0 %v3349_v28  ;;  %v3324_v28 = vld [vmem:[#allocation5 + $0x88] sm:$0xf] }
  0xc2   :  { %v336_v34 = vpop.f32.mrf.mxu2  ;;  %v280_v37 = vpop.f32.mrf.mxu0 }
  0xc3   :  { %v4745_v35 = vadd.f32 %v336_v34, %v4730_v25  ;;  %v365_v36 = vpop.f32.mrf.mxu3  ;;  %v4751_v39 = vadd.f32 %v280_v37, %v4714_v16  ;;  %v309_v40 = vpop.f32.mrf.mxu1  ;;  %v4265_v34 = vld [vmem:[#allocation5 + $0xd4] sm:$0xf0] }
  0xc4   :  { %v4748_v38 = vadd.f32 %v365_v36, %v4728_v24  ;;  %v4754_v41 = vadd.f32 %v309_v40, %v4718_v18  ;;  %v3353_v36 = vor.u32 %v4262_v26, %v3350_v29  ;;  %v3357_v37 = vor.u32 %v4265_v34, %v3356_v32  ;;  %v4263_v40 = vld [vmem:[#allocation5 + $0xcc] sm:$0xf]  ;;  %v3318_v26 = vld [vmem:[#allocation5 + $0x90] sm:$0xf0]  ;;  %v4257_v29 = vld [vmem:[#allocation5 + $0x94] sm:$0xf0] }
  0xc5   :  { %v3321_v32 = vor.u32 %v4254_v20, %v3318_v26  ;;  %v3325_v34 = vor.u32 %v4257_v29, %v3324_v28  ;;  %v4246_v20 = vld [vmem:[#allocation5 + $0x44] sm:$0xf]  ;;  %v3286_v28 = vld [vmem:[#allocation5 + $0x50] sm:$0xf0]  ;;  %v3292_v29 = vld [vmem:[#allocation5 + $0x48] sm:$0xf] }
  0xc6   :  { %945 = vmatpush.bf16.msra.mxu1 %v3353_v36  ;;  %958 = vmatpush.bf16.msra.mxu2 %v3357_v37  ;;  %v4255_v36 = vld [vmem:[#allocation5 + $0x8c] sm:$0xf]  ;;  %v3326_v37 = vld [vmem:[#allocation5 + $0x98] sm:$0xf0] }
  0xca   :  { %v338_v42 = vpop.f32.mrf.mxu2  ;;  %v283_v45 = vpop.f32.mrf.mxu0  ;;  %959 = vmatpush.bf16.msra.mxu2 %v3341_v0 }
  0xcb   :  { %v4757_v43 = vadd.f32 %v338_v42, %v4730_v25  ;;  %v367_v44 = vpop.f32.mrf.mxu3  ;;  %v4763_v47 = vadd.f32 %v283_v45, %v4714_v16  ;;  %v312_v48 = vpop.f32.mrf.mxu1  ;;  %v3358_v42 = vld [vmem:[#allocation5 + $0xd8] sm:$0xf0]  ;;  %v3332_v45 = vld [vmem:[#allocation5 + $0xa0] sm:$0xf] }
  0xcc   :  { %v4760_v46 = vadd.f32 %v367_v44, %v4728_v24  ;;  %v4766_v49 = vadd.f32 %v312_v48, %v4718_v18  ;;  %v3361_v44 = vor.u32 %v4263_v40, %v3358_v42  ;;  %v4260_v48 = vld [vmem:[#allocation5 + $0xac] sm:$0xf0]  ;;  %v3329_v40 = vor.u32 %v4255_v36, %v3326_v37  ;;  %v3300_v42 = vld [vmem:[#allocation5 + $0x60] sm:$0xf]  ;;  %v4249_v36 = vld [vmem:[#allocation5 + $0x54] sm:$0xf0] }
  0xcd   :  { %v4247_v37 = vld [vmem:[#allocation5 + $0x4c] sm:$0xf] }
  0xce   :  { %971 = vmatpush.bf16.msra.mxu3 %v3361_v44  ;;  %960 = vmatpush.bf16.msra.mxu2 %v3325_v34  ;;  %v4252_v44 = vld [vmem:[#allocation5 + $0x6c] sm:$0xf0]  ;;  %v3289_v34 = vor.u32 %v4246_v20, %v3286_v28  ;;  %v3254_v20 = vld [vmem:[#allocation5 + $0x10] sm:$0xf0] }
  0xd2   :  { %v341_v50 = vpop.f32.mrf.mxu2  ;;  %v285_v53 = vpop.f32.mrf.mxu0 }
  0xd3   :  { %v4769_v51 = vadd.f32 %v341_v50, %v4730_v25  ;;  %v370_v52 = vpop.f32.mrf.mxu3  ;;  %v4775_v55 = vadd.f32 %v285_v53, %v4714_v16  ;;  %v314_v56 = vpop.f32.mrf.mxu1  ;;  %v4258_v50 = vld [vmem:[#allocation5 + $0xa4] sm:$0xf]  ;;  %v3333_v53 = vor.u32 %v4260_v48, %v3332_v45  ;;  %v274_v48 = vadd.f32 %v4707_v13, %v4714_v16 }
  0xd4   :  { %v4772_v54 = vadd.f32 %v370_v52, %v4728_v24  ;;  %v4778_v57 = vadd.f32 %v314_v56, %v4718_v18  ;;  %v3334_v56 = vld [vmem:[#allocation5 + $0xb0] sm:$0xf0]  ;;  %v4250_v45 = vld [vmem:[#allocation5 + $0x64] sm:$0xf] }
  0xd5   :  { %v3337_v63 = vor.u32 %v4258_v50, %v3334_v56  ;;  %933 = vmatpush.bf16.msra.mxu0 %v3333_v53  ;;  %v3302_v53 = vld [vmem:[#allocation5 + $0x70] sm:$0xf0]  ;;  %v3308_v56 = vld [vmem:[#allocation5 + $0x68] sm:$0xf] }
  0xd6   :  { %v3305_v0 = vor.u32 %v4250_v45, %v3302_v53  ;;  %v4244_v45 = vld [vmem:[#allocation5 + $0x2c] sm:$0xf0]  ;;  %v4242_v53 = vld [vmem:[#allocation5 + $0x24] sm:$0xf] }
  0xd7   :  { %946 = vmatpush.bf16.msra.mxu1 %v3337_v63 }
  0xda   :  { %v343_v61 = vpop.f32.mrf.mxu2  ;;  %v288_v4 = vpop.f32.mrf.mxu0 }
  0xdb   :  { %v4781_v2 = vadd.f32 %v343_v61, %v4730_v25  ;;  %v372_v3 = vpop.f32.mrf.mxu3  ;;  %v4787_v10 = vadd.f32 %v288_v4, %v4714_v16  ;;  %v317_v11 = vpop.f32.mrf.mxu1  ;;  %947 = vmatpush.bf16.msra.mxu1 %v3321_v32 }
  0xdc   :  { %v4784_v9 = vadd.f32 %v372_v3, %v4728_v24  ;;  %v4790_v15 = vadd.f32 %v317_v11, %v4718_v18  ;;  %v3342_v3 = vld [vmem:[#allocation5 + $0xb8] sm:$0xf0]  ;;  %v3316_v11 = vld [vmem:[#allocation5 + $0x80] sm:$0xf] }
  0xdd   :  { %v3345_v7 = vor.u32 %v4259_v1, %v3342_v3  ;;  %v3317_v22 = vor.u32 %v4256_v12, %v3316_v11  ;;  %v3309_v1 = vor.u32 %v4253_v58, %v3308_v56  ;;  %v4251_v3 = vld [vmem:[#allocation5 + $0x6c] sm:$0xf]  ;;  %v3270_v56 = vld [vmem:[#allocation5 + $0x30] sm:$0xf0]  ;;  %v3276_v58 = vld [vmem:[#allocation5 + $0x28] sm:$0xf] }
  0xdf   :  { %972 = vmatpush.bf16.msra.mxu3 %v3345_v7  ;;  %934 = vmatpush.bf16.msra.mxu0 %v3317_v22 }
  0xe0   :  { %948 = vmatpush.bf16.msra.mxu1 %v3305_v0  ;;  %961 = vmatpush.bf16.msra.mxu2 %v3309_v1  ;;  %v4243_v0 = vld [vmem:[#allocation5 + $0x2c] sm:$0xf]  ;;  %v3278_v1 = vld [vmem:[#allocation5 + $0x38] sm:$0xf0] }
  0xe2   :  { %v346_v52 = vpop.f32.mrf.mxu2  ;;  %v290_v62 = vpop.f32.mrf.mxu0 }
  0xe3   :  { %v4793_v60 = vadd.f32 %v346_v52, %v4730_v25  ;;  %v375_v61 = vpop.f32.mrf.mxu3  ;;  %v4799_v5 = vadd.f32 %v290_v62, %v4714_v16  ;;  %v319_v6 = vpop.f32.mrf.mxu1  ;;  %973 = vmatpush.bf16.msra.mxu3 %v3329_v40  ;;  %v3301_v52 = vor.u32 %v4252_v44, %v3300_v42  ;;  %v3293_v40 = vor.u32 %v4249_v36, %v3292_v29  ;;  %v3294_v42 = vld [vmem:[#allocation5 + $0x58] sm:$0xf0]  ;;  %v3268_v44 = vld [vmem:[#allocation5 + $0x20] sm:$0xf] }
  0xe4   :  { %v4796_v4 = vadd.f32 %v375_v61, %v4728_v24  ;;  %v4802_v8 = vadd.f32 %v319_v6, %v4718_v18  ;;  %v3310_v6 = vld [vmem:[#allocation5 + $0x78] sm:$0xf0]  ;;  %v4248_v18 = vld [vmem:[#allocation5 + $0x4c] sm:$0xf0]  ;;  %949 = vmatpush.bf16.msra.mxu1 %v3289_v34 }
  0xe5   :  { %935 = vmatpush.bf16.msra.mxu0 %v3301_v52  ;;  %v3313_v11 = vor.u32 %v4251_v3, %v3310_v6  ;;  %v3285_v26 = vor.u32 %v4248_v18, %v3284_v14  ;;  %v3269_v52 = vor.u32 %v4244_v45, %v3268_v44  ;;  %962 = vmatpush.bf16.msra.mxu2 %v3293_v40  ;;  %v3262_v34 = vld [vmem:[#allocation5 + $0x18] sm:$0xf0] }
  0xe7   :  { %974 = vmatpush.bf16.msra.mxu3 %v3313_v11  ;;  %v3281_v11 = vor.u32 %v4243_v0, %v3278_v1 }
  0xe9   :  { %936 = vmatpush.bf16.msra.mxu0 %v3285_v26  ;;  %v4241_v26 = vld [vmem:[#allocation5 + $0x14] sm:$0xf0] }
  0xea   :  { %v348_v50 = vpop.f32.mrf.mxu2  ;;  %v620_v63 = vpop.f32.mrf.mxu0 }
  0xeb   :  { %v4809_v61 = vadd.f32 %v348_v50, %v4730_v25  ;;  %v377_v62 = vpop.f32.mrf.mxu3  ;;  %v663_v16 = vadd.f32 %v620_v63, %v274_v48  ;;  %v633_v7 = vpop.f32.mrf.mxu1  ;;  %v332_v48 = vadd.f32 %v4716_v17, %v4730_v25  ;;  %v3297_v50 = vor.u32 %v4247_v37, %v3294_v42  ;;  %v4245_v63 = vld [vmem:[#allocation5 + $0x34] sm:$0xf0]  ;;  %v3252_v17 = vld [vmem:[#allocation5] sm:$0xf]  ;;  %v4240_v25 = vld [vmem:[#allocation5 + $0xc] sm:$0xf0] }
  0xec   :  { %v4812_v13 = vadd.f32 %v377_v62, %v4728_v24  ;;  %v664_v12 = vadd.f32 %v633_v7, %v303_v59  ;;  %v3273_v62 = vor.u32 %v4242_v53, %v3270_v56  ;;  %v3277_v7 = vor.u32 %v4245_v63, %v3276_v58 }
  0xed   :  { %v3247_v22 = vmul.f32 -1.442695, %v663_v16  ;;  %975 = vmatpush.bf16.msra.mxu3 %v3297_v50  ;;  %937 = vmatpush.bf16.msra.mxu0 %v3269_v52  ;;  %v3253_v18 = vor.u32 %v4240_v25, %v3252_v17  ;;  %v361_v53 = vadd.f32 %v4720_v19, %v4728_v24 }
  0xee   :  { %v3248_v32 = vmul.f32 -1.442695, %v664_v12  ;;  %v4238_v12 = vld [vmem:[#allocation5 + $0x4] sm:$0xf]  ;;  %950 = vmatpush.bf16.msra.mxu1 %v3273_v62  ;;  %963 = vmatpush.bf16.msra.mxu2 %v3277_v7 }
  0xef   :  { %4467 = vpow2.f32 %v3247_v22  ;;  %v3260_v22 = vld [vmem:[#allocation5 + $0x8] sm:$0xf]  ;;  %v3257_v29 = vor.u32 %v4238_v12, %v3254_v20 }
  0xf0   :  { %4469 = vpow2.f32 %v3248_v32  ;;  %v4239_v32 = vld [vmem:[#allocation5 + $0xc] sm:$0xf]  ;;  %v3261_v37 = vor.u32 %v4241_v26, %v3260_v22 }
  0xf1   :  { %976 = vmatpush.bf16.msra.mxu3 %v3281_v11  ;;  %v3265_v44 = vor.u32 %v4239_v32, %v3262_v34  ;;  %938 = vmatpush.bf16.msra.mxu0 %v3253_v18 }
  0xf2   :  { %v646_v59 = vpop.f32.mrf.mxu2  ;;  %v622_v16 = vpop.f32.mrf.mxu0  ;;  %951 = vmatpush.bf16.msra.mxu1 %v3257_v29  ;;  %964 = vmatpush.bf16.msra.mxu2 %v3261_v37 }
  0xf3   :  { %v665_v3 = vadd.f32 %v646_v59, %v332_v48  ;;  %v659_v6 = vpop.f32.mrf.mxu3  ;;  %v635_v14 = vpop.f32.mrf.mxu1 }
  0xf4   :  { %v666_v59 = vadd.f32 %v659_v6, %v361_v53 }
  0xf5   :  { %v3249_v28 = vmul.f32 -1.442695, %v665_v3  ;;  %v4468_v36 = vpop.eup %4467  ;;  %977 = vmatpush.bf16.msra.mxu3 %v3265_v44 }
  0xf6   :  { %v4470_v40 = vpop.eup %4469  ;;  %v676_v42 = vadd.f32 1.0, %v4468_v36 }
  0xf7   :  { %4471 = vpow2.f32 %v3249_v28  ;;  %v677_v45 = vadd.f32 1.0, %v4470_v40 }
  0xf8   :  { %4473 = vrcp.f32 %v676_v42  ;;  %v690_v16 = vand.u32 2147483648, %v676_v42  ;;  %v688_v17 = vand.u32 2147483647, %v676_v42  ;;  %vm684_vm2 = vweird.f32 %v676_v42 }
  0xf9   :  { %4475 = vrcp.f32 %v677_v45  ;;  %v705_v7 = vand.u32 2147483648, %v677_v45  ;;  %v703_v12 = vand.u32 2147483647, %v677_v45  ;;  %vm699_vm3 = vweird.f32 %v677_v45 }
  0xfa   :  { %v648_v48 = vpop.f32.mrf.mxu2  ;;  %v691_v6 = vor.u32 1.1754944e-38, %v690_v16  ;;  %vm689_vm5 = vcmp.eq.f32.partialorder %v688_v17, 8.507059e+37  ;;  %v3504_v16 = vld [vmem:[#allocation5 + $0xe8] sm:$0xf] }
  0xfb   :  { %v661_v50 = vpop.f32.mrf.mxu3  ;;  %v706_v20 = vor.u32 1.1754944e-38, %v705_v7  ;;  %vm704_vm7 = vcmp.eq.f32.partialorder %v703_v12, 8.507059e+37  ;;  %v4301_v7 = vld [vmem:[#allocation5 + $0xf4] sm:$0xf0]  ;;  %v3506_v12 = vld [vmem:[#allocation5 + $0xf8] sm:$0xf0] }
  0xfc   :  { %v3505_v17 = vor.u32 %v4301_v7, %v3504_v16  ;;  %v3450_v16 = vld [vmem:[#allocation5 + $0x90] sm:$0xf0]  ;;  %v3456_v7 = vld [vmem:[#allocation5 + $0x88] sm:$0xf] }
  0xfd   :  { %v4472_v52 = vpop.eup %4471 }
  0xfe   :  { %v678_v56 = vadd.f32 1.0, %v4472_v52  ;;  %v4474_v58 = vpop.eup %4473  ;;  %1278 = vmatpush.bf16.msrb.mxu2 %v3505_v17 }
  0xff   :  { %v4476_v62 = vpop.eup %4475  ;;  %v680_v63 = vmul.f32 %v4474_v58, %v676_v42  ;;  %vm685_vm0 = vweird.f32 %v4474_v58 }
 0x100   :  { %4477 = vrcp.f32 %v678_v56  ;;  %v695_v0 = vmul.f32 %v4476_v62, %v677_v45  ;;  %vm700_vm1 = vweird.f32 %v4476_v62  ;;  %vm686_vm4 = vmor %vm684_vm2, %vm685_vm0  ;;  %v720_v45 = vand.u32 2147483648, %v678_v56 }
 0x101   :  { %v681_v1 = vsub.f32 1.0, %v680_v63  ;;  %4479 = vtanh.f32 %v666_v59  ;;  %vm701_vm6 = vmor %vm699_vm3, %vm700_vm1  ;;  %vm714_vm9 = vweird.f32 %v678_v56  ;;  %v718_v48 = vand.u32 2147483647, %v678_v56  ;;  %v3496_v63 = vld [vmem:[#allocation5 + $0xe0] sm:$0xf] }
 0x102   :  { %v696_v3 = vsub.f32 1.0, %v695_v0  ;;  %v721_v52 = vor.u32 1.1754944e-38, %v720_v45  ;;  %v4300_v0 = vld [vmem:[#allocation5 + $0xec] sm:$0xf0] }
 0x103   :  { %v682_v11 = vmul.f32 %v4474_v58, %v681_v1  ;;  %vm719_vm11 = vcmp.eq.f32.partialorder %v718_v48, 8.507059e+37  ;;  %v4298_v1 = vld [vmem:[#allocation5 + $0xe4] sm:$0xf]  ;;  %v3466_v48 = vld [vmem:[#allocation5 + $0xb0] sm:$0xf0] }
 0x104   :  { %v697_v25 = vmul.f32 %v4476_v62, %v696_v3  ;;  %v3498_v3 = vld [vmem:[#allocation5 + $0xf0] sm:$0xf0] }
 0x105   :  { %v683_v19 = vadd.f32 %v4474_v58, %v682_v11  ;;  %v3501_v11 = vor.u32 %v4298_v1, %v3498_v3  ;;  %v4288_v1 = vld [vmem:[#allocation5 + $0x8c] sm:$0xf0] }
 0x106   :  { %v4478_v14 = vpop.eup %4477  ;;  %v698_v18 = vadd.f32 %v4476_v62, %v697_v25  ;;  %v4299_v25 = vld [vmem:[#allocation5 + $0xec] sm:$0xf] }
 0x107   :  { %v710_v24 = vmul.f32 %v4478_v14, %v678_v56  ;;  %v687_v22 = vsel %vm686_vm4, %v4474_v58, %v683_v19  ;;  %v4480_v26 = vpop.eup %4479  ;;  %vm715_vm8 = vweird.f32 %v4478_v14  ;;  %v3497_v56 = vor.u32 %v4300_v0, %v3496_v63  ;;  %1265 = vmatpush.bf16.msrb.mxu1 %v3501_v11  ;;  %v3480_v19 = vld [vmem:[#allocation5 + $0xc0] sm:$0xf]  ;;  %v4289_v11 = vld [vmem:[#allocation5 + $0x94] sm:$0xf0] }
 0x108   :  { %v692_v29 = vsel %vm689_vm5, %v691_v6, %v687_v22  ;;  %v702_v32 = vsel %vm701_vm6, %v4476_v62, %v698_v18  ;;  %vm716_vm10 = vmor %vm714_vm9, %vm715_vm8  ;;  %v4294_v6 = vld [vmem:[#allocation5 + $0xc4] sm:$0xf]  ;;  %v3488_v22 = vld [vmem:[#allocation5 + $0xc8] sm:$0xf] }
 0x109   :  { %v711_v28 = vsub.f32 1.0, %v710_v24  ;;  %v707_v34 = vsel %vm704_vm7, %v706_v20, %v702_v32  ;;  %v726_v36 = vmul.f32 %v4480_v26, %v692_v29  ;;  %1252 = vmatpush.bf16.msrb.mxu0 %v3497_v56  ;;  %v4296_v24 = vld [vmem:[#allocation5 + $0xcc] sm:$0xf0]  ;;  %v3482_v20 = vld [vmem:[#allocation5 + $0xd0] sm:$0xf0] }
 0x10a   :  { %v725_v40 = vmul.f32 0.0, %v707_v34  ;;  %v3481_v18 = vor.u32 %v4296_v24, %v3480_v19  ;;  %v4297_v26 = vld [vmem:[#allocation5 + $0xd4] sm:$0xf0]  ;;  %v4295_v32 = vld [vmem:[#allocation5 + $0xcc] sm:$0xf] }
 0x10b   :  { %v712_v37 = vmul.f32 %v4478_v14, %v711_v28  ;;  %v3485_v28 = vor.u32 %v4294_v6, %v3482_v20  ;;  %v3489_v29 = vor.u32 %v4297_v26, %v3488_v22  ;;  %v3490_v34 = vld [vmem:[#allocation5 + $0xd8] sm:$0xf0]  ;;  %v3448_v0 = vld [vmem:[#allocation5 + $0x80] sm:$0xf]  ;;  %v4286_v56 = vld [vmem:[#allocation5 + $0x84] sm:$0xf] }
 0x10c   :  { %v4818_v44 = vadd.f32 %v726_v36, %v725_v40  ;;  %v3493_v36 = vor.u32 %v4295_v32, %v3490_v34  ;;  %v4292_v40 = vld [vmem:[#allocation5 + $0xac] sm:$0xf0]  ;;  %v3449_v3 = vor.u32 %v4288_v1, %v3448_v0  ;;  %v3453_v17 = vor.u32 %v4286_v56, %v3450_v16  ;;  %v3432_v24 = vld [vmem:[#allocation5 + $0x60] sm:$0xf]  ;;  %v3434_v22 = vld [vmem:[#allocation5 + $0x70] sm:$0xf0] }
 0x10d   :  { %v713_v42 = vadd.f32 %v4478_v14, %v712_v37  ;;  %1253 = vmatpush.bf16.msrb.mxu0 %v3481_v18  ;;  %1266 = vmatpush.bf16.msrb.mxu1 %v3485_v28  ;;  %v3464_v37 = vld [vmem:[#allocation5 + $0xa0] sm:$0xf]  ;;  %v4284_v6 = vld [vmem:[#allocation5 + $0x6c] sm:$0xf0]  ;;  %v4282_v18 = vld [vmem:[#allocation5 + $0x64] sm:$0xf] }
 0x10e   :  { %4481 = vtanh.f32 %v4818_v44  ;;  %1279 = vmatpush.bf16.msrb.mxu2 %v3489_v29  ;;  %v3465_v45 = vor.u32 %v4292_v40, %v3464_v37  ;;  %v3433_v20 = vor.u32 %v4284_v6, %v3432_v24  ;;  %v3440_v26 = vld [vmem:[#allocation5 + $0x68] sm:$0xf]  ;;  %v4285_v28 = vld [vmem:[#allocation5 + $0x74] sm:$0xf0]  ;;  %v3437_v29 = vor.u32 %v4282_v18, %v3434_v22  ;;  %v4283_v34 = vld [vmem:[#allocation5 + $0x6c] sm:$0xf] }
 0x10f   :  { %v717_v50 = vsel %vm716_vm10, %v4478_v14, %v713_v42  ;;  %v3509_v14 = vor.u32 %v4299_v25, %v3506_v12  ;;  %v4290_v42 = vld [vmem:[#allocation5 + $0xa4] sm:$0xf]  ;;  %v3457_v25 = vor.u32 %v4289_v11, %v3456_v7  ;;  %v4287_v12 = vld [vmem:[#allocation5 + $0x8c] sm:$0xf]  ;;  %v3441_v32 = vor.u32 %v4285_v28, %v3440_v26  ;;  %v3426_v7 = vld [vmem:[#allocation5 + $0x58] sm:$0xf0] }
 0x110   :  { %v722_v58 = vsel %vm719_vm11, %v721_v52, %v717_v50  ;;  %v3472_v50 = vld [vmem:[#allocation5 + $0xa8] sm:$0xf]  ;;  %v4293_v52 = vld [vmem:[#allocation5 + $0xb4] sm:$0xf0]  ;;  %v4279_v16 = vld [vmem:[#allocation5 + $0x4c] sm:$0xf] }
 0x111   :  { %1291 = vmatpush.bf16.msrb.mxu3 %v3509_v14  ;;  %1254 = vmatpush.bf16.msrb.mxu0 %v3465_v45  ;;  %v3458_v14 = vld [vmem:[#allocation5 + $0x98] sm:$0xf0]  ;;  %v4276_v11 = vld [vmem:[#allocation5 + $0x2c] sm:$0xf0]  ;;  %v4277_v24 = vld [vmem:[#allocation5 + $0x34] sm:$0xf0] }
 0x112   :  { %v3461_v19 = vor.u32 %v4287_v12, %v3458_v14  ;;  %v3402_v12 = vld [vmem:[#allocation5 + $0x30] sm:$0xf0]  ;;  %v3408_v14 = vld [vmem:[#allocation5 + $0x28] sm:$0xf]  ;;  %v4275_v6 = vld [vmem:[#allocation5 + $0x2c] sm:$0xf] }
 0x113   :  { %v3410_v18 = vld [vmem:[#allocation5 + $0x38] sm:$0xf0]  ;;  %v3409_v26 = vor.u32 %v4277_v24, %v3408_v14 }
 0x114   :  { %v4482_v53 = vpop.eup %4481  ;;  %v3413_v28 = vor.u32 %v4275_v6, %v3410_v18 }
 0x115   :  { %v729_v59 = vmul.f32 %v4482_v53, %v722_v58  ;;  %1292 = vmatpush.bf16.msrb.mxu3 %v3493_v36  ;;  %v3469_v53 = vor.u32 %v4290_v42, %v3466_v48  ;;  %v3473_v58 = vor.u32 %v4293_v52, %v3472_v50  ;;  %1255 = vmatpush.bf16.msrb.mxu0 %v3449_v3  ;;  %v3442_v36 = vld [vmem:[#allocation5 + $0x78] sm:$0xf0]  ;;  %v3416_v50 = vld [vmem:[#allocation5 + $0x40] sm:$0xf]  ;;  %v4280_v52 = vld [vmem:[#allocation5 + $0x4c] sm:$0xf0] }
 0x116   :  { %v3445_v42 = vor.u32 %v4283_v34, %v3442_v36  ;;  %v4270_v34 = vld [vmem:[#allocation5 + $0x4] sm:$0xf] }
 0x117   :  { %730 = vst [vmem:[%s4902_s4] sm:$0xff] %v729_v59  ;;  %v738_v62 = vpack.c.bf16 %v729_v59, %v729_v59  ;;  %v4291_v59 = vld [vmem:[#allocation5 + $0xac] sm:$0xf]  ;;  %1267 = vmatpush.bf16.msrb.mxu1 %v3469_v53  ;;  %1280 = vmatpush.bf16.msrb.mxu2 %v3473_v58  ;;  %v4278_v53 = vld [vmem:[#allocation5 + $0x44] sm:$0xf]  ;;  %v3417_v58 = vor.u32 %v4280_v52, %v3416_v50  ;;  %v4273_v50 = vld [vmem:[#allocation5 + $0x14] sm:$0xf0] }
 0x119   :  { %939 = vmatmul.bf16.vlgmr.msra.gmra.mxu0 %v738_v62  ;;  %952 = vmatmul.bf16.vlgmr.msra.gmra.mxu1 %v738_v62 }
 0x11a   :  { %965 = vmatmul.bf16.vlgmr.msra.gmra.mxu2 %v738_v62  ;;  %978 = vmatmul.bf16.vlgmr.msra.gmra.mxu3 %v738_v62  ;;  %v3474_v62 = vld [vmem:[#allocation5 + $0xb8] sm:$0xf0] }
 0x11b   :  { %v3477_v63 = vor.u32 %v4291_v59, %v3474_v62  ;;  %1268 = vmatpush.bf16.msrb.mxu1 %v3453_v17  ;;  %1281 = vmatpush.bf16.msrb.mxu2 %v3457_v25  ;;  %v3418_v59 = vld [vmem:[#allocation5 + $0x50] sm:$0xf0]  ;;  %v3424_v62 = vld [vmem:[#allocation5 + $0x48] sm:$0xf]  ;;  %v4274_v25 = vld [vmem:[#allocation5 + $0x24] sm:$0xf] }
 0x11c   :  { %1256 = vmatpush.bf16.msrb.mxu0 %v3433_v20  ;;  %v3421_v56 = vor.u32 %v4278_v53, %v3418_v59  ;;  %v3394_v59 = vld [vmem:[#allocation5 + $0x18] sm:$0xf0] }
 0x11d   :  { %1293 = vmatpush.bf16.msrb.mxu3 %v3477_v63  ;;  %v4281_v63 = vld [vmem:[#allocation5 + $0x54] sm:$0xf0] }
 0x11e   :  { %v3425_v3 = vor.u32 %v4281_v63, %v3424_v62 }
 0x11f   :  { %1269 = vmatpush.bf16.msrb.mxu1 %v3437_v29  ;;  %1282 = vmatpush.bf16.msrb.mxu2 %v3441_v32  ;;  %v3384_v29 = vld [vmem:[#allocation5] sm:$0xf]  ;;  %v4272_v32 = vld [vmem:[#allocation5 + $0xc] sm:$0xf0] }
 0x120   :  { %1257 = vmatpush.bf16.msrb.mxu0 %v3417_v58  ;;  %v4271_v58 = vld [vmem:[#allocation5 + $0xc] sm:$0xf] }
 0x121   :  { %1294 = vmatpush.bf16.msrb.mxu3 %v3461_v19  ;;  %v3405_v19 = vor.u32 %v4274_v25, %v3402_v12 }
 0x123   :  { %1270 = vmatpush.bf16.msrb.mxu1 %v3421_v56  ;;  %1283 = vmatpush.bf16.msrb.mxu2 %v3425_v3 }
 0x125   :  { %1295 = vmatpush.bf16.msrb.mxu3 %v3445_v42  ;;  %v3385_v42 = vor.u32 %v4272_v32, %v3384_v29 }
 0x127   :  { %1271 = vmatpush.bf16.msrb.mxu1 %v3405_v19  ;;  %1284 = vmatpush.bf16.msrb.mxu2 %v3409_v26 }
 0x196   :  { %v940_v37 = vpop.f32.mrf.mxu0  ;;  %v953_v40 = vpop.f32.mrf.mxu1 }
 0x197   :  { %v983_v45 = vadd.f32 %v940_v37, %v4723_v21  ;;  %v984_v48 = vadd.f32 %v953_v40, %v4726_v23  ;;  %v3400_v21 = vld [vmem:[#allocation5 + $0x20] sm:$0xf]  ;;  %v3429_v23 = vor.u32 %v4279_v16, %v3426_v7 }
 0x198   :  { %v3401_v17 = vor.u32 %v4276_v11, %v3400_v21 }
 0x199   :  { %v3378_v0 = vmul.f32 -1.442695, %v983_v45  ;;  %v3379_v1 = vmul.f32 -1.442695, %v984_v48  ;;  %1296 = vmatpush.bf16.msrb.mxu3 %v3429_v23  ;;  %v3386_v45 = vld [vmem:[#allocation5 + $0x10] sm:$0xf0] }
 0x19a   :  { %1258 = vmatpush.bf16.msrb.mxu0 %v3401_v17  ;;  %v3392_v48 = vld [vmem:[#allocation5 + $0x8] sm:$0xf]  ;;  %v3389_v52 = vor.u32 %v4270_v34, %v3386_v45 }
 0x19b   :  { %4483 = vpow2.f32 %v3378_v0  ;;  %v3393_v53 = vor.u32 %v4273_v50, %v3392_v48  ;;  %v3397_v0 = vor.u32 %v4271_v58, %v3394_v59 }
 0x19c   :  { %4485 = vpow2.f32 %v3379_v1  ;;  %1272 = vmatpush.bf16.msrb.mxu1 %v3389_v52 }
 0x19d   :  { %v966_v20 = vpop.f32.mrf.mxu2  ;;  %v979_v22 = vpop.f32.mrf.mxu3  ;;  %1297 = vmatpush.bf16.msrb.mxu3 %v3413_v28  ;;  %1285 = vmatpush.bf16.msrb.mxu2 %v3393_v53 }
 0x19e   :  { %v985_v36 = vadd.f32 %v966_v20, %v4733_v27  ;;  %v942_v37 = vpop.f32.mrf.mxu0  ;;  %v955_v40 = vpop.f32.mrf.mxu1  ;;  %1259 = vmatpush.bf16.msrb.mxu0 %v3385_v42  ;;  %v986_v23 = vadd.f32 %v979_v22, %v4736_v30 }
 0x1a0   :  { %v3380_v62 = vmul.f32 -1.442695, %v985_v36 }
 0x1a1   :  { %v4484_v63 = vpop.eup %4483  ;;  %1298 = vmatpush.bf16.msrb.mxu3 %v3397_v0 }
 0x1a2   :  { %v4486_v1 = vpop.eup %4485  ;;  %v996_v56 = vadd.f32 1.0, %v4484_v63  ;;  %4487 = vpow2.f32 %v3380_v62 }
 0x1a3   :  { %v997_v27 = vadd.f32 1.0, %v4486_v1 }
 0x1a4   :  { %4489 = vrcp.f32 %v996_v56  ;;  %v1010_v24 = vand.u32 2147483648, %v996_v56  ;;  %v1008_v20 = vand.u32 2147483647, %v996_v56  ;;  %vm1004_vm14 = vweird.f32 %v996_v56 }
 0x1a5   :  { %4491 = vrcp.f32 %v997_v27  ;;  %v968_v3 = vpop.f32.mrf.mxu2  ;;  %v981_v16 = vpop.f32.mrf.mxu3  ;;  %v1025_v6 = vand.u32 2147483648, %v997_v27  ;;  %v1023_v28 = vand.u32 2147483647, %v997_v27  ;;  %vm1019_vm15 = vweird.f32 %v997_v27 }
 0x1a6   :  { %v1011_v22 = vor.u32 1.1754944e-38, %v1010_v24  ;;  %vm1009_vm2 = vcmp.eq.f32.partialorder %v1008_v20, 8.507059e+37  ;;  %v4331_v24 = vld [vmem:[#allocation5 + $0xec] sm:$0xf]  ;;  %v3612_v20 = vld [vmem:[#allocation5 + $0xc0] sm:$0xf] }
 0x1a7   :  { %v1026_v36 = vor.u32 1.1754944e-38, %v1025_v6  ;;  %vm1024_vm3 = vcmp.eq.f32.partialorder %v1023_v28, 8.507059e+37  ;;  %v3638_v6 = vld [vmem:[#allocation5 + $0xf8] sm:$0xf0]  ;;  %v4326_v28 = vld [vmem:[#allocation5 + $0xc4] sm:$0xf] }
 0x1a8   :  { %v4488_v7 = vpop.eup %4487 }
 0x1a9   :  { %v998_v21 = vadd.f32 1.0, %v4488_v7  ;;  %v3628_v7 = vld [vmem:[#allocation5 + $0xe0] sm:$0xf] }
 0x1aa   :  { %v4490_v11 = vpop.eup %4489 }
 0x1ab   :  { %v4492_v17 = vpop.eup %4491  ;;  %v1000_v25 = vmul.f32 %v4490_v11, %v996_v56  ;;  %4493 = vrcp.f32 %v998_v21  ;;  %vm1005_vm12 = vweird.f32 %v4490_v11  ;;  %v1040_v63 = vand.u32 2147483648, %v998_v21 }
 0x1ac   :  { %v1015_v12 = vmul.f32 %v4492_v17, %v997_v27  ;;  %4495 = vtanh.f32 %v986_v23  ;;  %vm1020_vm13 = vweird.f32 %v4492_v17  ;;  %vm1006_vm0 = vmor %vm1004_vm14, %vm1005_vm12  ;;  %vm1034_vm5 = vweird.f32 %v998_v21  ;;  %v4330_v23 = vld [vmem:[#allocation5 + $0xe4] sm:$0xf] }
 0x1ad   :  { %v1001_v14 = vsub.f32 1.0, %v1000_v25  ;;  %vm1021_vm1 = vmor %vm1019_vm15, %vm1020_vm13  ;;  %v1038_v0 = vand.u32 2147483647, %v998_v21  ;;  %v1041_v56 = vor.u32 1.1754944e-38, %v1040_v63  ;;  %v3636_v25 = vld [vmem:[#allocation5 + $0xe8] sm:$0xf] }
 0x1ae   :  { %v1016_v19 = vsub.f32 1.0, %v1015_v12  ;;  %v4333_v12 = vld [vmem:[#allocation5 + $0xf4] sm:$0xf0] }
 0x1af   :  { %v1002_v18 = vmul.f32 %v4490_v11, %v1001_v14  ;;  %vm1039_vm7 = vcmp.eq.f32.partialorder %v1038_v0, 8.507059e+37 }
 0x1b0   :  { %v1017_v26 = vmul.f32 %v4492_v17, %v1016_v19  ;;  %v3637_v19 = vor.u32 %v4333_v12, %v3636_v25  ;;  %v4319_v12 = vld [vmem:[#allocation5 + $0x8c] sm:$0xf] }
 0x1b1   :  { %v4494_v29 = vpop.eup %4493  ;;  %v1003_v32 = vadd.f32 %v4490_v11, %v1002_v18  ;;  %v3641_v18 = vor.u32 %v4331_v24, %v3638_v6  ;;  %v3564_v24 = vld [vmem:[#allocation5 + $0x60] sm:$0xf]  ;;  %v4316_v6 = vld [vmem:[#allocation5 + $0x6c] sm:$0xf0] }
 0x1b2   :  { %v1030_v30 = vmul.f32 %v4494_v29, %v998_v21  ;;  %v1018_v34 = vadd.f32 %v4492_v17, %v1017_v26  ;;  %v4496_v40 = vpop.eup %4495  ;;  %vm1035_vm4 = vweird.f32 %v4494_v29  ;;  %1599 = vmatpush.bf16.msra.mxu2 %v3637_v19  ;;  %v4328_v26 = vld [vmem:[#allocation5 + $0xcc] sm:$0xf0] }
 0x1b3   :  { %v1007_v37 = vsel %vm1006_vm0, %v4490_v11, %v1003_v32  ;;  %vm1036_vm6 = vmor %vm1034_vm5, %vm1035_vm4  ;;  %v4332_v11 = vld [vmem:[#allocation5 + $0xec] sm:$0xf0]  ;;  %1612 = vmatpush.bf16.msra.mxu3 %v3641_v18  ;;  %v3614_v32 = vld [vmem:[#allocation5 + $0xd0] sm:$0xf0] }
 0x1b4   :  { %v1031_v42 = vsub.f32 1.0, %v1030_v30  ;;  %v1012_v45 = vsel %vm1009_vm2, %v1011_v22, %v1007_v37  ;;  %v1022_v48 = vsel %vm1021_vm1, %v4492_v17, %v1018_v34  ;;  %v3629_v21 = vor.u32 %v4332_v11, %v3628_v7  ;;  %v3630_v17 = vld [vmem:[#allocation5 + $0xf0] sm:$0xf0]  ;;  %v3620_v30 = vld [vmem:[#allocation5 + $0xc8] sm:$0xf] }
 0x1b5   :  { %v1027_v50 = vsel %vm1024_vm3, %v1026_v36, %v1022_v48  ;;  %v1046_v52 = vmul.f32 %v4496_v40, %v1012_v45  ;;  %v3633_v14 = vor.u32 %v4330_v23, %v3630_v17  ;;  %v4329_v22 = vld [vmem:[#allocation5 + $0xd4] sm:$0xf0]  ;;  %v3617_v34 = vor.u32 %v4326_v28, %v3614_v32  ;;  %v4327_v37 = vld [vmem:[#allocation5 + $0xcc] sm:$0xf]  ;;  %v3622_v40 = vld [vmem:[#allocation5 + $0xd8] sm:$0xf0] }
 0x1b6   :  { %v1032_v53 = vmul.f32 %v4494_v29, %v1031_v42  ;;  %v1045_v58 = vmul.f32 %v1027_v50, %v4818_v44  ;;  %1573 = vmatpush.bf16.msra.mxu0 %v3629_v21  ;;  %v3621_v36 = vor.u32 %v4329_v22, %v3620_v30  ;;  %v3625_v42 = vor.u32 %v4327_v37, %v3622_v40  ;;  %v3596_v45 = vld [vmem:[#allocation5 + $0xa0] sm:$0xf]  ;;  %v4324_v48 = vld [vmem:[#allocation5 + $0xac] sm:$0xf0]  ;;  %v4322_v50 = vld [vmem:[#allocation5 + $0xa4] sm:$0xf] }
 0x1b7   :  { %1586 = vmatpush.bf16.msra.mxu1 %v3633_v14  ;;  %v3582_v11 = vld [vmem:[#allocation5 + $0x90] sm:$0xf0]  ;;  %v3588_v23 = vld [vmem:[#allocation5 + $0x88] sm:$0xf]  ;;  %v4321_v21 = vld [vmem:[#allocation5 + $0x94] sm:$0xf0] }
 0x1b8   :  { %v4829_v59 = vadd.f32 %v1046_v52, %v1045_v58  ;;  %v1033_v62 = vadd.f32 %v4494_v29, %v1032_v53  ;;  %1600 = vmatpush.bf16.msra.mxu2 %v3621_v36  ;;  %1613 = vmatpush.bf16.msra.mxu3 %v3625_v42  ;;  %v3597_v52 = vor.u32 %v4324_v48, %v3596_v45  ;;  %v3598_v53 = vld [vmem:[#allocation5 + $0xb0] sm:$0xf0]  ;;  %v3604_v58 = vld [vmem:[#allocation5 + $0xa8] sm:$0xf]  ;;  %v3590_v14 = vld [vmem:[#allocation5 + $0x98] sm:$0xf0] }
 0x1b9   :  { %v3601_v63 = vor.u32 %v4322_v50, %v3598_v53  ;;  %v3589_v25 = vor.u32 %v4321_v21, %v3588_v23  ;;  %v3593_v19 = vor.u32 %v4319_v12, %v3590_v14  ;;  %v4314_v18 = vld [vmem:[#allocation5 + $0x64] sm:$0xf]  ;;  %v3572_v28 = vld [vmem:[#allocation5 + $0x68] sm:$0xf]  ;;  %v4315_v22 = vld [vmem:[#allocation5 + $0x6c] sm:$0xf] }
 0x1ba   :  { %4497 = vtanh.f32 %v4829_v59  ;;  %v1037_v1 = vsel %vm1036_vm6, %v4494_v29, %v1033_v62  ;;  %v3613_v29 = vor.u32 %v4328_v26, %v3612_v20  ;;  %v4325_v62 = vld [vmem:[#allocation5 + $0xb4] sm:$0xf0]  ;;  %v3565_v20 = vor.u32 %v4316_v6, %v3564_v24  ;;  %v3566_v26 = vld [vmem:[#allocation5 + $0x70] sm:$0xf0]  ;;  %v3548_v48 = vld [vmem:[#allocation5 + $0x40] sm:$0xf] }
 0x1bb   :  { %v1042_v3 = vsel %vm1039_vm7, %v1041_v56, %v1037_v1  ;;  %1587 = vmatpush.bf16.msra.mxu1 %v3617_v34  ;;  %v3605_v0 = vor.u32 %v4325_v62, %v3604_v58  ;;  %v4323_v1 = vld [vmem:[#allocation5 + $0xac] sm:$0xf]  ;;  %v3606_v56 = vld [vmem:[#allocation5 + $0xb8] sm:$0xf0]  ;;  %v3569_v32 = vor.u32 %v4314_v18, %v3566_v26  ;;  %v4312_v50 = vld [vmem:[#allocation5 + $0x4c] sm:$0xf0] }
 0x1bc   :  { %1574 = vmatpush.bf16.msra.mxu0 %v3613_v29  ;;  %v4317_v29 = vld [vmem:[#allocation5 + $0x74] sm:$0xf0]  ;;  %v3574_v34 = vld [vmem:[#allocation5 + $0x78] sm:$0xf0]  ;;  %v3549_v53 = vor.u32 %v4312_v50, %v3548_v48  ;;  %v3550_v58 = vld [vmem:[#allocation5 + $0x50] sm:$0xf0] }
 0x1bd   :  { %1601 = vmatpush.bf16.msra.mxu2 %v3605_v0  ;;  %v3573_v30 = vor.u32 %v4317_v29, %v3572_v28  ;;  %v3577_v40 = vor.u32 %v4315_v22, %v3574_v34  ;;  %v3556_v62 = vld [vmem:[#allocation5 + $0x48] sm:$0xf]  ;;  %v3534_v23 = vld [vmem:[#allocation5 + $0x30] sm:$0xf0]  ;;  %v4307_v12 = vld [vmem:[#allocation5 + $0x2c] sm:$0xf] }
 0x1be   :  { %v3540_v21 = vld [vmem:[#allocation5 + $0x28] sm:$0xf]  ;;  %v3542_v14 = vld [vmem:[#allocation5 + $0x38] sm:$0xf0]  ;;  %v4304_v26 = vld [vmem:[#allocation5 + $0xc] sm:$0xf0] }
 0x1bf   :  { %1588 = vmatpush.bf16.msra.mxu1 %v3601_v63  ;;  %v4313_v63 = vld [vmem:[#allocation5 + $0x54] sm:$0xf0]  ;;  %v3545_v18 = vor.u32 %v4307_v12, %v3542_v14  ;;  %v4302_v28 = vld [vmem:[#allocation5 + $0x4] sm:$0xf]  ;;  %v3518_v34 = vld [vmem:[#allocation5 + $0x10] sm:$0xf0] }
 0x1c0   :  { %v4498_v27 = vpop.eup %4497  ;;  %1575 = vmatpush.bf16.msra.mxu0 %v3597_v52  ;;  %v4310_v52 = vld [vmem:[#allocation5 + $0x44] sm:$0xf]  ;;  %v3526_v48 = vld [vmem:[#allocation5 + $0x18] sm:$0xf0] }
 0x1c1   :  { %v1049_v16 = vmul.f32 %v4498_v27, %v1042_v3  ;;  %v3609_v27 = vor.u32 %v4323_v1, %v3606_v56  ;;  %v3580_v3 = vld [vmem:[#allocation5 + $0x80] sm:$0xf]  ;;  %1602 = vmatpush.bf16.msra.mxu2 %v3589_v25  ;;  %v3553_v56 = vor.u32 %v4310_v52, %v3550_v58  ;;  %v4309_v25 = vld [vmem:[#allocation5 + $0x34] sm:$0xf0] }
 0x1c2   :  { %v3541_v6 = vor.u32 %v4309_v25, %v3540_v21 }
 0x1c3   :  { %3381 = vst [vmem:[%s4902_s4 + $0x8] sm:$0xff] %v1049_v16  ;;  %v1059_v44 = vpack.c.bf16 %v1049_v16, %v1049_v16  ;;  %v4320_v16 = vld [vmem:[#allocation5 + $0x8c] sm:$0xf0]  ;;  %1614 = vmatpush.bf16.msra.mxu3 %v3609_v27  ;;  %v3557_v27 = vor.u32 %v4313_v63, %v3556_v62 }
 0x1c4   :  { %v3581_v7 = vor.u32 %v4320_v16, %v3580_v3  ;;  %v4311_v3 = vld [vmem:[#allocation5 + $0x4c] sm:$0xf]  ;;  %v3558_v16 = vld [vmem:[#allocation5 + $0x58] sm:$0xf0] }
 0x1c5   :  { %1260 = vmatmul.bf16.vlgmr.msrb.gmra.mxu0 %v1059_v44  ;;  %1273 = vmatmul.bf16.vlgmr.msrb.gmra.mxu1 %v1059_v44 }
 0x1c6   :  { %1286 = vmatmul.bf16.vlgmr.msrb.gmra.mxu2 %v1059_v44  ;;  %1299 = vmatmul.bf16.vlgmr.msrb.gmra.mxu3 %v1059_v44  ;;  %v4318_v44 = vld [vmem:[#allocation5 + $0x84] sm:$0xf] }
 0x1c7   :  { %v3585_v17 = vor.u32 %v4318_v44, %v3582_v11  ;;  %1576 = vmatpush.bf16.msra.mxu0 %v3581_v7  ;;  %1615 = vmatpush.bf16.msra.mxu3 %v3593_v19  ;;  %v4308_v44 = vld [vmem:[#allocation5 + $0x2c] sm:$0xf0]  ;;  %v4306_v11 = vld [vmem:[#allocation5 + $0x24] sm:$0xf] }
 0x1c8   :  { %1603 = vmatpush.bf16.msra.mxu2 %v3573_v30 }
 0x1c9   :  { %1589 = vmatpush.bf16.msra.mxu1 %v3585_v17  ;;  %v3537_v17 = vor.u32 %v4306_v11, %v3534_v23 }
 0x1cb   :  { %1577 = vmatpush.bf16.msra.mxu0 %v3565_v20  ;;  %1616 = vmatpush.bf16.msra.mxu3 %v3577_v40  ;;  %v3516_v20 = vld [vmem:[#allocation5] sm:$0xf]  ;;  %v3521_v40 = vor.u32 %v4302_v28, %v3518_v34 }
 0x1cc   :  { %1604 = vmatpush.bf16.msra.mxu2 %v3557_v27  ;;  %v3517_v22 = vor.u32 %v4304_v26, %v3516_v20 }
 0x1cd   :  { %1590 = vmatpush.bf16.msra.mxu1 %v3569_v32 }
 0x1cf   :  { %1578 = vmatpush.bf16.msra.mxu0 %v3549_v53 }
 0x1d0   :  { %1605 = vmatpush.bf16.msra.mxu2 %v3541_v6 }
 0x1d1   :  { %1591 = vmatpush.bf16.msra.mxu1 %v3553_v56 }
 0x1d5   :  { %1592 = vmatpush.bf16.msra.mxu1 %v3537_v17 }
 0x1d9   :  { %1593 = vmatpush.bf16.msra.mxu1 %v3521_v40 }
 0x242   :  { %v1261_v36 = vpop.f32.mrf.mxu0  ;;  %v1274_v37 = vpop.f32.mrf.mxu1 }
 0x243   :  { %v1304_v42 = vadd.f32 %v1261_v36, %v4739_v31  ;;  %v1305_v45 = vadd.f32 %v1274_v37, %v4742_v33  ;;  %v3532_v31 = vld [vmem:[#allocation5 + $0x20] sm:$0xf]  ;;  %v3561_v33 = vor.u32 %v4311_v3, %v3558_v16  ;;  %v3524_v36 = vld [vmem:[#allocation5 + $0x8] sm:$0xf]  ;;  %v4305_v37 = vld [vmem:[#allocation5 + $0x14] sm:$0xf0] }
 0x244   :  { %v3533_v7 = vor.u32 %v4308_v44, %v3532_v31 }
 0x245   :  { %v3510_v0 = vmul.f32 -1.442695, %v1304_v42  ;;  %v3511_v1 = vmul.f32 -1.442695, %v1305_v45  ;;  %1617 = vmatpush.bf16.msra.mxu3 %v3561_v33  ;;  %v3525_v42 = vor.u32 %v4305_v37, %v3524_v36  ;;  %v4303_v45 = vld [vmem:[#allocation5 + $0xc] sm:$0xf] }
 0x246   :  { %1579 = vmatpush.bf16.msra.mxu0 %v3533_v7  ;;  %v3529_v53 = vor.u32 %v4303_v45, %v3526_v48 }
 0x247   :  { %4499 = vpow2.f32 %v3510_v0  ;;  %1606 = vmatpush.bf16.msra.mxu2 %v3525_v42 }
 0x248   :  { %4501 = vpow2.f32 %v3511_v1 }
 0x249   :  { %v1287_v19 = vpop.f32.mrf.mxu2  ;;  %v1300_v24 = vpop.f32.mrf.mxu3  ;;  %1618 = vmatpush.bf16.msra.mxu3 %v3545_v18 }
 0x24a   :  { %v1306_v29 = vadd.f32 %v1287_v19, %v4745_v35  ;;  %v1263_v32 = vpop.f32.mrf.mxu0  ;;  %v1276_v30 = vpop.f32.mrf.mxu1  ;;  %1580 = vmatpush.bf16.msra.mxu0 %v3517_v22  ;;  %v1307_v3 = vadd.f32 %v1300_v24, %v4748_v38 }
 0x24c   :  { %v3512_v50 = vmul.f32 -1.442695, %v1306_v29 }
 0x24d   :  { %v4500_v52 = vpop.eup %4499  ;;  %1619 = vmatpush.bf16.msra.mxu3 %v3529_v53 }
 0x24e   :  { %v4502_v58 = vpop.eup %4501  ;;  %v1317_v62 = vadd.f32 1.0, %v4500_v52  ;;  %4503 = vpow2.f32 %v3512_v50 }
 0x24f   :  { %v1318_v35 = vadd.f32 1.0, %v4502_v58 }
 0x250   :  { %4505 = vrcp.f32 %v1317_v62  ;;  %v1331_v11 = vand.u32 2147483648, %v1317_v62  ;;  %v1329_v17 = vand.u32 2147483647, %v1317_v62  ;;  %vm1325_vm10 = vweird.f32 %v1317_v62 }
 0x251   :  { %4507 = vrcp.f32 %v1318_v35  ;;  %v1289_v63 = vpop.f32.mrf.mxu2  ;;  %v1302_v0 = vpop.f32.mrf.mxu3  ;;  %v1346_v23 = vand.u32 2147483648, %v1318_v35  ;;  %v1344_v12 = vand.u32 2147483647, %v1318_v35  ;;  %vm1340_vm11 = vweird.f32 %v1318_v35 }
 0x252   :  { %v1332_v24 = vor.u32 1.1754944e-38, %v1331_v11  ;;  %vm1330_vm14 = vcmp.eq.f32.partialorder %v1329_v17, 8.507059e+37  ;;  %v4362_v63 = vld [vmem:[#allocation5 + $0xe4] sm:$0xf]  ;;  %v4360_v11 = vld [vmem:[#allocation5 + $0xcc] sm:$0xf0] }
 0x253   :  { %v1347_v18 = vor.u32 1.1754944e-38, %v1346_v23  ;;  %vm1345_vm15 = vcmp.eq.f32.partialorder %v1344_v12, 8.507059e+37  ;;  %v4358_v23 = vld [vmem:[#allocation5 + $0xc4] sm:$0xf]  ;;  %v3746_v17 = vld [vmem:[#allocation5 + $0xd0] sm:$0xf0] }
 0x254   :  { %v4504_v1 = vpop.eup %4503  ;;  %v4361_v12 = vld [vmem:[#allocation5 + $0xd4] sm:$0xf0] }
 0x255   :  { %v1319_v56 = vadd.f32 1.0, %v4504_v1  ;;  %v3762_v1 = vld [vmem:[#allocation5 + $0xf0] sm:$0xf0] }
 0x256   :  { %v4506_v27 = vpop.eup %4505 }
 0x257   :  { %v4508_v16 = vpop.eup %4507  ;;  %v1321_v31 = vmul.f32 %v4506_v27, %v1317_v62  ;;  %4509 = vrcp.f32 %v1319_v56  ;;  %vm1326_vm8 = vweird.f32 %v4506_v27  ;;  %v1361_v42 = vand.u32 2147483648, %v1319_v56  ;;  %v3760_v62 = vld [vmem:[#allocation5 + $0xe0] sm:$0xf] }
 0x258   :  { %v1336_v44 = vmul.f32 %v4508_v16, %v1318_v35  ;;  %4511 = vtanh.f32 %v1307_v3  ;;  %vm1341_vm9 = vweird.f32 %v4508_v16  ;;  %vm1327_vm12 = vmor %vm1325_vm10, %vm1326_vm8  ;;  %vm1355_vm1 = vweird.f32 %v1319_v56  ;;  %v4364_v35 = vld [vmem:[#allocation5 + $0xec] sm:$0xf0] }
 0x259   :  { %v1322_v33 = vsub.f32 1.0, %v1321_v31  ;;  %vm1342_vm13 = vmor %vm1340_vm11, %vm1341_vm9  ;;  %v1359_v45 = vand.u32 2147483647, %v1319_v56  ;;  %v1362_v50 = vor.u32 1.1754944e-38, %v1361_v42  ;;  %v3761_v0 = vor.u32 %v4364_v35, %v3760_v62  ;;  %v4363_v31 = vld [vmem:[#allocation5 + $0xec] sm:$0xf] }
 0x25a   :  { %v1337_v7 = vsub.f32 1.0, %v1336_v44  ;;  %v3765_v3 = vor.u32 %v4362_v63, %v3762_v1  ;;  %v3770_v44 = vld [vmem:[#allocation5 + $0xf8] sm:$0xf0]  ;;  %v4351_v63 = vld [vmem:[#allocation5 + $0x8c] sm:$0xf] }
 0x25b   :  { %v1323_v21 = vmul.f32 %v4506_v27, %v1322_v33  ;;  %vm1360_vm3 = vcmp.eq.f32.partialorder %v1359_v45, 8.507059e+37  ;;  %1894 = vmatpush.bf16.msrb.mxu0 %v3761_v0  ;;  %v3773_v33 = vor.u32 %v4363_v31, %v3770_v44  ;;  %v3712_v45 = vld [vmem:[#allocation5 + $0x80] sm:$0xf]  ;;  %v3722_v0 = vld [vmem:[#allocation5 + $0x98] sm:$0xf0] }
 0x25c   :  { %v1338_v25 = vmul.f32 %v4508_v16, %v1337_v7  ;;  %1907 = vmatpush.bf16.msrb.mxu1 %v3765_v3  ;;  %v3744_v7 = vld [vmem:[#allocation5 + $0xc0] sm:$0xf]  ;;  %v3725_v1 = vor.u32 %v4351_v63, %v3722_v0  ;;  %v4346_v3 = vld [vmem:[#allocation5 + $0x64] sm:$0xf]  ;;  %v3698_v31 = vld [vmem:[#allocation5 + $0x70] sm:$0xf0] }
 0x25d   :  { %v4510_v14 = vpop.eup %4509  ;;  %v1324_v19 = vadd.f32 %v4506_v27, %v1323_v21  ;;  %1933 = vmatpush.bf16.msrb.mxu3 %v3773_v33  ;;  %v3745_v21 = vor.u32 %v4360_v11, %v3744_v7  ;;  %v3704_v44 = vld [vmem:[#allocation5 + $0x68] sm:$0xf]  ;;  %v4349_v33 = vld [vmem:[#allocation5 + $0x74] sm:$0xf0]  ;;  %v3701_v7 = vor.u32 %v4346_v3, %v3698_v31 }
 0x25e   :  { %v1351_v38 = vmul.f32 %v4510_v14, %v1319_v56  ;;  %v1339_v6 = vadd.f32 %v4508_v16, %v1338_v25  ;;  %v4512_v26 = vpop.eup %4511  ;;  %vm1356_vm0 = vweird.f32 %v4510_v14  ;;  %v3768_v56 = vld [vmem:[#allocation5 + $0xe8] sm:$0xf]  ;;  %v3705_v11 = vor.u32 %v4349_v33, %v3704_v44  ;;  %v3650_v33 = vld [vmem:[#allocation5 + $0x10] sm:$0xf0] }
 0x25f   :  { %v1328_v20 = vsel %vm1327_vm12, %v4506_v27, %v1324_v19  ;;  %vm1357_vm2 = vmor %vm1355_vm1, %vm1356_vm0  ;;  %v4365_v27 = vld [vmem:[#allocation5 + $0xf4] sm:$0xf0]  ;;  %v3752_v25 = vld [vmem:[#allocation5 + $0xc8] sm:$0xf]  ;;  %1895 = vmatpush.bf16.msrb.mxu0 %v3745_v21 }
 0x260   :  { %v1352_v28 = vsub.f32 1.0, %v1351_v38  ;;  %v1333_v29 = vsel %vm1330_vm14, %v1332_v24, %v1328_v20  ;;  %v1343_v32 = vsel %vm1342_vm13, %v4508_v16, %v1339_v6  ;;  %v3769_v16 = vor.u32 %v4365_v27, %v3768_v56  ;;  %v4359_v38 = vld [vmem:[#allocation5 + $0xcc] sm:$0xf]  ;;  %v3754_v24 = vld [vmem:[#allocation5 + $0xd8] sm:$0xf0] }
 0x261   :  { %v1348_v30 = vsel %vm1345_vm15, %v1347_v18, %v1343_v32  ;;  %v1367_v22 = vmul.f32 %v4512_v26, %v1333_v29  ;;  %v3753_v19 = vor.u32 %v4361_v12, %v3752_v25  ;;  %v3757_v6 = vor.u32 %v4359_v38, %v3754_v24  ;;  %v3728_v18 = vld [vmem:[#allocation5 + $0xa0] sm:$0xf]  ;;  %v4356_v20 = vld [vmem:[#allocation5 + $0xac] sm:$0xf0]  ;;  %v4354_v26 = vld [vmem:[#allocation5 + $0xa4] sm:$0xf] }
 0x262   :  { %v1353_v34 = vmul.f32 %v4510_v14, %v1352_v28  ;;  %v1366_v36 = vmul.f32 %v1348_v30, %v4829_v59  ;;  %1920 = vmatpush.bf16.msrb.mxu2 %v3769_v16  ;;  %v3729_v28 = vor.u32 %v4356_v20, %v3728_v18  ;;  %v3730_v29 = vld [vmem:[#allocation5 + $0xb0] sm:$0xf0]  ;;  %v3736_v32 = vld [vmem:[#allocation5 + $0xa8] sm:$0xf]  ;;  %v4357_v30 = vld [vmem:[#allocation5 + $0xb4] sm:$0xf0] }
 0x263   :  { %1934 = vmatpush.bf16.msrb.mxu3 %v3757_v6  ;;  %v3696_v56 = vld [vmem:[#allocation5 + $0x60] sm:$0xf]  ;;  %v4348_v27 = vld [vmem:[#allocation5 + $0x6c] sm:$0xf0]  ;;  %v3706_v21 = vld [vmem:[#allocation5 + $0x78] sm:$0xf0] }
 0x264   :  { %v4840_v37 = vadd.f32 %v1367_v22, %v1366_v36  ;;  %v1354_v40 = vadd.f32 %v4510_v14, %v1353_v34  ;;  %v3733_v22 = vor.u32 %v4354_v26, %v3730_v29  ;;  %v3737_v34 = vor.u32 %v4357_v30, %v3736_v32  ;;  %v4355_v36 = vld [vmem:[#allocation5 + $0xac] sm:$0xf]  ;;  %1896 = vmatpush.bf16.msrb.mxu0 %v3729_v28  ;;  %v3680_v38 = vld [vmem:[#allocation5 + $0x40] sm:$0xf]  ;;  %v4344_v24 = vld [vmem:[#allocation5 + $0x4c] sm:$0xf0] }
 0x265   :  { %v3697_v16 = vor.u32 %v4348_v27, %v3696_v56  ;;  %v4342_v6 = vld [vmem:[#allocation5 + $0x44] sm:$0xf]  ;;  %v3681_v18 = vor.u32 %v4344_v24, %v3680_v38  ;;  %v3682_v20 = vld [vmem:[#allocation5 + $0x50] sm:$0xf0]  ;;  %v3688_v26 = vld [vmem:[#allocation5 + $0x48] sm:$0xf] }
 0x266   :  { %4513 = vtanh.f32 %v4840_v37  ;;  %v1358_v48 = vsel %vm1357_vm2, %v4510_v14, %v1354_v40  ;;  %v3749_v14 = vor.u32 %v4358_v23, %v3746_v17  ;;  %1921 = vmatpush.bf16.msrb.mxu2 %v3753_v19  ;;  %v3738_v40 = vld [vmem:[#allocation5 + $0xb8] sm:$0xf0]  ;;  %v4347_v23 = vld [vmem:[#allocation5 + $0x6c] sm:$0xf]  ;;  %v4345_v28 = vld [vmem:[#allocation5 + $0x54] sm:$0xf0]  ;;  %v3685_v30 = vor.u32 %v4342_v6, %v3682_v20 }
 0x267   :  { %v1363_v53 = vsel %vm1360_vm3, %v1362_v50, %v1358_v48  ;;  %v3741_v42 = vor.u32 %v4355_v36, %v3738_v40  ;;  %v4352_v48 = vld [vmem:[#allocation5 + $0x8c] sm:$0xf0]  ;;  %v4350_v50 = vld [vmem:[#allocation5 + $0x84] sm:$0xf]  ;;  %v3709_v12 = vor.u32 %v4347_v23, %v3706_v21  ;;  %v3690_v36 = vld [vmem:[#allocation5 + $0x58] sm:$0xf0] }
 0x268   :  { %1908 = vmatpush.bf16.msrb.mxu1 %v3749_v14  ;;  %v4340_v40 = vld [vmem:[#allocation5 + $0x2c] sm:$0xf0]  ;;  %v4334_v27 = vld [vmem:[#allocation5 + $0x4] sm:$0xf] }
 0x269   :  { %1935 = vmatpush.bf16.msrb.mxu3 %v3741_v42  ;;  %v4336_v56 = vld [vmem:[#allocation5 + $0xc] sm:$0xf0]  ;;  %v3653_v23 = vor.u32 %v4334_v27, %v3650_v33 }
 0x26a   :  { %1922 = vmatpush.bf16.msrb.mxu2 %v3737_v34  ;;  %v4343_v34 = vld [vmem:[#allocation5 + $0x4c] sm:$0xf] }
 0x26c   :  { %v4514_v52 = vpop.eup %4513  ;;  %1909 = vmatpush.bf16.msrb.mxu1 %v3733_v22  ;;  %v3689_v22 = vor.u32 %v4345_v28, %v3688_v26 }
 0x26d   :  { %v1370_v58 = vmul.f32 %v4514_v52, %v1363_v53  ;;  %v3713_v52 = vor.u32 %v4352_v48, %v3712_v45  ;;  %v3714_v53 = vld [vmem:[#allocation5 + $0x90] sm:$0xf0]  ;;  %1936 = vmatpush.bf16.msrb.mxu3 %v3725_v1  ;;  %v4338_v45 = vld [vmem:[#allocation5 + $0x24] sm:$0xf]  ;;  %v3648_v1 = vld [vmem:[#allocation5] sm:$0xf] }
 0x26e   :  { %v3717_v62 = vor.u32 %v4350_v50, %v3714_v53  ;;  %v3666_v48 = vld [vmem:[#allocation5 + $0x30] sm:$0xf0]  ;;  %v3672_v50 = vld [vmem:[#allocation5 + $0x28] sm:$0xf]  ;;  %v4341_v53 = vld [vmem:[#allocation5 + $0x34] sm:$0xf0]  ;;  %v3649_v44 = vor.u32 %v4336_v56, %v3648_v1 }
 0x26f   :  { %3513 = vst [vmem:[%s4902_s4 + $0x10] sm:$0xff] %v1370_v58  ;;  %v1380_v59 = vpack.c.bf16 %v1370_v58, %v1370_v58  ;;  %v3720_v58 = vld [vmem:[#allocation5 + $0x88] sm:$0xf]  ;;  %1897 = vmatpush.bf16.msrb.mxu0 %v3713_v52  ;;  %v3669_v52 = vor.u32 %v4338_v45, %v3666_v48  ;;  %v3673_v63 = vor.u32 %v4341_v53, %v3672_v50 }
 0x270   :  { %1910 = vmatpush.bf16.msrb.mxu1 %v3717_v62 }
 0x271   :  { %1581 = vmatmul.bf16.vlgmr.msra.gmra.mxu0 %v1380_v59  ;;  %1594 = vmatmul.bf16.vlgmr.msra.gmra.mxu1 %v1380_v59 }
 0x272   :  { %1607 = vmatmul.bf16.vlgmr.msra.gmra.mxu2 %v1380_v59  ;;  %1620 = vmatmul.bf16.vlgmr.msra.gmra.mxu3 %v1380_v59  ;;  %v4353_v59 = vld [vmem:[#allocation5 + $0x94] sm:$0xf0] }
 0x273   :  { %v3721_v35 = vor.u32 %v4353_v59, %v3720_v58  ;;  %1898 = vmatpush.bf16.msrb.mxu0 %v3697_v16  ;;  %1937 = vmatpush.bf16.msrb.mxu3 %v3709_v12  ;;  %v4339_v58 = vld [vmem:[#allocation5 + $0x2c] sm:$0xf]  ;;  %v3674_v59 = vld [vmem:[#allocation5 + $0x38] sm:$0xf0] }
 0x274   :  { %1911 = vmatpush.bf16.msrb.mxu1 %v3701_v7  ;;  %v3677_v0 = vor.u32 %v4339_v58, %v3674_v59  ;;  %v3656_v7 = vld [vmem:[#allocation5 + $0x8] sm:$0xf] }
 0x275   :  { %1923 = vmatpush.bf16.msrb.mxu2 %v3721_v35 }
 0x277   :  { %1899 = vmatpush.bf16.msrb.mxu0 %v3681_v18 }
 0x278   :  { %1912 = vmatpush.bf16.msrb.mxu1 %v3685_v30 }
 0x279   :  { %1924 = vmatpush.bf16.msrb.mxu2 %v3705_v11  ;;  %v4337_v11 = vld [vmem:[#allocation5 + $0x14] sm:$0xf0] }
 0x27a   :  { %v3657_v21 = vor.u32 %v4337_v11, %v3656_v7 }
 0x27c   :  { %1913 = vmatpush.bf16.msrb.mxu1 %v3669_v52 }
 0x27d   :  { %1925 = vmatpush.bf16.msrb.mxu2 %v3689_v22 }
 0x280   :  { %1914 = vmatpush.bf16.msrb.mxu1 %v3653_v23 }
 0x281   :  { %1926 = vmatpush.bf16.msrb.mxu2 %v3673_v63 }
 0x285   :  { %1927 = vmatpush.bf16.msrb.mxu2 %v3657_v21 }
 0x2ee   :  { %v1582_v17 = vpop.f32.mrf.mxu0  ;;  %v1595_v25 = vpop.f32.mrf.mxu1 }
 0x2ef   :  { %v1625_v14 = vadd.f32 %v1582_v17, %v4751_v39  ;;  %v1626_v19 = vadd.f32 %v1595_v25, %v4754_v41  ;;  %v3664_v39 = vld [vmem:[#allocation5 + $0x20] sm:$0xf]  ;;  %v3693_v41 = vor.u32 %v4343_v34, %v3690_v36  ;;  %v4335_v17 = vld [vmem:[#allocation5 + $0xc] sm:$0xf]  ;;  %v3658_v25 = vld [vmem:[#allocation5 + $0x18] sm:$0xf0] }
 0x2f0   :  { %v3665_v42 = vor.u32 %v4340_v40, %v3664_v39 }
 0x2f1   :  { %v3642_v29 = vmul.f32 -1.442695, %v1625_v14  ;;  %v3643_v32 = vmul.f32 -1.442695, %v1626_v19  ;;  %1938 = vmatpush.bf16.msrb.mxu3 %v3693_v41  ;;  %v3661_v19 = vor.u32 %v4335_v17, %v3658_v25 }
 0x2f2   :  { %1900 = vmatpush.bf16.msrb.mxu0 %v3665_v42 }
 0x2f3   :  { %4515 = vpow2.f32 %v3642_v29 }
 0x2f4   :  { %4517 = vpow2.f32 %v3643_v32 }
 0x2f5   :  { %v1608_v62 = vpop.f32.mrf.mxu2  ;;  %v1621_v35 = vpop.f32.mrf.mxu3  ;;  %1939 = vmatpush.bf16.msrb.mxu3 %v3677_v0 }
 0x2f6   :  { %v1627_v3 = vadd.f32 %v1608_v62, %v4757_v43  ;;  %v1584_v16 = vpop.f32.mrf.mxu0  ;;  %v1597_v31 = vpop.f32.mrf.mxu1  ;;  %1901 = vmatpush.bf16.msrb.mxu0 %v3649_v44  ;;  %v1628_v29 = vadd.f32 %v1621_v35, %v4760_v46 }
 0x2f8   :  { %v3644_v12 = vmul.f32 -1.442695, %v1627_v3 }
 0x2f9   :  { %v4516_v14 = vpop.eup %4515  ;;  %1940 = vmatpush.bf16.msrb.mxu3 %v3661_v19  ;;  %v4394_v19 = vld [vmem:[#allocation5 + $0xe4] sm:$0xf] }
 0x2fa   :  { %v4518_v38 = vpop.eup %4517  ;;  %v1638_v24 = vadd.f32 1.0, %v4516_v14  ;;  %4519 = vpow2.f32 %v3644_v12  ;;  %v3892_v12 = vld [vmem:[#allocation5 + $0xe0] sm:$0xf]  ;;  %v4396_v14 = vld [vmem:[#allocation5 + $0xec] sm:$0xf0] }
 0x2fb   :  { %v1639_v43 = vadd.f32 1.0, %v4518_v38  ;;  %v3893_v38 = vor.u32 %v4396_v14, %v3892_v12  ;;  %v3828_v14 = vld [vmem:[#allocation5 + $0x60] sm:$0xf] }
 0x2fc   :  { %4521 = vrcp.f32 %v1638_v24  ;;  %v1652_v39 = vand.u32 2147483648, %v1638_v24  ;;  %v1650_v42 = vand.u32 2147483647, %v1638_v24  ;;  %vm1646_vm6 = vweird.f32 %v1638_v24 }
 0x2fd   :  { %4523 = vrcp.f32 %v1639_v43  ;;  %v1610_v6 = vpop.f32.mrf.mxu2  ;;  %v1623_v18 = vpop.f32.mrf.mxu3  ;;  %v1667_v40 = vand.u32 2147483648, %v1639_v43  ;;  %v1665_v48 = vand.u32 2147483647, %v1639_v43  ;;  %vm1661_vm7 = vweird.f32 %v1639_v43  ;;  %2215 = vmatpush.bf16.msra.mxu0 %v3893_v38  ;;  %v4378_v38 = vld [vmem:[#allocation5 + $0x64] sm:$0xf] }
 0x2fe   :  { %v1653_v53 = vor.u32 1.1754944e-38, %v1652_v39  ;;  %vm1651_vm10 = vcmp.eq.f32.partialorder %v1650_v42, 8.507059e+37  ;;  %v4397_v6 = vld [vmem:[#allocation5 + $0xf4] sm:$0xf0]  ;;  %v3884_v39 = vld [vmem:[#allocation5 + $0xc8] sm:$0xf] }
 0x2ff   :  { %v1668_v59 = vor.u32 1.1754944e-38, %v1667_v40  ;;  %vm1666_vm11 = vcmp.eq.f32.partialorder %v1665_v48, 8.507059e+37  ;;  %v4393_v40 = vld [vmem:[#allocation5 + $0xd4] sm:$0xf0]  ;;  %v3886_v48 = vld [vmem:[#allocation5 + $0xd8] sm:$0xf0] }
 0x300   :  { %v4520_v20 = vpop.eup %4519  ;;  %v3885_v42 = vor.u32 %v4393_v40, %v3884_v39  ;;  %v3812_v39 = vld [vmem:[#allocation5 + $0x40] sm:$0xf]  ;;  %v4376_v40 = vld [vmem:[#allocation5 + $0x4c] sm:$0xf0] }
 0x301   :  { %v1640_v26 = vadd.f32 1.0, %v4520_v20 }
 0x302   :  { %v4522_v28 = vpop.eup %4521 }
 0x303   :  { %v4524_v32 = vpop.eup %4523  ;;  %v1642_v30 = vmul.f32 %v4522_v28, %v1638_v24  ;;  %4525 = vrcp.f32 %v1640_v26  ;;  %vm1647_vm4 = vweird.f32 %v4522_v28  ;;  %v1682_v33 = vand.u32 2147483648, %v1640_v26  ;;  %v3894_v24 = vld [vmem:[#allocation5 + $0xf0] sm:$0xf0] }
 0x304   :  { %v1657_v22 = vmul.f32 %v4524_v32, %v1639_v43  ;;  %4527 = vtanh.f32 %v1628_v29  ;;  %vm1662_vm5 = vweird.f32 %v4524_v32  ;;  %vm1648_vm8 = vmor %vm1646_vm6, %vm1647_vm4  ;;  %vm1676_vm13 = vweird.f32 %v1640_v26  ;;  %v3900_v43 = vld [vmem:[#allocation5 + $0xe8] sm:$0xf] }
 0x305   :  { %v1643_v34 = vsub.f32 1.0, %v1642_v30  ;;  %vm1663_vm9 = vmor %vm1661_vm7, %vm1662_vm5  ;;  %v1680_v7 = vand.u32 2147483647, %v1640_v26  ;;  %v1683_v23 = vor.u32 1.1754944e-38, %v1682_v33  ;;  %v3897_v18 = vor.u32 %v4394_v19, %v3894_v24  ;;  %v4392_v30 = vld [vmem:[#allocation5 + $0xcc] sm:$0xf0] }
 0x306   :  { %v1658_v36 = vsub.f32 1.0, %v1657_v22  ;;  %v3901_v20 = vor.u32 %v4397_v6, %v3900_v43  ;;  %v4390_v22 = vld [vmem:[#allocation5 + $0xc4] sm:$0xf]  ;;  %v4380_v19 = vld [vmem:[#allocation5 + $0x6c] sm:$0xf0] }
 0x307   :  { %v1644_v41 = vmul.f32 %v4522_v28, %v1643_v34  ;;  %vm1681_vm15 = vcmp.eq.f32.partialorder %v1680_v7, 8.507059e+37  ;;  %2228 = vmatpush.bf16.msra.mxu1 %v3897_v18  ;;  %v3846_v7 = vld [vmem:[#allocation5 + $0x90] sm:$0xf0]  ;;  %v3829_v24 = vor.u32 %v4380_v19, %v3828_v14  ;;  %v3836_v6 = vld [vmem:[#allocation5 + $0x68] sm:$0xf] }
 0x308   :  { %v1659_v45 = vmul.f32 %v4524_v32, %v1658_v36  ;;  %2241 = vmatpush.bf16.msra.mxu2 %v3901_v20  ;;  %v3878_v36 = vld [vmem:[#allocation5 + $0xd0] sm:$0xf0]  ;;  %v4381_v18 = vld [vmem:[#allocation5 + $0x74] sm:$0xf0] }
 0x309   :  { %v4526_v50 = vpop.eup %4525  ;;  %v1645_v52 = vadd.f32 %v4522_v28, %v1644_v41  ;;  %v3881_v41 = vor.u32 %v4390_v22, %v3878_v36  ;;  %v3830_v43 = vld [vmem:[#allocation5 + $0x70] sm:$0xf0] }
 0x30a   :  { %v1672_v46 = vmul.f32 %v4526_v50, %v1640_v26  ;;  %v1660_v58 = vadd.f32 %v4524_v32, %v1659_v45  ;;  %v4528_v35 = vpop.eup %4527  ;;  %vm1677_vm12 = vweird.f32 %v4526_v50  ;;  %v4395_v26 = vld [vmem:[#allocation5 + $0xec] sm:$0xf]  ;;  %v3833_v20 = vor.u32 %v4378_v38, %v3830_v43  ;;  %v3782_v38 = vld [vmem:[#allocation5 + $0x10] sm:$0xf0]  ;;  %v4369_v43 = vld [vmem:[#allocation5 + $0x14] sm:$0xf0] }
 0x30b   :  { %v1649_v62 = vsel %vm1648_vm8, %v4522_v28, %v1645_v52  ;;  %vm1678_vm14 = vmor %vm1676_vm13, %vm1677_vm12  ;;  %v3902_v28 = vld [vmem:[#allocation5 + $0xf8] sm:$0xf0]  ;;  %v4391_v45 = vld [vmem:[#allocation5 + $0xcc] sm:$0xf]  ;;  %2229 = vmatpush.bf16.msra.mxu1 %v3881_v41 }
 0x30c   :  { %v1673_v63 = vsub.f32 1.0, %v1672_v46  ;;  %v1654_v0 = vsel %vm1651_vm10, %v1653_v53, %v1649_v62  ;;  %v1664_v1 = vsel %vm1663_vm9, %v4524_v32, %v1660_v58  ;;  %v3905_v29 = vor.u32 %v4395_v26, %v3902_v28  ;;  %v3876_v32 = vld [vmem:[#allocation5 + $0xc0] sm:$0xf]  ;;  %2242 = vmatpush.bf16.msra.mxu2 %v3885_v42  ;;  %v4388_v46 = vld [vmem:[#allocation5 + $0xac] sm:$0xf0] }
 0x30d   :  { %v1669_v56 = vsel %vm1666_vm11, %v1668_v59, %v1664_v1  ;;  %v1688_v27 = vmul.f32 %v4528_v35, %v1654_v0  ;;  %v3877_v34 = vor.u32 %v4392_v30, %v3876_v32  ;;  %v3860_v52 = vld [vmem:[#allocation5 + $0xa0] sm:$0xf]  ;;  %v4386_v53 = vld [vmem:[#allocation5 + $0xa4] sm:$0xf]  ;;  %v3862_v59 = vld [vmem:[#allocation5 + $0xb0] sm:$0xf0]  ;;  %v3837_v26 = vor.u32 %v4381_v18, %v3836_v6 }
 0x30e   :  { %v1674_v3 = vmul.f32 %v4526_v50, %v1673_v63  ;;  %v1687_v16 = vmul.f32 %v1669_v56, %v4840_v37  ;;  %2254 = vmatpush.bf16.msra.mxu3 %v3905_v29  ;;  %v3861_v58 = vor.u32 %v4388_v46, %v3860_v52  ;;  %v3868_v62 = vld [vmem:[#allocation5 + $0xa8] sm:$0xf]  ;;  %v4389_v35 = vld [vmem:[#allocation5 + $0xb4] sm:$0xf0]  ;;  %v3865_v63 = vor.u32 %v4386_v53, %v3862_v59  ;;  %v4387_v1 = vld [vmem:[#allocation5 + $0xac] sm:$0xf] }
 0x30f   :  { %2216 = vmatpush.bf16.msra.mxu0 %v3877_v34  ;;  %v3869_v0 = vor.u32 %v4389_v35, %v3868_v62  ;;  %v3870_v56 = vld [vmem:[#allocation5 + $0xb8] sm:$0xf0]  ;;  %v4379_v28 = vld [vmem:[#allocation5 + $0x6c] sm:$0xf]  ;;  %v4374_v41 = vld [vmem:[#allocation5 + $0x44] sm:$0xf]  ;;  %v3813_v42 = vor.u32 %v4376_v40, %v3812_v39 }
 0x310   :  { %v4851_v31 = vadd.f32 %v1688_v27, %v1687_v16  ;;  %v1675_v44 = vadd.f32 %v4526_v50, %v1674_v3  ;;  %v3873_v27 = vor.u32 %v4387_v1, %v3870_v56  ;;  %2230 = vmatpush.bf16.msra.mxu1 %v3865_v63  ;;  %v3844_v3 = vld [vmem:[#allocation5 + $0x80] sm:$0xf]  ;;  %v4384_v16 = vld [vmem:[#allocation5 + $0x8c] sm:$0xf0]  ;;  %v3838_v29 = vld [vmem:[#allocation5 + $0x78] sm:$0xf0] }
 0x311   :  { %2243 = vmatpush.bf16.msra.mxu2 %v3869_v0  ;;  %v3845_v33 = vor.u32 %v4384_v16, %v3844_v3  ;;  %v3841_v22 = vor.u32 %v4379_v28, %v3838_v29  ;;  %v4375_v59 = vld [vmem:[#allocation5 + $0x4c] sm:$0xf]  ;;  %v3822_v62 = vld [vmem:[#allocation5 + $0x58] sm:$0xf0]  ;;  %v4372_v35 = vld [vmem:[#allocation5 + $0x2c] sm:$0xf0] }
 0x312   :  { %4529 = vtanh.f32 %v4851_v31  ;;  %v1679_v11 = vsel %vm1678_vm14, %v4526_v50, %v1675_v44  ;;  %v3889_v50 = vor.u32 %v4391_v45, %v3886_v48  ;;  %v4382_v44 = vld [vmem:[#allocation5 + $0x84] sm:$0xf]  ;;  %v3814_v45 = vld [vmem:[#allocation5 + $0x50] sm:$0xf0]  ;;  %v3820_v48 = vld [vmem:[#allocation5 + $0x48] sm:$0xf] }
 0x313   :  { %v1684_v17 = vsel %vm1681_vm15, %v1683_v23, %v1679_v11  ;;  %2217 = vmatpush.bf16.msra.mxu0 %v3861_v58  ;;  %v3852_v11 = vld [vmem:[#allocation5 + $0x88] sm:$0xf]  ;;  %v4385_v23 = vld [vmem:[#allocation5 + $0x94] sm:$0xf0]  ;;  %v3817_v53 = vor.u32 %v4374_v41, %v3814_v45  ;;  %v4370_v0 = vld [vmem:[#allocation5 + $0x24] sm:$0xf] }
 0x314   :  { %2255 = vmatpush.bf16.msra.mxu3 %v3889_v50  ;;  %v4377_v50 = vld [vmem:[#allocation5 + $0x54] sm:$0xf0]  ;;  %v3798_v1 = vld [vmem:[#allocation5 + $0x30] sm:$0xf0]  ;;  %v3804_v56 = vld [vmem:[#allocation5 + $0x28] sm:$0xf] }
 0x315   :  { %v3821_v58 = vor.u32 %v4377_v50, %v3820_v48  ;;  %v4373_v3 = vld [vmem:[#allocation5 + $0x34] sm:$0xf0]  ;;  %v4371_v16 = vld [vmem:[#allocation5 + $0x2c] sm:$0xf] }
 0x317   :  { %2218 = vmatpush.bf16.msra.mxu0 %v3845_v33 }
 0x318   :  { %v4530_v21 = vpop.eup %4529  ;;  %2256 = vmatpush.bf16.msra.mxu3 %v3873_v27  ;;  %v3801_v27 = vor.u32 %v4370_v0, %v3798_v1 }
 0x319   :  { %v1691_v25 = vmul.f32 %v4530_v21, %v1684_v17  ;;  %v3849_v21 = vor.u32 %v4382_v44, %v3846_v7  ;;  %v3853_v17 = vor.u32 %v4385_v23, %v3852_v11  ;;  %v3806_v44 = vld [vmem:[#allocation5 + $0x38] sm:$0xf0]  ;;  %v3805_v11 = vor.u32 %v4373_v3, %v3804_v56 }
 0x31a   :  { %v3809_v23 = vor.u32 %v4371_v16, %v3806_v44 }
 0x31b   :  { %3645 = vst [vmem:[%s4902_s4 + $0x18] sm:$0xff] %v1691_v25  ;;  %v1701_v37 = vpack.c.bf16 %v1691_v25, %v1691_v25  ;;  %v4383_v25 = vld [vmem:[#allocation5 + $0x8c] sm:$0xf]  ;;  %2231 = vmatpush.bf16.msra.mxu1 %v3849_v21  ;;  %2244 = vmatpush.bf16.msra.mxu2 %v3853_v17  ;;  %v3780_v21 = vld [vmem:[#allocation5] sm:$0xf] }
 0x31c   :  { %2219 = vmatpush.bf16.msra.mxu0 %v3829_v24  ;;  %v4368_v17 = vld [vmem:[#allocation5 + $0xc] sm:$0xf0]  ;;  %v3788_v24 = vld [vmem:[#allocation5 + $0x8] sm:$0xf] }
 0x31d   :  { %1902 = vmatmul.bf16.vlgmr.msrb.gmra.mxu0 %v1701_v37  ;;  %1915 = vmatmul.bf16.vlgmr.msrb.gmra.mxu1 %v1701_v37  ;;  %v3781_v19 = vor.u32 %v4368_v17, %v3780_v21  ;;  %v3789_v18 = vor.u32 %v4369_v43, %v3788_v24 }
 0x31e   :  { %1928 = vmatmul.bf16.vlgmr.msrb.gmra.mxu2 %v1701_v37  ;;  %1941 = vmatmul.bf16.vlgmr.msrb.gmra.mxu3 %v1701_v37  ;;  %v3854_v37 = vld [vmem:[#allocation5 + $0x98] sm:$0xf0] }
 0x31f   :  { %v3857_v12 = vor.u32 %v4383_v25, %v3854_v37  ;;  %2232 = vmatpush.bf16.msra.mxu1 %v3833_v20  ;;  %2245 = vmatpush.bf16.msra.mxu2 %v3837_v26  ;;  %v4366_v25 = vld [vmem:[#allocation5 + $0x4] sm:$0xf]  ;;  %v4367_v20 = vld [vmem:[#allocation5 + $0xc] sm:$0xf]  ;;  %v3790_v26 = vld [vmem:[#allocation5 + $0x18] sm:$0xf0] }
 0x320   :  { %2220 = vmatpush.bf16.msra.mxu0 %v3813_v42  ;;  %v3785_v6 = vor.u32 %v4366_v25, %v3782_v38 }
 0x321   :  { %2257 = vmatpush.bf16.msra.mxu3 %v3857_v12 }
 0x323   :  { %2233 = vmatpush.bf16.msra.mxu1 %v3817_v53  ;;  %2246 = vmatpush.bf16.msra.mxu2 %v3821_v58 }
 0x325   :  { %2258 = vmatpush.bf16.msra.mxu3 %v3841_v22 }
 0x327   :  { %2234 = vmatpush.bf16.msra.mxu1 %v3801_v27  ;;  %2247 = vmatpush.bf16.msra.mxu2 %v3805_v11 }
 0x32b   :  { %2235 = vmatpush.bf16.msra.mxu1 %v3785_v6  ;;  %2248 = vmatpush.bf16.msra.mxu2 %v3789_v18  ;;  %v4024_v6 = vld [vmem:[#allocation5 + $0xe0] sm:$0xf]  ;;  %v4428_v18 = vld [vmem:[#allocation5 + $0xec] sm:$0xf0] }
 0x39a   :  { %v1903_v32 = vpop.f32.mrf.mxu0  ;;  %v1916_v30 = vpop.f32.mrf.mxu1 }
 0x39b   :  { %v1946_v34 = vadd.f32 %v1903_v32, %v4763_v47  ;;  %v1947_v36 = vadd.f32 %v1916_v30, %v4766_v49  ;;  %v3796_v47 = vld [vmem:[#allocation5 + $0x20] sm:$0xf]  ;;  %v3825_v49 = vor.u32 %v4375_v59, %v3822_v62  ;;  %v3793_v32 = vor.u32 %v4367_v20, %v3790_v26  ;;  %v4426_v20 = vld [vmem:[#allocation5 + $0xe4] sm:$0xf] }
 0x39c   :  { %v3797_v63 = vor.u32 %v4372_v35, %v3796_v47  ;;  %v4025_v26 = vor.u32 %v4428_v18, %v4024_v6  ;;  %v3962_v18 = vld [vmem:[#allocation5 + $0x70] sm:$0xf0] }
 0x39d   :  { %v3774_v52 = vmul.f32 -1.442695, %v1946_v34  ;;  %v3775_v46 = vmul.f32 -1.442695, %v1947_v36  ;;  %2259 = vmatpush.bf16.msra.mxu3 %v3825_v49 }
 0x39e   :  { %2221 = vmatpush.bf16.msra.mxu0 %v3797_v63 }
 0x39f   :  { %4531 = vpow2.f32 %v3774_v52 }
 0x3a0   :  { %4533 = vpow2.f32 %v3775_v46 }
 0x3a1   :  { %v1929_v33 = vpop.f32.mrf.mxu2  ;;  %v1942_v7 = vpop.f32.mrf.mxu3  ;;  %2260 = vmatpush.bf16.msra.mxu3 %v3809_v23 }
 0x3a2   :  { %v1948_v37 = vadd.f32 %v1929_v33, %v4769_v51  ;;  %v1905_v12 = vpop.f32.mrf.mxu0  ;;  %v1918_v14 = vpop.f32.mrf.mxu1  ;;  %2222 = vmatpush.bf16.msra.mxu0 %v3781_v19  ;;  %v1949_v42 = vadd.f32 %v1942_v7, %v4772_v54 }
 0x3a4   :  { %v3776_v28 = vmul.f32 -1.442695, %v1948_v37 }
 0x3a5   :  { %v4532_v29 = vpop.eup %4531  ;;  %2261 = vmatpush.bf16.msra.mxu3 %v3793_v32  ;;  %v4429_v32 = vld [vmem:[#allocation5 + $0xf4] sm:$0xf0] }
 0x3a6   :  { %v4534_v30 = vpop.eup %4533  ;;  %v1959_v22 = vadd.f32 1.0, %v4532_v29  ;;  %4535 = vpow2.f32 %v3776_v28  ;;  %v4026_v28 = vld [vmem:[#allocation5 + $0xf0] sm:$0xf0]  ;;  %v4032_v29 = vld [vmem:[#allocation5 + $0xe8] sm:$0xf]  ;;  %2536 = vmatpush.bf16.msrb.mxu0 %v4025_v26 }
 0x3a7   :  { %v1960_v51 = vadd.f32 1.0, %v4534_v30  ;;  %v4029_v30 = vor.u32 %v4426_v20, %v4026_v28  ;;  %v3968_v20 = vld [vmem:[#allocation5 + $0x68] sm:$0xf]  ;;  %v4413_v26 = vld [vmem:[#allocation5 + $0x74] sm:$0xf0] }
 0x3a8   :  { %4537 = vrcp.f32 %v1959_v22  ;;  %v1973_v53 = vand.u32 2147483648, %v1959_v22  ;;  %v1971_v62 = vand.u32 2147483647, %v1959_v22  ;;  %vm1967_vm2 = vweird.f32 %v1959_v22 }
 0x3a9   :  { %4539 = vrcp.f32 %v1960_v51  ;;  %v1931_v34 = vpop.f32.mrf.mxu2  ;;  %v1944_v36 = vpop.f32.mrf.mxu3  ;;  %v1988_v58 = vand.u32 2147483648, %v1960_v51  ;;  %v1986_v35 = vand.u32 2147483647, %v1960_v51  ;;  %vm1982_vm3 = vweird.f32 %v1960_v51  ;;  %2549 = vmatpush.bf16.msrb.mxu1 %v4029_v30  ;;  %v3970_v30 = vld [vmem:[#allocation5 + $0x78] sm:$0xf0] }
 0x3aa   :  { %v1974_v0 = vor.u32 1.1754944e-38, %v1973_v53  ;;  %vm1972_vm6 = vcmp.eq.f32.partialorder %v1971_v62, 8.507059e+37  ;;  %v4034_v34 = vld [vmem:[#allocation5 + $0xf8] sm:$0xf0]  ;;  %v4423_v53 = vld [vmem:[#allocation5 + $0xcc] sm:$0xf] }
 0x3ab   :  { %v1989_v56 = vor.u32 1.1754944e-38, %v1988_v58  ;;  %vm1987_vm7 = vcmp.eq.f32.partialorder %v1986_v35, 8.507059e+37  ;;  %v4018_v58 = vld [vmem:[#allocation5 + $0xd8] sm:$0xf0]  ;;  %v3992_v62 = vld [vmem:[#allocation5 + $0xa0] sm:$0xf] }
 0x3ac   :  { %v4536_v39 = vpop.eup %4535  ;;  %v4418_v35 = vld [vmem:[#allocation5 + $0xa4] sm:$0xf] }
 0x3ad   :  { %v1961_v40 = vadd.f32 1.0, %v4536_v39  ;;  %v4008_v39 = vld [vmem:[#allocation5 + $0xc0] sm:$0xf] }
 0x3ae   :  { %v4538_v41 = vpop.eup %4537 }
 0x3af   :  { %v4540_v45 = vpop.eup %4539  ;;  %v1963_v48 = vmul.f32 %v4538_v41, %v1959_v22  ;;  %4541 = vrcp.f32 %v1961_v40  ;;  %vm1968_vm0 = vweird.f32 %v4538_v41  ;;  %v2003_v37 = vand.u32 2147483648, %v1961_v40 }
 0x3b0   :  { %v1978_v50 = vmul.f32 %v4540_v45, %v1960_v51  ;;  %4543 = vtanh.f32 %v1949_v42  ;;  %vm1983_vm1 = vweird.f32 %v4540_v45  ;;  %vm1969_vm4 = vmor %vm1967_vm2, %vm1968_vm0  ;;  %vm1997_vm9 = vweird.f32 %v1961_v40  ;;  %v4427_v51 = vld [vmem:[#allocation5 + $0xec] sm:$0xf] }
 0x3b1   :  { %v1964_v52 = vsub.f32 1.0, %v1963_v48  ;;  %vm1984_vm5 = vmor %vm1982_vm3, %vm1983_vm1  ;;  %v2001_v12 = vand.u32 2147483647, %v1961_v40  ;;  %v2004_v19 = vor.u32 1.1754944e-38, %v2003_v37  ;;  %v4033_v22 = vor.u32 %v4429_v32, %v4032_v29  ;;  %v4016_v48 = vld [vmem:[#allocation5 + $0xc8] sm:$0xf] }
 0x3b2   :  { %v1979_v46 = vsub.f32 1.0, %v1978_v50  ;;  %v4037_v36 = vor.u32 %v4427_v51, %v4034_v34  ;;  %v4425_v50 = vld [vmem:[#allocation5 + $0xd4] sm:$0xf0]  ;;  %v3969_v29 = vor.u32 %v4413_v26, %v3968_v20  ;;  %v4411_v32 = vld [vmem:[#allocation5 + $0x6c] sm:$0xf] }
 0x3b3   :  { %v1965_v59 = vmul.f32 %v4538_v41, %v1964_v52  ;;  %vm2002_vm11 = vcmp.eq.f32.partialorder %v2001_v12, 8.507059e+37  ;;  %2562 = vmatpush.bf16.msrb.mxu2 %v4033_v22  ;;  %v3973_v34 = vor.u32 %v4411_v32, %v3970_v30 }
 0x3b4   :  { %v1980_v47 = vmul.f32 %v4540_v45, %v1979_v46  ;;  %2575 = vmatpush.bf16.msrb.mxu3 %v4037_v36  ;;  %v4017_v46 = vor.u32 %v4425_v50, %v4016_v48  ;;  %v3946_v48 = vld [vmem:[#allocation5 + $0x50] sm:$0xf0]  ;;  %v3952_v50 = vld [vmem:[#allocation5 + $0x48] sm:$0xf] }
 0x3b5   :  { %v4542_v49 = vpop.eup %4541  ;;  %v1966_v63 = vadd.f32 %v4538_v41, %v1965_v59  ;;  %v4021_v59 = vor.u32 %v4423_v53, %v4018_v58 }
 0x3b6   :  { %v1993_v54 = vmul.f32 %v4542_v49, %v1961_v40  ;;  %v1981_v1 = vadd.f32 %v4540_v45, %v1980_v47  ;;  %v4544_v3 = vpop.eup %4543  ;;  %vm1998_vm8 = vweird.f32 %v4542_v49  ;;  %v4424_v40 = vld [vmem:[#allocation5 + $0xcc] sm:$0xf0] }
 0x3b7   :  { %v1970_v27 = vsel %vm1969_vm4, %v4538_v41, %v1966_v63  ;;  %vm1999_vm10 = vmor %vm1997_vm9, %vm1998_vm8  ;;  %v4422_v41 = vld [vmem:[#allocation5 + $0xc4] sm:$0xf]  ;;  %v4009_v42 = vor.u32 %v4424_v40, %v4008_v39  ;;  %2563 = vmatpush.bf16.msrb.mxu2 %v4017_v46  ;;  %v4420_v47 = vld [vmem:[#allocation5 + $0xac] sm:$0xf0] }
 0x3b8   :  { %v1994_v16 = vsub.f32 1.0, %v1993_v54  ;;  %v1975_v44 = vsel %vm1972_vm6, %v1974_v0, %v1970_v27  ;;  %v1985_v33 = vsel %vm1984_vm5, %v4540_v45, %v1981_v1  ;;  %v4010_v45 = vld [vmem:[#allocation5 + $0xd0] sm:$0xf0]  ;;  %2576 = vmatpush.bf16.msrb.mxu3 %v4021_v59  ;;  %v4000_v54 = vld [vmem:[#allocation5 + $0xa8] sm:$0xf] }
 0x3b9   :  { %v1990_v7 = vsel %vm1987_vm7, %v1989_v56, %v1985_v33  ;;  %v2009_v11 = vmul.f32 %v4544_v3, %v1975_v44  ;;  %v4013_v52 = vor.u32 %v4422_v41, %v4010_v45  ;;  %2537 = vmatpush.bf16.msrb.mxu0 %v4009_v42  ;;  %v3994_v63 = vld [vmem:[#allocation5 + $0xb0] sm:$0xf0]  ;;  %v4421_v0 = vld [vmem:[#allocation5 + $0xb4] sm:$0xf0]  ;;  %v4419_v27 = vld [vmem:[#allocation5 + $0xac] sm:$0xf] }
 0x3ba   :  { %v1995_v23 = vmul.f32 %v4542_v49, %v1994_v16  ;;  %v2008_v21 = vmul.f32 %v1990_v7, %v4851_v31  ;;  %v3997_v1 = vor.u32 %v4418_v35, %v3994_v63  ;;  %v4001_v56 = vor.u32 %v4421_v0, %v4000_v54  ;;  %v4002_v3 = vld [vmem:[#allocation5 + $0xb8] sm:$0xf0]  ;;  %v3976_v44 = vld [vmem:[#allocation5 + $0x80] sm:$0xf]  ;;  %v4416_v33 = vld [vmem:[#allocation5 + $0x8c] sm:$0xf0] }
 0x3bb   :  { %2550 = vmatpush.bf16.msrb.mxu1 %v4013_v52  ;;  %v4005_v16 = vor.u32 %v4419_v27, %v4002_v3  ;;  %v4414_v7 = vld [vmem:[#allocation5 + $0x84] sm:$0xf]  ;;  %v3944_v40 = vld [vmem:[#allocation5 + $0x40] sm:$0xf]  ;;  %v4408_v41 = vld [vmem:[#allocation5 + $0x4c] sm:$0xf0] }
 0x3bc   :  { %v4862_v17 = vadd.f32 %v2009_v11, %v2008_v21  ;;  %v1996_v25 = vadd.f32 %v4542_v49, %v1995_v23  ;;  %2564 = vmatpush.bf16.msrb.mxu2 %v4001_v56  ;;  %v3977_v11 = vor.u32 %v4416_v33, %v3976_v44  ;;  %v3978_v23 = vld [vmem:[#allocation5 + $0x90] sm:$0xf0]  ;;  %v3984_v21 = vld [vmem:[#allocation5 + $0x88] sm:$0xf]  ;;  %v4406_v42 = vld [vmem:[#allocation5 + $0x44] sm:$0xf]  ;;  %v3945_v45 = vor.u32 %v4408_v41, %v3944_v40 }
 0x3bd   :  { %2577 = vmatpush.bf16.msrb.mxu3 %v4005_v16  ;;  %v3981_v37 = vor.u32 %v4414_v7, %v3978_v23  ;;  %v4409_v52 = vld [vmem:[#allocation5 + $0x54] sm:$0xf0]  ;;  %v3949_v58 = vor.u32 %v4406_v42, %v3946_v48  ;;  %v4404_v35 = vld [vmem:[#allocation5 + $0x2c] sm:$0xf0]  ;;  %v4402_v63 = vld [vmem:[#allocation5 + $0x24] sm:$0xf] }
 0x3be   :  { %4545 = vtanh.f32 %v4862_v17  ;;  %v2000_v14 = vsel %vm1999_vm10, %v4542_v49, %v1996_v25  ;;  %v3993_v49 = vor.u32 %v4420_v47, %v3992_v62  ;;  %v4417_v25 = vld [vmem:[#allocation5 + $0x94] sm:$0xf0]  ;;  %v3953_v59 = vor.u32 %v4409_v52, %v3952_v50  ;;  %v4407_v62 = vld [vmem:[#allocation5 + $0x4c] sm:$0xf]  ;;  %v3954_v47 = vld [vmem:[#allocation5 + $0x58] sm:$0xf0] }
 0x3bf   :  { %v2005_v24 = vsel %vm2002_vm11, %v2004_v19, %v2000_v14  ;;  %2551 = vmatpush.bf16.msrb.mxu1 %v3997_v1  ;;  %v3985_v12 = vor.u32 %v4417_v25, %v3984_v21  ;;  %v4415_v14 = vld [vmem:[#allocation5 + $0x8c] sm:$0xf]  ;;  %v3986_v19 = vld [vmem:[#allocation5 + $0x98] sm:$0xf0]  ;;  %v3930_v54 = vld [vmem:[#allocation5 + $0x30] sm:$0xf0] }
 0x3c0   :  { %2538 = vmatpush.bf16.msrb.mxu0 %v3993_v49  ;;  %v3936_v0 = vld [vmem:[#allocation5 + $0x28] sm:$0xf]  ;;  %v3933_v1 = vor.u32 %v4402_v63, %v3930_v54  ;;  %v4405_v56 = vld [vmem:[#allocation5 + $0x34] sm:$0xf0]  ;;  %v4403_v27 = vld [vmem:[#allocation5 + $0x2c] sm:$0xf] }
 0x3c1   :  { %2565 = vmatpush.bf16.msrb.mxu2 %v3985_v12  ;;  %v3938_v3 = vld [vmem:[#allocation5 + $0x38] sm:$0xf0]  ;;  %v3937_v33 = vor.u32 %v4405_v56, %v3936_v0  ;;  %v4400_v23 = vld [vmem:[#allocation5 + $0xc] sm:$0xf0]  ;;  %v4398_v21 = vld [vmem:[#allocation5 + $0x4] sm:$0xf] }
 0x3c2   :  { %v3941_v7 = vor.u32 %v4403_v27, %v3938_v3 }
 0x3c3   :  { %2552 = vmatpush.bf16.msrb.mxu1 %v3981_v37 }
 0x3c4   :  { %v4546_v38 = vpop.eup %4545  ;;  %2539 = vmatpush.bf16.msrb.mxu0 %v3977_v11  ;;  %v3912_v11 = vld [vmem:[#allocation5] sm:$0xf] }
 0x3c5   :  { %v2012_v43 = vmul.f32 %v4546_v38, %v2005_v24  ;;  %v3989_v38 = vor.u32 %v4415_v14, %v3986_v19  ;;  %v3960_v24 = vld [vmem:[#allocation5 + $0x60] sm:$0xf]  ;;  %2566 = vmatpush.bf16.msrb.mxu2 %v3969_v29  ;;  %v3913_v14 = vor.u32 %v4400_v23, %v3912_v11  ;;  %v3914_v19 = vld [vmem:[#allocation5 + $0x10] sm:$0xf0] }
 0x3c7   :  { %3777 = vst [vmem:[%s4902_s4 + $0x20] sm:$0xff] %v2012_v43  ;;  %v2022_v31 = vpack.c.bf16 %v2012_v43, %v2012_v43  ;;  %v4412_v43 = vld [vmem:[#allocation5 + $0x6c] sm:$0xf0]  ;;  %2578 = vmatpush.bf16.msrb.mxu3 %v3989_v38  ;;  %v3920_v38 = vld [vmem:[#allocation5 + $0x8] sm:$0xf] }
 0x3c8   :  { %v3961_v6 = vor.u32 %v4412_v43, %v3960_v24  ;;  %v4401_v24 = vld [vmem:[#allocation5 + $0x14] sm:$0xf0]  ;;  %v3917_v43 = vor.u32 %v4398_v21, %v3914_v19  ;;  %v4460_v19 = vld [vmem:[#allocation5 + $0xec] sm:$0xf0] }
 0x3c9   :  { %2223 = vmatmul.bf16.vlgmr.msra.gmra.mxu0 %v2022_v31  ;;  %2236 = vmatmul.bf16.vlgmr.msra.gmra.mxu1 %v2022_v31 }
 0x3ca   :  { %2249 = vmatmul.bf16.vlgmr.msra.gmra.mxu2 %v2022_v31  ;;  %2262 = vmatmul.bf16.vlgmr.msra.gmra.mxu3 %v2022_v31  ;;  %v4410_v31 = vld [vmem:[#allocation5 + $0x64] sm:$0xf] }
 0x3cb   :  { %v3965_v28 = vor.u32 %v4410_v31, %v3962_v18  ;;  %2540 = vmatpush.bf16.msrb.mxu0 %v3961_v6  ;;  %2579 = vmatpush.bf16.msrb.mxu3 %v3973_v34  ;;  %v3921_v31 = vor.u32 %v4401_v24, %v3920_v38  ;;  %v4399_v6 = vld [vmem:[#allocation5 + $0xc] sm:$0xf]  ;;  %v3922_v18 = vld [vmem:[#allocation5 + $0x18] sm:$0xf0]  ;;  %v4458_v38 = vld [vmem:[#allocation5 + $0xe4] sm:$0xf] }
 0x3cc   :  { %2567 = vmatpush.bf16.msrb.mxu2 %v3953_v59 }
 0x3cd   :  { %2553 = vmatpush.bf16.msrb.mxu1 %v3965_v28  ;;  %v3925_v28 = vor.u32 %v4399_v6, %v3922_v18  ;;  %v4461_v6 = vld [vmem:[#allocation5 + $0xf4] sm:$0xf0] }
 0x3cf   :  { %2541 = vmatpush.bf16.msrb.mxu0 %v3945_v45 }
 0x3d0   :  { %2568 = vmatpush.bf16.msrb.mxu2 %v3937_v33 }
 0x3d1   :  { %2554 = vmatpush.bf16.msrb.mxu1 %v3949_v58 }
 0x3d4   :  { %2569 = vmatpush.bf16.msrb.mxu2 %v3921_v31  ;;  %v4164_v31 = vld [vmem:[#allocation5 + $0xe8] sm:$0xf] }
 0x3d5   :  { %2555 = vmatpush.bf16.msrb.mxu1 %v3933_v1 }
 0x3d9   :  { %2556 = vmatpush.bf16.msrb.mxu1 %v3917_v43  ;;  %v4158_v43 = vld [vmem:[#allocation5 + $0xf0] sm:$0xf0] }
 0x3da   :  { %v4161_v18 = vor.u32 %v4458_v38, %v4158_v43  ;;  %v4443_v38 = vld [vmem:[#allocation5 + $0x6c] sm:$0xf] }
 0x3dd   :  { %2870 = vmatpush.bf16.msra.mxu1 %v4161_v18 }
 0x446   :  { %v2224_v22 = vpop.f32.mrf.mxu0  ;;  %v2237_v51 = vpop.f32.mrf.mxu1 }
 0x447   :  { %v2267_v36 = vadd.f32 %v2224_v22, %v4775_v55  ;;  %v2268_v39 = vadd.f32 %v2237_v51, %v4778_v57  ;;  %v3928_v55 = vld [vmem:[#allocation5 + $0x20] sm:$0xf]  ;;  %v3957_v57 = vor.u32 %v4407_v62, %v3954_v47 }
 0x448   :  { %v3929_v49 = vor.u32 %v4404_v35, %v3928_v55 }
 0x449   :  { %v3906_v46 = vmul.f32 -1.442695, %v2267_v36  ;;  %v3907_v53 = vmul.f32 -1.442695, %v2268_v39  ;;  %2580 = vmatpush.bf16.msrb.mxu3 %v3957_v57 }
 0x44a   :  { %2542 = vmatpush.bf16.msrb.mxu0 %v3929_v49 }
 0x44b   :  { %4547 = vpow2.f32 %v3906_v46 }
 0x44c   :  { %4549 = vpow2.f32 %v3907_v53 }
 0x44d   :  { %v2250_v16 = vpop.f32.mrf.mxu2  ;;  %v2263_v44 = vpop.f32.mrf.mxu3  ;;  %2581 = vmatpush.bf16.msrb.mxu3 %v3941_v7 }
 0x44e   :  { %v2269_v25 = vadd.f32 %v2250_v16, %v4781_v2  ;;  %v2226_v37 = vpop.f32.mrf.mxu0  ;;  %v2239_v12 = vpop.f32.mrf.mxu1  ;;  %2543 = vmatpush.bf16.msrb.mxu0 %v3913_v14  ;;  %v2270_v39 = vadd.f32 %v2263_v44, %v4784_v9  ;;  %v4156_v14 = vld [vmem:[#allocation5 + $0xe0] sm:$0xf] }
 0x44f   :  { %v4157_v24 = vor.u32 %v4460_v19, %v4156_v14 }
 0x450   :  { %v3908_v20 = vmul.f32 -1.442695, %v2269_v25 }
 0x451   :  { %v4548_v26 = vpop.eup %4547  ;;  %2582 = vmatpush.bf16.msrb.mxu3 %v3925_v28  ;;  %v4166_v28 = vld [vmem:[#allocation5 + $0xf8] sm:$0xf0] }
 0x452   :  { %v4550_v29 = vpop.eup %4549  ;;  %v2280_v32 = vadd.f32 1.0, %v4548_v26  ;;  %4551 = vpow2.f32 %v3908_v20  ;;  %v4165_v20 = vor.u32 %v4461_v6, %v4164_v31  ;;  %v4459_v26 = vld [vmem:[#allocation5 + $0xec] sm:$0xf]  ;;  %2857 = vmatpush.bf16.msra.mxu0 %v4157_v24  ;;  %v4102_v24 = vld [vmem:[#allocation5 + $0x78] sm:$0xf0] }
 0x453   :  { %v2281_v2 = vadd.f32 1.0, %v4550_v29  ;;  %v4169_v29 = vor.u32 %v4459_v26, %v4166_v28  ;;  %v4105_v6 = vor.u32 %v4443_v38, %v4102_v24  ;;  %v4076_v26 = vld [vmem:[#allocation5 + $0x40] sm:$0xf]  ;;  %v4440_v28 = vld [vmem:[#allocation5 + $0x4c] sm:$0xf0] }
 0x454   :  { %4553 = vrcp.f32 %v2280_v32  ;;  %v2294_v50 = vand.u32 2147483648, %v2280_v32  ;;  %v2292_v53 = vand.u32 2147483647, %v2280_v32  ;;  %vm2288_vm14 = vweird.f32 %v2280_v32  ;;  %2883 = vmatpush.bf16.msra.mxu2 %v4165_v20 }
 0x455   :  { %4555 = vrcp.f32 %v2281_v2  ;;  %v2252_v30 = vpop.f32.mrf.mxu2  ;;  %v2265_v22 = vpop.f32.mrf.mxu3  ;;  %v2309_v52 = vand.u32 2147483648, %v2281_v2  ;;  %v2307_v59 = vand.u32 2147483647, %v2281_v2  ;;  %vm2303_vm15 = vweird.f32 %v2281_v2  ;;  %2896 = vmatpush.bf16.msra.mxu3 %v4169_v29  ;;  %v4438_v29 = vld [vmem:[#allocation5 + $0x44] sm:$0xf] }
 0x456   :  { %v2295_v55 = vor.u32 1.1754944e-38, %v2294_v50  ;;  %vm2293_vm2 = vcmp.eq.f32.partialorder %v2292_v53, 8.507059e+37  ;;  %v4454_v30 = vld [vmem:[#allocation5 + $0xc4] sm:$0xf]  ;;  %v4452_v50 = vld [vmem:[#allocation5 + $0xac] sm:$0xf0] }
 0x457   :  { %v2310_v57 = vor.u32 1.1754944e-38, %v2309_v52  ;;  %vm2308_vm3 = vcmp.eq.f32.partialorder %v2307_v59, 8.507059e+37  ;;  %v4450_v52 = vld [vmem:[#allocation5 + $0xa4] sm:$0xf]  ;;  %v4126_v53 = vld [vmem:[#allocation5 + $0xb0] sm:$0xf0] }
 0x458   :  { %v4552_v51 = vpop.eup %4551  ;;  %v4453_v59 = vld [vmem:[#allocation5 + $0xb4] sm:$0xf0] }
 0x459   :  { %v2282_v34 = vadd.f32 1.0, %v4552_v51  ;;  %v4142_v51 = vld [vmem:[#allocation5 + $0xd0] sm:$0xf0] }
 0x45a   :  { %v4554_v36 = vpop.eup %4553 }
 0x45b   :  { %v4556_v40 = vpop.eup %4555  ;;  %v2284_v41 = vmul.f32 %v4554_v36, %v2280_v32  ;;  %4557 = vrcp.f32 %v2282_v34  ;;  %vm2289_vm12 = vweird.f32 %v4554_v36  ;;  %v2324_v7 = vand.u32 2147483648, %v2282_v34  ;;  %v4140_v32 = vld [vmem:[#allocation5 + $0xc0] sm:$0xf] }
 0x45c   :  { %v2299_v42 = vmul.f32 %v4556_v40, %v2281_v2  ;;  %4559 = vtanh.f32 %v2270_v39  ;;  %vm2304_vm13 = vweird.f32 %v4556_v40  ;;  %vm2290_vm0 = vmor %vm2288_vm14, %vm2289_vm12  ;;  %vm2318_vm5 = vweird.f32 %v2282_v34  ;;  %v4456_v2 = vld [vmem:[#allocation5 + $0xcc] sm:$0xf0] }
 0x45d   :  { %v2285_v45 = vsub.f32 1.0, %v2284_v41  ;;  %vm2305_vm1 = vmor %vm2303_vm15, %vm2304_vm13  ;;  %v2322_v11 = vand.u32 2147483647, %v2282_v34  ;;  %v2325_v21 = vor.u32 1.1754944e-38, %v2324_v7  ;;  %v4141_v22 = vor.u32 %v4456_v2, %v4140_v32  ;;  %v4455_v41 = vld [vmem:[#allocation5 + $0xcc] sm:$0xf] }
 0x45e   :  { %v2300_v48 = vsub.f32 1.0, %v2299_v42  ;;  %v4145_v39 = vor.u32 %v4454_v30, %v4142_v51  ;;  %v4150_v42 = vld [vmem:[#allocation5 + $0xd8] sm:$0xf0]  ;;  %v4077_v32 = vor.u32 %v4440_v28, %v4076_v26  ;;  %v4078_v2 = vld [vmem:[#allocation5 + $0x50] sm:$0xf0] }
 0x45f   :  { %v2286_v46 = vmul.f32 %v4554_v36, %v2285_v45  ;;  %vm2323_vm7 = vcmp.eq.f32.partialorder %v2322_v11, 8.507059e+37  ;;  %2858 = vmatpush.bf16.msra.mxu0 %v4141_v22  ;;  %v4153_v45 = vor.u32 %v4455_v41, %v4150_v42  ;;  %v4092_v11 = vld [vmem:[#allocation5 + $0x60] sm:$0xf]  ;;  %v4084_v30 = vld [vmem:[#allocation5 + $0x48] sm:$0xf] }
 0x460   :  { %v2301_v58 = vmul.f32 %v4556_v40, %v2300_v48  ;;  %2871 = vmatpush.bf16.msra.mxu1 %v4145_v39  ;;  %v4124_v48 = vld [vmem:[#allocation5 + $0xa0] sm:$0xf]  ;;  %v4441_v22 = vld [vmem:[#allocation5 + $0x54] sm:$0xf0]  ;;  %v4086_v41 = vld [vmem:[#allocation5 + $0x58] sm:$0xf0] }
 0x461   :  { %v4558_v62 = vpop.eup %4557  ;;  %v2287_v47 = vadd.f32 %v4554_v36, %v2286_v46  ;;  %2897 = vmatpush.bf16.msra.mxu3 %v4153_v45  ;;  %v4125_v46 = vor.u32 %v4452_v50, %v4124_v48  ;;  %v4085_v39 = vor.u32 %v4441_v22, %v4084_v30  ;;  %v4436_v42 = vld [vmem:[#allocation5 + $0x2c] sm:$0xf0]  ;;  %v4434_v48 = vld [vmem:[#allocation5 + $0x24] sm:$0xf]  ;;  %v4062_v50 = vld [vmem:[#allocation5 + $0x30] sm:$0xf0] }
 0x462   :  { %v2314_v9 = vmul.f32 %v4558_v62, %v2282_v34  ;;  %v2302_v35 = vadd.f32 %v4556_v40, %v2301_v58  ;;  %v4560_v63 = vpop.eup %4559  ;;  %vm2319_vm4 = vweird.f32 %v4558_v62  ;;  %v4148_v34 = vld [vmem:[#allocation5 + $0xc8] sm:$0xf] }
 0x463   :  { %v2291_v49 = vsel %vm2290_vm0, %v4554_v36, %v2287_v47  ;;  %vm2320_vm6 = vmor %vm2318_vm5, %vm2319_vm4  ;;  %v4457_v36 = vld [vmem:[#allocation5 + $0xd4] sm:$0xf0]  ;;  %v4132_v58 = vld [vmem:[#allocation5 + $0xa8] sm:$0xf]  ;;  %2859 = vmatpush.bf16.msra.mxu0 %v4125_v46  ;;  %v4065_v46 = vor.u32 %v4434_v48, %v4062_v50 }
 0x464   :  { %v2315_v54 = vsub.f32 1.0, %v2314_v9  ;;  %v2296_v0 = vsel %vm2293_vm2, %v2295_v55, %v2291_v49  ;;  %v2306_v1 = vsel %vm2305_vm1, %v4556_v40, %v2302_v35  ;;  %v4149_v40 = vor.u32 %v4457_v36, %v4148_v34  ;;  %v4451_v9 = vld [vmem:[#allocation5 + $0xac] sm:$0xf]  ;;  %v4134_v55 = vld [vmem:[#allocation5 + $0xb8] sm:$0xf0] }
 0x465   :  { %v2311_v56 = vsel %vm2308_vm3, %v2310_v57, %v2306_v1  ;;  %v2330_v27 = vmul.f32 %v4560_v63, %v2296_v0  ;;  %v4133_v47 = vor.u32 %v4453_v59, %v4132_v58  ;;  %v4137_v35 = vor.u32 %v4451_v9, %v4134_v55  ;;  %v4108_v57 = vld [vmem:[#allocation5 + $0x80] sm:$0xf]  ;;  %v4448_v49 = vld [vmem:[#allocation5 + $0x8c] sm:$0xf0]  ;;  %v4446_v63 = vld [vmem:[#allocation5 + $0x84] sm:$0xf] }
 0x466   :  { %v2316_v3 = vmul.f32 %v4558_v62, %v2315_v54  ;;  %v2329_v16 = vmul.f32 %v2311_v56, %v4862_v17  ;;  %2884 = vmatpush.bf16.msra.mxu2 %v4149_v40  ;;  %v4109_v54 = vor.u32 %v4448_v49, %v4108_v57  ;;  %v4110_v0 = vld [vmem:[#allocation5 + $0x90] sm:$0xf0]  ;;  %v4116_v1 = vld [vmem:[#allocation5 + $0x88] sm:$0xf]  ;;  %v4449_v56 = vld [vmem:[#allocation5 + $0x94] sm:$0xf0]  ;;  %v4081_v36 = vor.u32 %v4438_v29, %v4078_v2 }
 0x467   :  { %2898 = vmatpush.bf16.msra.mxu3 %v4137_v35  ;;  %v4439_v40 = vld [vmem:[#allocation5 + $0x4c] sm:$0xf]  ;;  %v4070_v59 = vld [vmem:[#allocation5 + $0x38] sm:$0xf0]  ;;  %v4044_v35 = vld [vmem:[#allocation5] sm:$0xf] }
 0x468   :  { %v4873_v44 = vadd.f32 %v2330_v27, %v2329_v16  ;;  %v2317_v33 = vadd.f32 %v4558_v62, %v2316_v3  ;;  %v4113_v27 = vor.u32 %v4446_v63, %v4110_v0  ;;  %v4117_v3 = vor.u32 %v4449_v56, %v4116_v1  ;;  %v4447_v16 = vld [vmem:[#allocation5 + $0x8c] sm:$0xf]  ;;  %2860 = vmatpush.bf16.msra.mxu0 %v4109_v54  ;;  %v4432_v57 = vld [vmem:[#allocation5 + $0xc] sm:$0xf0]  ;;  %v4430_v49 = vld [vmem:[#allocation5 + $0x4] sm:$0xf] }
 0x469   :  { %v4435_v58 = vld [vmem:[#allocation5 + $0x2c] sm:$0xf]  ;;  %v4045_v1 = vor.u32 %v4432_v57, %v4044_v35  ;;  %v4046_v56 = vld [vmem:[#allocation5 + $0x10] sm:$0xf0] }
 0x46a   :  { %4561 = vtanh.f32 %v4873_v44  ;;  %v2321_v23 = vsel %vm2320_vm6, %v4558_v62, %v2317_v33  ;;  %v4129_v62 = vor.u32 %v4450_v52, %v4126_v53  ;;  %2885 = vmatpush.bf16.msra.mxu2 %v4133_v47  ;;  %v4118_v33 = vld [vmem:[#allocation5 + $0x98] sm:$0xf0]  ;;  %v4068_v52 = vld [vmem:[#allocation5 + $0x28] sm:$0xf]  ;;  %v4437_v53 = vld [vmem:[#allocation5 + $0x34] sm:$0xf0]  ;;  %v4073_v55 = vor.u32 %v4435_v58, %v4070_v59 }
 0x46b   :  { %v2326_v37 = vsel %vm2323_vm7, %v2325_v21, %v2321_v23  ;;  %v4121_v7 = vor.u32 %v4447_v16, %v4118_v33  ;;  %v4444_v23 = vld [vmem:[#allocation5 + $0x6c] sm:$0xf0]  ;;  %v4442_v21 = vld [vmem:[#allocation5 + $0x64] sm:$0xf]  ;;  %v4069_v9 = vor.u32 %v4437_v53, %v4068_v52  ;;  %v4049_v16 = vor.u32 %v4430_v49, %v4046_v56 }
 0x46c   :  { %2872 = vmatpush.bf16.msra.mxu1 %v4129_v62 }
 0x46d   :  { %2899 = vmatpush.bf16.msra.mxu3 %v4121_v7  ;;  %v4431_v7 = vld [vmem:[#allocation5 + $0xc] sm:$0xf] }
 0x46e   :  { %2886 = vmatpush.bf16.msra.mxu2 %v4117_v3  ;;  %v4433_v3 = vld [vmem:[#allocation5 + $0x14] sm:$0xf0] }
 0x470   :  { %v4562_v25 = vpop.eup %4561  ;;  %2873 = vmatpush.bf16.msra.mxu1 %v4113_v27  ;;  %v4052_v27 = vld [vmem:[#allocation5 + $0x8] sm:$0xf] }
 0x471   :  { %v2333_v12 = vmul.f32 %v4562_v25, %v2326_v37  ;;  %v4093_v25 = vor.u32 %v4444_v23, %v4092_v11  ;;  %v4094_v37 = vld [vmem:[#allocation5 + $0x70] sm:$0xf0]  ;;  %2900 = vmatpush.bf16.msra.mxu3 %v4105_v6  ;;  %v4053_v33 = vor.u32 %v4433_v3, %v4052_v27  ;;  %v4054_v11 = vld [vmem:[#allocation5 + $0x18] sm:$0xf0] }
 0x472   :  { %v4097_v14 = vor.u32 %v4442_v21, %v4094_v37 }
 0x473   :  { %3909 = vst [vmem:[%s4902_s4 + $0x28] sm:$0xff] %v2333_v12  ;;  %v2343_v17 = vpack.c.bf16 %v2333_v12, %v2333_v12  ;;  %v4100_v12 = vld [vmem:[#allocation5 + $0x68] sm:$0xf]  ;;  %2861 = vmatpush.bf16.msra.mxu0 %v4093_v25  ;;  %v4057_v25 = vor.u32 %v4431_v7, %v4054_v11 }
 0x474   :  { %2874 = vmatpush.bf16.msra.mxu1 %v4097_v14 }
 0x475   :  { %2544 = vmatmul.bf16.vlgmr.msrb.gmra.mxu0 %v2343_v17  ;;  %2557 = vmatmul.bf16.vlgmr.msrb.gmra.mxu1 %v2343_v17 }
 0x476   :  { %2570 = vmatmul.bf16.vlgmr.msrb.gmra.mxu2 %v2343_v17  ;;  %2583 = vmatmul.bf16.vlgmr.msrb.gmra.mxu3 %v2343_v17  ;;  %v4445_v17 = vld [vmem:[#allocation5 + $0x74] sm:$0xf0] }
 0x477   :  { %v4101_v19 = vor.u32 %v4445_v17, %v4100_v12  ;;  %2862 = vmatpush.bf16.msra.mxu0 %v4077_v32 }
 0x478   :  { %2875 = vmatpush.bf16.msra.mxu1 %v4081_v36 }
 0x479   :  { %2887 = vmatpush.bf16.msra.mxu2 %v4101_v19 }
 0x47c   :  { %2876 = vmatpush.bf16.msra.mxu1 %v4065_v46 }
 0x47d   :  { %2888 = vmatpush.bf16.msra.mxu2 %v4085_v39 }
 0x480   :  { %2877 = vmatpush.bf16.msra.mxu1 %v4049_v16 }
 0x481   :  { %2889 = vmatpush.bf16.msra.mxu2 %v4069_v9 }
 0x485   :  { %2890 = vmatpush.bf16.msra.mxu2 %v4053_v33 }
 0x4f2   :  { %v2545_v43 = vpop.f32.mrf.mxu0  ;;  %v2558_v31 = vpop.f32.mrf.mxu1 }
 0x4f3   :  { %v2588_v18 = vadd.f32 %v2545_v43, %v4787_v10  ;;  %v2589_v20 = vadd.f32 %v2558_v31, %v4790_v15  ;;  %v4060_v10 = vld [vmem:[#allocation5 + $0x20] sm:$0xf]  ;;  %v4089_v15 = vor.u32 %v4439_v40, %v4086_v41 }
 0x4f4   :  { %v4061_v45 = vor.u32 %v4436_v42, %v4060_v10 }
 0x4f5   :  { %v4038_v51 = vmul.f32 -1.442695, %v2588_v18  ;;  %v4039_v34 = vmul.f32 -1.442695, %v2589_v20  ;;  %2901 = vmatpush.bf16.msra.mxu3 %v4089_v15 }
 0x4f6   :  { %2863 = vmatpush.bf16.msra.mxu0 %v4061_v45 }
 0x4f7   :  { %4563 = vpow2.f32 %v4038_v51 }
 0x4f8   :  { %4565 = vpow2.f32 %v4039_v34 }
 0x4f9   :  { %v2571_v62 = vpop.f32.mrf.mxu2  ;;  %v2584_v47 = vpop.f32.mrf.mxu3  ;;  %2902 = vmatpush.bf16.msra.mxu3 %v4073_v55 }
 0x4fa   :  { %v2590_v63 = vadd.f32 %v2571_v62, %v4793_v60  ;;  %v2547_v54 = vpop.f32.mrf.mxu0  ;;  %v2560_v0 = vpop.f32.mrf.mxu1  ;;  %2864 = vmatpush.bf16.msra.mxu0 %v4045_v1  ;;  %v2591_v43 = vadd.f32 %v2584_v47, %v4796_v4 }
 0x4fc   :  { %v4040_v23 = vmul.f32 -1.442695, %v2590_v63 }
 0x4fd   :  { %v4564_v21 = vpop.eup %4563  ;;  %2903 = vmatpush.bf16.msra.mxu3 %v4057_v25 }
 0x4fe   :  { %v4566_v37 = vpop.eup %4565  ;;  %v2601_v12 = vadd.f32 1.0, %v4564_v21  ;;  %4567 = vpow2.f32 %v4040_v23 }
 0x4ff   :  { %v2602_v60 = vadd.f32 1.0, %v4566_v37 }
 0x500   :  { %4569 = vrcp.f32 %v2601_v12  ;;  %v2615_v28 = vand.u32 2147483648, %v2601_v12  ;;  %v2613_v2 = vand.u32 2147483647, %v2601_v12  ;;  %vm2609_vm10 = vweird.f32 %v2601_v12 }
 0x501   :  { %4571 = vrcp.f32 %v2602_v60  ;;  %v2573_v17 = vpop.f32.mrf.mxu2  ;;  %v2586_v14 = vpop.f32.mrf.mxu3  ;;  %v2630_v29 = vand.u32 2147483648, %v2602_v60  ;;  %v2628_v22 = vand.u32 2147483647, %v2602_v60  ;;  %vm2624_vm11 = vweird.f32 %v2602_v60 }
 0x502   :  { %v2616_v36 = vor.u32 1.1754944e-38, %v2615_v28  ;;  %vm2614_vm14 = vcmp.eq.f32.partialorder %v2613_v2, 8.507059e+37 }
 0x503   :  { %v2631_v40 = vor.u32 1.1754944e-38, %v2630_v29  ;;  %vm2629_vm15 = vcmp.eq.f32.partialorder %v2628_v22, 8.507059e+37 }
 0x504   :  { %v4568_v19 = vpop.eup %4567 }
 0x505   :  { %v2603_v38 = vadd.f32 1.0, %v4568_v19 }
 0x506   :  { %v4570_v24 = vpop.eup %4569 }
 0x507   :  { %v4572_v31 = vpop.eup %4571  ;;  %v2605_v6 = vmul.f32 %v4570_v24, %v2601_v12  ;;  %4573 = vrcp.f32 %v2603_v38  ;;  %vm2610_vm8 = vweird.f32 %v4570_v24  ;;  %v2645_v59 = vand.u32 2147483648, %v2603_v38 }
 0x508   :  { %v2620_v18 = vmul.f32 %v4572_v31, %v2602_v60  ;;  %4575 = vtanh.f32 %v2591_v43  ;;  %vm2625_vm9 = vweird.f32 %v4572_v31  ;;  %vm2611_vm12 = vmor %vm2609_vm10, %vm2610_vm8  ;;  %vm2639_vm1 = vweird.f32 %v2603_v38 }
 0x509   :  { %v2606_v20 = vsub.f32 1.0, %v2605_v6  ;;  %vm2626_vm13 = vmor %vm2624_vm11, %vm2625_vm9  ;;  %v2643_v62 = vand.u32 2147483647, %v2603_v38  ;;  %v2646_v9 = vor.u32 1.1754944e-38, %v2645_v59 }
 0x50a   :  { %v2621_v26 = vsub.f32 1.0, %v2620_v18 }
 0x50b   :  { %v2607_v32 = vmul.f32 %v4570_v24, %v2606_v20  ;;  %vm2644_vm3 = vcmp.eq.f32.partialorder %v2643_v62, 8.507059e+37 }
 0x50c   :  { %v2622_v30 = vmul.f32 %v4572_v31, %v2621_v26 }
 0x50d   :  { %v4574_v51 = vpop.eup %4573  ;;  %v2608_v34 = vadd.f32 %v4570_v24, %v2607_v32 }
 0x50e   :  { %v2635_v4 = vmul.f32 %v4574_v51, %v2603_v38  ;;  %v2623_v39 = vadd.f32 %v4572_v31, %v2622_v30  ;;  %v4576_v10 = vpop.eup %4575  ;;  %vm2640_vm0 = vweird.f32 %v4574_v51 }
 0x50f   :  { %v2612_v41 = vsel %vm2611_vm12, %v4570_v24, %v2608_v34  ;;  %vm2641_vm2 = vmor %vm2639_vm1, %vm2640_vm0 }
 0x510   :  { %v2636_v42 = vsub.f32 1.0, %v2635_v4  ;;  %v2617_v15 = vsel %vm2614_vm14, %v2616_v36, %v2612_v41  ;;  %v2627_v45 = vsel %vm2626_vm13, %v4572_v31, %v2623_v39 }
 0x511   :  { %v2632_v48 = vsel %vm2629_vm15, %v2631_v40, %v2627_v45  ;;  %v2651_v50 = vmul.f32 %v4576_v10, %v2617_v15 }
 0x512   :  { %v2637_v52 = vmul.f32 %v4574_v51, %v2636_v42  ;;  %v2650_v46 = vmul.f32 %v2632_v48, %v4873_v44 }
 0x514   :  { %v4884_v53 = vadd.f32 %v2651_v50, %v2650_v46  ;;  %v2638_v58 = vadd.f32 %v4574_v51, %v2637_v52 }
 0x516   :  { %4577 = vtanh.f32 %v4884_v53  ;;  %v2642_v47 = vsel %vm2641_vm2, %v4574_v51, %v2638_v58 }
 0x517   :  { %v2647_v35 = vsel %vm2644_vm3, %v2646_v9, %v2642_v47 }
 0x51c   :  { %v4578_v55 = vpop.eup %4577 }
 0x51d   :  { %v2654_v57 = vmul.f32 %v4578_v55, %v2647_v35 }
 0x51f   :  { %4041 = vst [vmem:[%s4902_s4 + $0x30] sm:$0xff] %v2654_v57  ;;  %v2664_v44 = vpack.c.bf16 %v2654_v57, %v2654_v57 }
 0x521   :  { %2865 = vmatmul.bf16.vlgmr.msra.gmra.mxu0 %v2664_v44  ;;  %2878 = vmatmul.bf16.vlgmr.msra.gmra.mxu1 %v2664_v44 }
 0x522   :  { %2891 = vmatmul.bf16.vlgmr.msra.gmra.mxu2 %v2664_v44  ;;  %2904 = vmatmul.bf16.vlgmr.msra.gmra.mxu3 %v2664_v44 }
 0x59e   :  { %v2866_v49 = vpop.f32.mrf.mxu0  ;;  %v2879_v63 = vpop.f32.mrf.mxu1 }
 0x59f   :  { %v2909_v54 = vadd.f32 %v2866_v49, %v4799_v5  ;;  %v2910_v0 = vadd.f32 %v2879_v63, %v4802_v8 }
 0x5a1   :  { %v4170_v1 = vmul.f32 -1.442695, %v2909_v54  ;;  %v4171_v56 = vmul.f32 -1.442695, %v2910_v0 }
 0x5a3   :  { %4579 = vpow2.f32 %v4170_v1 }
 0x5a4   :  { %4581 = vpow2.f32 %v4171_v56 }
 0x5a5   :  { %v2892_v27 = vpop.f32.mrf.mxu2  ;;  %v2905_v3 = vpop.f32.mrf.mxu3 }
 0x5a6   :  { %v2911_v16 = vadd.f32 %v2892_v27, %v4809_v61  ;;  %v2868_v33 = vpop.f32.mrf.mxu0  ;;  %v2881_v7 = vpop.f32.mrf.mxu1  ;;  %v2912_v14 = vadd.f32 %v2905_v3, %v4812_v13 }
 0x5a8   :  { %v4172_v11 = vmul.f32 -1.442695, %v2911_v16 }
 0x5a9   :  { %v4580_v23 = vpop.eup %4579 }
 0x5aa   :  { %v4582_v21 = vpop.eup %4581  ;;  %v2922_v25 = vadd.f32 1.0, %v4580_v23  ;;  %4583 = vpow2.f32 %v4172_v11 }
 0x5ab   :  { %v2923_v37 = vadd.f32 1.0, %v4582_v21 }
 0x5ac   :  { %4585 = vrcp.f32 %v2922_v25  ;;  %v2936_v31 = vand.u32 2147483648, %v2922_v25  ;;  %v2934_v20 = vand.u32 2147483647, %v2922_v25  ;;  %vm2930_vm6 = vweird.f32 %v2922_v25 }
 0x5ad   :  { %4587 = vrcp.f32 %v2923_v37  ;;  %v2894_v5 = vpop.f32.mrf.mxu2  ;;  %v2907_v8 = vpop.f32.mrf.mxu3  ;;  %v2951_v6 = vand.u32 2147483648, %v2923_v37  ;;  %v2949_v28 = vand.u32 2147483647, %v2923_v37  ;;  %vm2945_vm7 = vweird.f32 %v2923_v37 }
 0x5ae   :  { %v2937_v2 = vor.u32 1.1754944e-38, %v2936_v31  ;;  %vm2935_vm10 = vcmp.eq.f32.partialorder %v2934_v20, 8.507059e+37 }
 0x5af   :  { %v2952_v22 = vor.u32 1.1754944e-38, %v2951_v6  ;;  %vm2950_vm11 = vcmp.eq.f32.partialorder %v2949_v28, 8.507059e+37 }
 0x5b0   :  { %v4584_v12 = vpop.eup %4583 }
 0x5b1   :  { %v2924_v60 = vadd.f32 1.0, %v4584_v12 }
 0x5b2   :  { %v4586_v17 = vpop.eup %4585 }
 0x5b3   :  { %v4588_v19 = vpop.eup %4587  ;;  %v2926_v38 = vmul.f32 %v4586_v17, %v2922_v25  ;;  %4589 = vrcp.f32 %v2924_v60  ;;  %vm2931_vm4 = vweird.f32 %v4586_v17  ;;  %v2966_v48 = vand.u32 2147483648, %v2924_v60 }
 0x5b4   :  { %v2941_v61 = vmul.f32 %v4588_v19, %v2923_v37  ;;  %4591 = vtanh.f32 %v2912_v14  ;;  %vm2946_vm5 = vweird.f32 %v4588_v19  ;;  %vm2932_vm8 = vmor %vm2930_vm6, %vm2931_vm4  ;;  %vm2960_vm13 = vweird.f32 %v2924_v60 }
 0x5b5   :  { %v2927_v24 = vsub.f32 1.0, %v2926_v38  ;;  %vm2947_vm9 = vmor %vm2945_vm7, %vm2946_vm5  ;;  %v2964_v50 = vand.u32 2147483647, %v2924_v60  ;;  %v2967_v46 = vor.u32 1.1754944e-38, %v2966_v48 }
 0x5b6   :  { %v2942_v43 = vsub.f32 1.0, %v2941_v61 }
 0x5b7   :  { %v2928_v18 = vmul.f32 %v4586_v17, %v2927_v24  ;;  %vm2965_vm15 = vcmp.eq.f32.partialorder %v2964_v50, 8.507059e+37 }
 0x5b8   :  { %v2943_v26 = vmul.f32 %v4588_v19, %v2942_v43 }
 0x5b9   :  { %v4590_v29 = vpop.eup %4589  ;;  %v2929_v32 = vadd.f32 %v4586_v17, %v2928_v18 }
 0x5ba   :  { %v2956_v13 = vmul.f32 %v4590_v29, %v2924_v60  ;;  %v2944_v30 = vadd.f32 %v4588_v19, %v2943_v26  ;;  %v4592_v34 = vpop.eup %4591  ;;  %vm2961_vm12 = vweird.f32 %v4590_v29 }
 0x5bb   :  { %v2933_v51 = vsel %vm2932_vm8, %v4586_v17, %v2929_v32  ;;  %vm2962_vm14 = vmor %vm2960_vm13, %vm2961_vm12 }
 0x5bc   :  { %v2957_v4 = vsub.f32 1.0, %v2956_v13  ;;  %v2938_v36 = vsel %vm2935_vm10, %v2937_v2, %v2933_v51  ;;  %v2948_v39 = vsel %vm2947_vm9, %v4588_v19, %v2944_v30 }
 0x5bd   :  { %v2953_v40 = vsel %vm2950_vm11, %v2952_v22, %v2948_v39  ;;  %v2972_v41 = vmul.f32 %v4592_v34, %v2938_v36 }
 0x5be   :  { %v2958_v10 = vmul.f32 %v4590_v29, %v2957_v4  ;;  %v2971_v42 = vmul.f32 %v2953_v40, %v4884_v53 }
 0x5c0   :  { %v2973_v15 = vadd.f32 %v2972_v41, %v2971_v42  ;;  %v2959_v45 = vadd.f32 %v4590_v29, %v2958_v10 }
 0x5c2   :  { %4593 = vtanh.f32 %v2973_v15  ;;  %v2963_v52 = vsel %vm2962_vm14, %v4590_v29, %v2959_v45 }
 0x5c3   :  { %v2968_v59 = vsel %vm2965_vm15, %v2967_v46, %v2963_v52 }
 0x5c8   :  { %v4594_v58 = vpop.eup %4593 }
 0x5c9   :  { %v2975_v62 = vmul.f32 %v4594_v58, %v2968_v59 }
 0x5cb   :  { %4173 = vst [vmem:[%s4902_s4 + $0x38] sm:$0xff] %v2975_v62 }
 0x5cc   :  { %2982 = vsyncpa [#allocation4], 1 }
 0x5cd   :  { %2983 = vsyncpa [#allocation6], 1 }

</bundles_post_ra>
